<compile_context>
chip_gen: v5e
topology: v5e:2x2
jax: 0.10.0
libtpu: 0.0.40
codegen_flags: <defaults>
</compile_context>

<pallas_src>
import math
import numpy as np
import jax
import jax.numpy as jnp
from jax.experimental import pallas as pl
from jax.experimental.pallas import tpu as pltpu

HEAD_DIM = 128
HIDDEN = 2 * HEAD_DIM      # 256
GATES = 4 * HIDDEN         # 1024
ACT_W = 2 * HEAD_DIM       # 256 — lane-dense fused action-output width


def _round_up(x, m):
    return ((x + m - 1) // m) * m


def _calib_head_kernel(
    # streamed inputs (K-tiled)
    x_ref, w_ref,
    # resident small inputs
    b0_ref, c0_ref, h1_ref, c1_ref,
    wih1_ref, whh1_ref, b1_ref,
    we_ref, be_ref, wa_ref, ba_ref,
    # outputs
    act_ref, h_out_ref, c_out_ref,
    # scratch
    acc_ref,
):
    k = pl.program_id(0)

    @pl.when(k == 0)
    def _():
        acc_ref[...] = jnp.zeros_like(acc_ref)

    # Layer-0 gate accumulation: [x | h0]_tile @ [W_ih0 ; W_hh0]_tile (bf16 -> f32 acc).
    acc_ref[...] += jnp.dot(x_ref[...], w_ref[...],
                            preferred_element_type=jnp.float32)

    @pl.when(k == pl.num_programs(0) - 1)
    def _():
        H = HIDDEN

        def gates_to_hc(gates, c_prev):
            # PyTorch gate order: input, forget, cell, output
            i = jax.nn.sigmoid(gates[:, 0 * H:1 * H])
            f = jax.nn.sigmoid(gates[:, 1 * H:2 * H])
            g = jnp.tanh(gates[:, 2 * H:3 * H])
            o = jax.nn.sigmoid(gates[:, 3 * H:4 * H])
            c_new = f * c_prev + i * g
            h_new = o * jnp.tanh(c_new)
            return h_new, c_new

        # Layer 0 (bias = b_ih0 + b_hh0 fused).
        h0n, c0n = gates_to_hc(acc_ref[...] + b0_ref[...], c0_ref[...])

        # Layer 1.  TODO(synk): nn.LSTM inter-layer dropout(0.5) is train-mode
        # only; eval/inference identity semantics implemented here.
        gates1 = (jnp.dot(h0n, wih1_ref[...], preferred_element_type=jnp.float32)
                  + jnp.dot(h1_ref[...], whh1_ref[...],
                            preferred_element_type=jnp.float32)
                  + b1_ref[...])
        h1n, c1n = gates_to_hc(gates1, c1_ref[...])

        # Fused emb_t | emb_r : one full-width (256,256) matmul + ReLU.
        emb = jnp.maximum(
            jnp.dot(h1n, we_ref[...], preferred_element_type=jnp.float32)
            + be_ref[...], 0.0)

        # Fused action heads, lane-dense (B, 256):
        #   cols 0:3 = action_t, cols 128:131 = action_r.
        act_ref[...] = (jnp.dot(emb, wa_ref[...],
                                preferred_element_type=jnp.float32)
                        + ba_ref[...])

        # Stacked (num_layers, B, HIDDEN) hidden/cell outputs.
        h_out_ref[0, :, :] = h0n
        h_out_ref[1, :, :] = h1n
        c_out_ref[0, :, :] = c0n
        c_out_ref[1, :, :] = c1n


def prepare_params(p, input_dim, tk=2048):
    """One-time parameter prep: fold/concat/pad/cast weights for the kernel."""
    d_total = input_dim + HIDDEN
    tk = _round_up(min(tk, _round_up(d_total, 128)), 128)
    d_pad = _round_up(d_total, tk)

    # Big streamed weight: [W_ih0 ; W_hh0], bf16, zero-padded along K.
    w_cat = jnp.concatenate([p["wih0"], p["whh0"]], axis=0).astype(jnp.bfloat16)
    if d_pad > d_total:
        w_cat = jnp.pad(w_cat, ((0, d_pad - d_total), (0, 0)))

    # Fused embedding heads: (256, 256) weight, (1, 256) bias.
    we = jnp.concatenate([p["wet"], p["wer"]], axis=1).astype(jnp.float32)
    be = jnp.concatenate([p["bet"], p["ber"]], axis=1).astype(jnp.float32)

    # Fused, zero-padded, block-diagonal action heads -> lane-dense output.
    wa = jnp.zeros((ACT_W, ACT_W), jnp.float32)
    wa = wa.at[:HEAD_DIM, 0:3].set(p["wat"].astype(jnp.float32))
    wa = wa.at[HEAD_DIM:, HEAD_DIM:HEAD_DIM + 3].set(p["war"].astype(jnp.float32))
    ba = jnp.zeros((1, ACT_W), jnp.float32)
    ba = ba.at[0, 0:3].set(p["bat"][0].astype(jnp.float32))
    ba = ba.at[0, HEAD_DIM:HEAD_DIM + 3].set(p["bar"][0].astype(jnp.float32))

    return {
        "input_dim": input_dim, "tk": tk, "d_pad": d_pad,
        "w_cat": w_cat,
        "b0": p["b0"].astype(jnp.float32),
        "wih1": p["wih1"].astype(jnp.float32),
        "whh1": p["whh1"].astype(jnp.float32),
        "b1": p["b1"].astype(jnp.float32),
        "we": we, "be": be, "wa": wa, "ba": ba,
    }


def _resident(shape):
    n = len(shape)
    return pl.BlockSpec(shape, lambda k, _n=n: (0,) * _n)


def calib_action_head(state, h_n, c_n, prep):
    """Returns ([action_mean_t, action_mean_r], (h_n_new, c_n_new))."""
    B = state.shape[0]
    x = state.reshape(B, -1).astype(jnp.float32)
    assert x.shape[1] == prep["input_dim"], "state feature dim mismatch with prep"

    tk, d_pad = prep["tk"], prep["d_pad"]
    d_total = prep["input_dim"] + HIDDEN
    n_k = d_pad // tk

    # Per-call activation prep: [x | h0] in bf16, zero-padded along K.
    x_cat = jnp.concatenate([x, h_n[0].astype(jnp.float32)],
                            axis=1).astype(jnp.bfloat16)
    if d_pad > d_total:
        x_cat = jnp.pad(x_cat, ((0, 0), (0, d_pad - d_total)))

    in_specs = [
        pl.BlockSpec((B, tk), lambda k: (0, k)),        # x_cat (streamed)
        pl.BlockSpec((tk, GATES), lambda k: (k, 0)),    # w_cat (streamed)
        _resident((1, GATES)),                          # b0
        _resident((B, HIDDEN)),                         # c0
        _resident((B, HIDDEN)),                         # h1
        _resident((B, HIDDEN)),                         # c1
        _resident((HIDDEN, GATES)),                     # wih1
        _resident((HIDDEN, GATES)),                     # whh1
        _resident((1, GATES)),                          # b1
        _resident((HIDDEN, ACT_W)),                     # we
        _resident((1, ACT_W)),                          # be
        _resident((ACT_W, ACT_W)),                      # wa
        _resident((1, ACT_W)),                          # ba
    ]
    out_specs = (
        _resident((B, ACT_W)),
        _resident((2, B, HIDDEN)),
        _resident((2, B, HIDDEN)),
    )
    out_shape = (
        jax.ShapeDtypeStruct((B, ACT_W), jnp.float32),
        jax.ShapeDtypeStruct((2, B, HIDDEN), jnp.float32),
        jax.ShapeDtypeStruct((2, B, HIDDEN), jnp.float32),
    )

    # Cost estimate (dominated by the streamed layer-0 gate matmul).
    flops = (2 * B * d_pad * GATES                 # streamed layer-0 gates
             + 4 * B * HIDDEN * GATES              # layer-1 gates (2 matmuls)
             + 2 * B * HIDDEN * ACT_W              # fused emb heads
             + 2 * B * ACT_W * ACT_W)              # fused action heads
    small_param_bytes = (2 * HIDDEN * GATES + 2 * GATES + HIDDEN * ACT_W
                         + ACT_W * ACT_W + 2 * ACT_W + 3 * B * HIDDEN) * 4
    bytes_accessed = (d_pad * GATES * 2 + B * d_pad * 2 + small_param_bytes
                      + (B * ACT_W + 4 * B * HIDDEN) * 4)
    cost = pl.CostEstimate(flops=int(flops), transcendentals=int(10 * B * HIDDEN),
                           bytes_accessed=int(bytes_accessed))

    # VMEM budget: double-buffered bf16 streamed tiles + resident small arrays.
    stream_bytes = 2 * (tk * GATES * 2 + B * tk * 2)
    out_bytes = (B * ACT_W + 4 * B * HIDDEN) * 4 * 2
    scratch_bytes = B * GATES * 4
    vmem_limit = min(int(1.5 * (stream_bytes + small_param_bytes + out_bytes
                                + scratch_bytes)) + (8 << 20), 100 << 20)

    act, h_new, c_new = pl.pallas_call(
        _calib_head_kernel,
        out_shape=out_shape,
        grid_spec=pltpu.PrefetchScalarGridSpec(
            num_scalar_prefetch=0,
            grid=(n_k,),
            in_specs=in_specs,
            out_specs=out_specs,
            scratch_shapes=[pltpu.VMEM((B, GATES), jnp.float32)],
        ),
        compiler_params=pltpu.CompilerParams(
            dimension_semantics=("arbitrary",),
            vmem_limit_bytes=vmem_limit,
        ),
        cost_estimate=cost,
    )(x_cat, prep["w_cat"], prep["b0"],
      c_n[0].astype(jnp.float32), h_n[1].astype(jnp.float32),
      c_n[1].astype(jnp.float32),
      prep["wih1"], prep["whh1"], prep["b1"],
      prep["we"], prep["be"], prep["wa"], prep["ba"])

    action_t = act[:, 0:3]
    action_r = act[:, HEAD_DIM:HEAD_DIM + 3]
    return [action_t, action_r], (h_new, c_new)


def _reference(state, h_n, c_n, p):
    """Pure-JAX reference (eval-mode), mirroring the kernel's bf16 rounding of
    x / h0 / the big layer-0 weights so only accumulation order differs."""
    B = state.shape[0]
    H = HIDDEN
    x = state.reshape(B, -1).astype(jnp.float32)
    xb = x.astype(jnp.bfloat16).astype(jnp.float32)
    h0b = h_n[0].astype(jnp.bfloat16).astype(jnp.float32)
    wih0 = p["wih0"].astype(jnp.bfloat16).astype(jnp.float32)
    whh0 = p["whh0"].astype(jnp.bfloat16).astype(jnp.float32)

    def cell(g, c_prev):
        i = jax.nn.sigmoid(g[:, :H])
        f = jax.nn.sigmoid(g[:, H:2 * H])
        gg = jnp.tanh(g[:, 2 * H:3 * H])
        o = jax.nn.sigmoid(g[:, 3 * H:])
        c_new = f * c_prev + i * gg
        return o * jnp.tanh(c_new), c_new

    h0n, c0n = cell(xb @ wih0 + h0b @ whh0 + p["b0"], c_n[0])
    h1n, c1n = cell(h0n @ p["wih1"] + h_n[1] @ p["whh1"] + p["b1"], c_n[1])
    emb_t = jnp.maximum(h1n @ p["wet"] + p["bet"], 0.0)
    emb_r = jnp.maximum(h1n @ p["wer"] + p["ber"], 0.0)
    at = emb_t @ p["wat"] + p["bat"]
    ar = emb_r @ p["war"] + p["bar"]
    return [at, ar], (jnp.stack([h0n, h1n]), jnp.stack([c0n, c1n]))


def init_params(key, input_dim):
    """Deterministic synthetic parameters (shapes follow the PyTorch module,
    weights stored transposed as (in_features, out_features))."""
    ks = list(jax.random.split(key, 16))
    u = lambda k, shape, s: jax.random.uniform(k, shape, jnp.float32, -s, s)
    s_lstm = 1.0 / math.sqrt(HIDDEN)
    s_emb = 1.0 / math.sqrt(HIDDEN)
    s_act = 1.0 / math.sqrt(HEAD_DIM)
    return {
        "wih0": u(ks[0], (input_dim, 4 * HIDDEN), s_lstm),
        "whh0": u(ks[1], (HIDDEN, 4 * HIDDEN), s_lstm),
        "b0": u(ks[2], (1, 4 * HIDDEN), s_lstm),      # b_ih + b_hh fused
        "wih1": u(ks[3], (HIDDEN, 4 * HIDDEN), s_lstm),
        "whh1": u(ks[4], (HIDDEN, 4 * HIDDEN), s_lstm),
        "b1": u(ks[5], (1, 4 * HIDDEN), s_lstm),
        "wet": u(ks[6], (HIDDEN, HEAD_DIM), s_emb),
        "bet": u(ks[7], (1, HEAD_DIM), s_emb),
        "wer": u(ks[8], (HIDDEN, HEAD_DIM), s_emb),
        "ber": u(ks[9], (1, HEAD_DIM), s_emb),
        "wat": u(ks[10], (HEAD_DIM, 3), s_act),
        "bat": u(ks[11], (1, 3), s_act),
        "war": u(ks[12], (HEAD_DIM, 3), s_act),
        "bar": u(ks[13], (1, 3), s_act),
    }


if __name__ == "__main__":
    key = jax.random.PRNGKey(0)
    k_state, k_h, k_c, k_p = jax.random.split(key, 4)

    # Small synthetic shapes (real module flattens state to (B, 123780)); here
    # the flattened feature dim is 4*8*16 = 512.  tk=256 exercises the K-tiled
    # streaming path with 3 grid steps ((512 + 256) / 256).
    B = 2
    D = 4 * 8 * 16
    state = jax.random.normal(k_state, (B, 4, 8, 16), jnp.float32)
    h_n = jax.random.normal(k_h, (2, B, HIDDEN), jnp.float32)
    c_n = jax.random.normal(k_c, (2, B, HIDDEN), jnp.float32)
    params = init_params(k_p, D)
    prep = prepare_params(params, D, tk=256)

    (at, ar), (h_new, c_new) = calib_action_head(state, h_n, c_n, prep)
    jax.block_until_ready((at, ar, h_new, c_new))

    (at_r, ar_r), (h_r, c_r) = _reference(state, h_n, c_n, params)
    assert at.shape == (B, 3) and ar.shape == (B, 3)
    assert h_new.shape == (2, B, HIDDEN) and c_new.shape == (2, B, HIDDEN)
    np.testing.assert_allclose(np.asarray(at), np.asarray(at_r), atol=2e-3, rtol=2e-3)
    np.testing.assert_allclose(np.asarray(ar), np.asarray(ar_r), atol=2e-3, rtol=2e-3)
    np.testing.assert_allclose(np.asarray(h_new), np.asarray(h_r), atol=2e-3, rtol=2e-3)
    np.testing.assert_allclose(np.asarray(c_new), np.asarray(c_r), atol=2e-3, rtol=2e-3)

    print("KERNEL_OK")
</pallas_src>

<mosaic_0001>
module attributes {stable_mosaic.version = 11 : i64} {
  func.func @_calib_head_kernel(%arg0: i32, %arg1: memref<2x256xbf16, #tpu.memory_space<vmem>>, %arg2: memref<256x1024xbf16, #tpu.memory_space<vmem>>, %arg3: memref<1x1024xf32, #tpu.memory_space<vmem>>, %arg4: memref<2x256xf32, #tpu.memory_space<vmem>>, %arg5: memref<2x256xf32, #tpu.memory_space<vmem>>, %arg6: memref<2x256xf32, #tpu.memory_space<vmem>>, %arg7: memref<256x1024xf32, #tpu.memory_space<vmem>>, %arg8: memref<256x1024xf32, #tpu.memory_space<vmem>>, %arg9: memref<1x1024xf32, #tpu.memory_space<vmem>>, %arg10: memref<256x256xf32, #tpu.memory_space<vmem>>, %arg11: memref<1x256xf32, #tpu.memory_space<vmem>>, %arg12: memref<256x256xf32, #tpu.memory_space<vmem>>, %arg13: memref<1x256xf32, #tpu.memory_space<vmem>>, %arg14: memref<2x256xf32, #tpu.memory_space<vmem>>, %arg15: memref<2x2x256xf32, #tpu.memory_space<vmem>>, %arg16: memref<2x2x256xf32, #tpu.memory_space<vmem>>, %arg17: memref<2x1024xf32, #tpu.memory_space<vmem>>) attributes {dimension_semantics = [#tpu.dimension_semantics<arbitrary>], iteration_bounds = array<i64: 3>, scalar_prefetch = 0 : i64, scratch_operands = 1 : i64, tpu.core_type = #tpu.core_type<tc>, window_params = [{transform_indices = @transform_0, window_bounds = array<i64: 2, 256>}, {transform_indices = @transform_1, window_bounds = array<i64: 256, 1024>}, {pipeline_mode = #tpu.pipeline_mode<synchronous>, transform_indices = @transform_2, window_bounds = array<i64: 1, 1024>}, {pipeline_mode = #tpu.pipeline_mode<synchronous>, transform_indices = @transform_3, window_bounds = array<i64: 2, 256>}, {pipeline_mode = #tpu.pipeline_mode<synchronous>, transform_indices = @transform_4, window_bounds = array<i64: 2, 256>}, {pipeline_mode = #tpu.pipeline_mode<synchronous>, transform_indices = @transform_5, window_bounds = array<i64: 2, 256>}, {pipeline_mode = #tpu.pipeline_mode<synchronous>, transform_indices = @transform_6, window_bounds = array<i64: 256, 1024>}, {pipeline_mode = #tpu.pipeline_mode<synchronous>, transform_indices = @transform_7, window_bounds = array<i64: 256, 1024>}, {pipeline_mode = #tpu.pipeline_mode<synchronous>, transform_indices = @transform_8, window_bounds = array<i64: 1, 1024>}, {pipeline_mode = #tpu.pipeline_mode<synchronous>, transform_indices = @transform_9, window_bounds = array<i64: 256, 256>}, {pipeline_mode = #tpu.pipeline_mode<synchronous>, transform_indices = @transform_10, window_bounds = array<i64: 1, 256>}, {pipeline_mode = #tpu.pipeline_mode<synchronous>, transform_indices = @transform_11, window_bounds = array<i64: 256, 256>}, {pipeline_mode = #tpu.pipeline_mode<synchronous>, transform_indices = @transform_12, window_bounds = array<i64: 1, 256>}, {pipeline_mode = #tpu.pipeline_mode<synchronous>, transform_indices = @transform_13, window_bounds = array<i64: 2, 256>}, {pipeline_mode = #tpu.pipeline_mode<synchronous>, transform_indices = @transform_14, window_bounds = array<i64: 2, 2, 256>}, {pipeline_mode = #tpu.pipeline_mode<synchronous>, transform_indices = @transform_15, window_bounds = array<i64: 2, 2, 256>}]} {
    %c0_i32 = arith.constant 0 : i32
    %0 = arith.cmpi eq, %arg0, %c0_i32 : i32
    %1 = arith.extui %0 : i1 to i32
    %c0_i32_0 = arith.constant 0 : i32
    %2 = arith.cmpi ne, %1, %c0_i32_0 : i32
    scf.if %2 {
      %cst_9 = arith.constant 0.000000e+00 : f32
      %12 = vector.broadcast %cst_9 : f32 to vector<2x1024xf32>
      %c0_10 = arith.constant 0 : index
      %c0_11 = arith.constant 0 : index
      %13 = vector.load %arg17[%c0_10, %c0_11] : memref<2x1024xf32, #tpu.memory_space<vmem>>, vector<2x1024xf32>
      tpu.vector_store %arg17[%c0_10, %c0_11], %12 {strides = array<i32>} : memref<2x1024xf32, #tpu.memory_space<vmem>>, vector<2x1024xf32>,
    } else {
    }
    %c0 = arith.constant 0 : index
    %c0_1 = arith.constant 0 : index
    %3 = vector.load %arg17[%c0, %c0_1] : memref<2x1024xf32, #tpu.memory_space<vmem>>, vector<2x1024xf32>
    %c0_2 = arith.constant 0 : index
    %c0_3 = arith.constant 0 : index
    %4 = vector.load %arg1[%c0_2, %c0_3] : memref<2x256xbf16, #tpu.memory_space<vmem>>, vector<2x256xbf16>
    %c0_4 = arith.constant 0 : index
    %c0_5 = arith.constant 0 : index
    %5 = vector.load %arg2[%c0_4, %c0_5] : memref<256x1024xbf16, #tpu.memory_space<vmem>>, vector<256x1024xbf16>
    %cst = arith.constant dense<0.000000e+00> : vector<2x1024xf32>
    %6 = tpu.matmul %4, %5, %cst {dimension_numbers = #tpu.dot_dimension_numbers<[1], [0], [0], [1], [0, 0, 1, 1], [], []>} : vector<2x256xbf16>, vector<256x1024xbf16>, vector<2x1024xf32> -> vector<2x1024xf32>
    %7 = arith.addf %3, %6 : vector<2x1024xf32>
    %c0_6 = arith.constant 0 : index
    %c0_7 = arith.constant 0 : index
    %8 = vector.load %arg17[%c0_6, %c0_7] : memref<2x1024xf32, #tpu.memory_space<vmem>>, vector<2x1024xf32>
    tpu.vector_store %arg17[%c0_6, %c0_7], %7 {strides = array<i32>} : memref<2x1024xf32, #tpu.memory_space<vmem>>, vector<2x1024xf32>,
    %c2_i32 = arith.constant 2 : i32
    %9 = arith.cmpi eq, %arg0, %c2_i32 : i32
    %10 = arith.extui %9 : i1 to i32
    %c0_i32_8 = arith.constant 0 : i32
    %11 = arith.cmpi ne, %10, %c0_i32_8 : i32
    scf.if %11 {
      %c0_9 = arith.constant 0 : index
      %c0_10 = arith.constant 0 : index
      %12 = vector.load %arg17[%c0_9, %c0_10] : memref<2x1024xf32, #tpu.memory_space<vmem>>, vector<2x1024xf32>
      %c0_11 = arith.constant 0 : index
      %c0_12 = arith.constant 0 : index
      %13 = vector.load %arg3[%c0_11, %c0_12] : memref<1x1024xf32, #tpu.memory_space<vmem>>, vector<1x1024xf32>
      %14 = vector.broadcast %13 : vector<1x1024xf32> to vector<2x1024xf32>
      %15 = arith.addf %12, %14 : vector<2x1024xf32>
      %c0_13 = arith.constant 0 : index
      %c0_14 = arith.constant 0 : index
      %16 = vector.load %arg4[%c0_13, %c0_14] : memref<2x256xf32, #tpu.memory_space<vmem>>, vector<2x256xf32>
      %17 = vector.extract_strided_slice %15 {offsets = [0, 0], sizes = [2, 256], strides = [1, 1]} : vector<2x1024xf32> to vector<2x256xf32>
      %18 = arith.negf %17 : vector<2x256xf32>
      %19 = math.exp %18 : vector<2x256xf32>
      %cst_15 = arith.constant 1.000000e+00 : f32
      %20 = vector.broadcast %cst_15 : f32 to vector<2x256xf32>
      %21 = arith.addf %20, %19 : vector<2x256xf32>
      %22 = arith.divf %20, %21 : vector<2x256xf32>
      %23 = vector.extract_strided_slice %15 {offsets = [0, 256], sizes = [2, 256], strides = [1, 1]} : vector<2x1024xf32> to vector<2x256xf32>
      %24 = arith.negf %23 : vector<2x256xf32>
      %25 = math.exp %24 : vector<2x256xf32>
      %cst_16 = arith.constant 1.000000e+00 : f32
      %26 = vector.broadcast %cst_16 : f32 to vector<2x256xf32>
      %27 = arith.addf %26, %25 : vector<2x256xf32>
      %28 = arith.divf %26, %27 : vector<2x256xf32>
      %29 = vector.extract_strided_slice %15 {offsets = [0, 512], sizes = [2, 256], strides = [1, 1]} : vector<2x1024xf32> to vector<2x256xf32>
      %30 = math.tanh %29 : vector<2x256xf32>
      %31 = vector.extract_strided_slice %15 {offsets = [0, 768], sizes = [2, 256], strides = [1, 1]} : vector<2x1024xf32> to vector<2x256xf32>
      %32 = arith.negf %31 : vector<2x256xf32>
      %33 = math.exp %32 : vector<2x256xf32>
      %cst_17 = arith.constant 1.000000e+00 : f32
      %34 = vector.broadcast %cst_17 : f32 to vector<2x256xf32>
      %35 = arith.addf %34, %33 : vector<2x256xf32>
      %36 = arith.divf %34, %35 : vector<2x256xf32>
      %37 = arith.mulf %28, %16 : vector<2x256xf32>
      %38 = arith.mulf %22, %30 : vector<2x256xf32>
      %39 = arith.addf %37, %38 : vector<2x256xf32>
      %40 = math.tanh %39 : vector<2x256xf32>
      %41 = arith.mulf %36, %40 : vector<2x256xf32>
      %c0_18 = arith.constant 0 : index
      %c0_19 = arith.constant 0 : index
      %42 = vector.load %arg7[%c0_18, %c0_19] : memref<256x1024xf32, #tpu.memory_space<vmem>>, vector<256x1024xf32>
      %cst_20 = arith.constant dense<0.000000e+00> : vector<2x1024xf32>
      %43 = tpu.matmul %41, %42, %cst_20 {dimension_numbers = #tpu.dot_dimension_numbers<[1], [0], [0], [1], [0, 0, 1, 1], [], []>} : vector<2x256xf32>, vector<256x1024xf32>, vector<2x1024xf32> -> vector<2x1024xf32>
      %c0_21 = arith.constant 0 : index
      %c0_22 = arith.constant 0 : index
      %44 = vector.load %arg5[%c0_21, %c0_22] : memref<2x256xf32, #tpu.memory_space<vmem>>, vector<2x256xf32>
      %c0_23 = arith.constant 0 : index
      %c0_24 = arith.constant 0 : index
      %45 = vector.load %arg8[%c0_23, %c0_24] : memref<256x1024xf32, #tpu.memory_space<vmem>>, vector<256x1024xf32>
      %cst_25 = arith.constant dense<0.000000e+00> : vector<2x1024xf32>
      %46 = tpu.matmul %44, %45, %cst_25 {dimension_numbers = #tpu.dot_dimension_numbers<[1], [0], [0], [1], [0, 0, 1, 1], [], []>} : vector<2x256xf32>, vector<256x1024xf32>, vector<2x1024xf32> -> vector<2x1024xf32>
      %47 = arith.addf %43, %46 : vector<2x1024xf32>
      %c0_26 = arith.constant 0 : index
      %c0_27 = arith.constant 0 : index
      %48 = vector.load %arg9[%c0_26, %c0_27] : memref<1x1024xf32, #tpu.memory_space<vmem>>, vector<1x1024xf32>
      %49 = vector.broadcast %48 : vector<1x1024xf32> to vector<2x1024xf32>
      %50 = arith.addf %47, %49 : vector<2x1024xf32>
      %c0_28 = arith.constant 0 : index
      %c0_29 = arith.constant 0 : index
      %51 = vector.load %arg6[%c0_28, %c0_29] : memref<2x256xf32, #tpu.memory_space<vmem>>, vector<2x256xf32>
      %52 = vector.extract_strided_slice %50 {offsets = [0, 0], sizes = [2, 256], strides = [1, 1]} : vector<2x1024xf32> to vector<2x256xf32>
      %53 = arith.negf %52 : vector<2x256xf32>
      %54 = math.exp %53 : vector<2x256xf32>
      %cst_30 = arith.constant 1.000000e+00 : f32
      %55 = vector.broadcast %cst_30 : f32 to vector<2x256xf32>
      %56 = arith.addf %55, %54 : vector<2x256xf32>
      %57 = arith.divf %55, %56 : vector<2x256xf32>
      %58 = vector.extract_strided_slice %50 {offsets = [0, 256], sizes = [2, 256], strides = [1, 1]} : vector<2x1024xf32> to vector<2x256xf32>
      %59 = arith.negf %58 : vector<2x256xf32>
      %60 = math.exp %59 : vector<2x256xf32>
      %cst_31 = arith.constant 1.000000e+00 : f32
      %61 = vector.broadcast %cst_31 : f32 to vector<2x256xf32>
      %62 = arith.addf %61, %60 : vector<2x256xf32>
      %63 = arith.divf %61, %62 : vector<2x256xf32>
      %64 = vector.extract_strided_slice %50 {offsets = [0, 512], sizes = [2, 256], strides = [1, 1]} : vector<2x1024xf32> to vector<2x256xf32>
      %65 = math.tanh %64 : vector<2x256xf32>
      %66 = vector.extract_strided_slice %50 {offsets = [0, 768], sizes = [2, 256], strides = [1, 1]} : vector<2x1024xf32> to vector<2x256xf32>
      %67 = arith.negf %66 : vector<2x256xf32>
      %68 = math.exp %67 : vector<2x256xf32>
      %cst_32 = arith.constant 1.000000e+00 : f32
      %69 = vector.broadcast %cst_32 : f32 to vector<2x256xf32>
      %70 = arith.addf %69, %68 : vector<2x256xf32>
      %71 = arith.divf %69, %70 : vector<2x256xf32>
      %72 = arith.mulf %63, %51 : vector<2x256xf32>
      %73 = arith.mulf %57, %65 : vector<2x256xf32>
      %74 = arith.addf %72, %73 : vector<2x256xf32>
      %75 = math.tanh %74 : vector<2x256xf32>
      %76 = arith.mulf %71, %75 : vector<2x256xf32>
      %c0_33 = arith.constant 0 : index
      %c0_34 = arith.constant 0 : index
      %77 = vector.load %arg10[%c0_33, %c0_34] : memref<256x256xf32, #tpu.memory_space<vmem>>, vector<256x256xf32>
      %cst_35 = arith.constant dense<0.000000e+00> : vector<2x256xf32>
      %78 = tpu.matmul %76, %77, %cst_35 {dimension_numbers = #tpu.dot_dimension_numbers<[1], [0], [0], [1], [0, 0, 1, 1], [], []>} : vector<2x256xf32>, vector<256x256xf32>, vector<2x256xf32> -> vector<2x256xf32>
      %c0_36 = arith.constant 0 : index
      %c0_37 = arith.constant 0 : index
      %79 = vector.load %arg11[%c0_36, %c0_37] : memref<1x256xf32, #tpu.memory_space<vmem>>, vector<1x256xf32>
      %80 = vector.broadcast %79 : vector<1x256xf32> to vector<2x256xf32>
      %81 = arith.addf %78, %80 : vector<2x256xf32>
      %cst_38 = arith.constant 0.000000e+00 : f32
      %82 = vector.broadcast %cst_38 : f32 to vector<2x256xf32>
      %83 = arith.maximumf %81, %82 : vector<2x256xf32>
      %c0_39 = arith.constant 0 : index
      %c0_40 = arith.constant 0 : index
      %84 = vector.load %arg12[%c0_39, %c0_40] : memref<256x256xf32, #tpu.memory_space<vmem>>, vector<256x256xf32>
      %cst_41 = arith.constant dense<0.000000e+00> : vector<2x256xf32>
      %85 = tpu.matmul %83, %84, %cst_41 {dimension_numbers = #tpu.dot_dimension_numbers<[1], [0], [0], [1], [0, 0, 1, 1], [], []>} : vector<2x256xf32>, vector<256x256xf32>, vector<2x256xf32> -> vector<2x256xf32>
      %c0_42 = arith.constant 0 : index
      %c0_43 = arith.constant 0 : index
      %86 = vector.load %arg13[%c0_42, %c0_43] : memref<1x256xf32, #tpu.memory_space<vmem>>, vector<1x256xf32>
      %87 = vector.broadcast %86 : vector<1x256xf32> to vector<2x256xf32>
      %88 = arith.addf %85, %87 : vector<2x256xf32>
      %c0_44 = arith.constant 0 : index
      %c0_45 = arith.constant 0 : index
      %89 = vector.load %arg14[%c0_44, %c0_45] : memref<2x256xf32, #tpu.memory_space<vmem>>, vector<2x256xf32>
      tpu.vector_store %arg14[%c0_44, %c0_45], %88 {strides = array<i32>} : memref<2x256xf32, #tpu.memory_space<vmem>>, vector<2x256xf32>,
      %c0_46 = arith.constant 0 : index
      %c0_47 = arith.constant 0 : index
      %c0_48 = arith.constant 0 : index
      %90 = vector.load %arg15[%c0_46, %c0_47, %c0_48] : memref<2x2x256xf32, #tpu.memory_space<vmem>>, vector<1x2x256xf32>
      %91 = vector.shape_cast %90 : vector<1x2x256xf32> to vector<2x256xf32>
      %92 = vector.shape_cast %41 : vector<2x256xf32> to vector<1x2x256xf32>
      tpu.vector_store %arg15[%c0_46, %c0_47, %c0_48], %92 {strides = array<i32>} : memref<2x2x256xf32, #tpu.memory_space<vmem>>, vector<1x2x256xf32>,
      %c1 = arith.constant 1 : index
      %c0_49 = arith.constant 0 : index
      %c0_50 = arith.constant 0 : index
      %93 = vector.load %arg15[%c1, %c0_49, %c0_50] : memref<2x2x256xf32, #tpu.memory_space<vmem>>, vector<1x2x256xf32>
      %94 = vector.shape_cast %93 : vector<1x2x256xf32> to vector<2x256xf32>
      %95 = vector.shape_cast %76 : vector<2x256xf32> to vector<1x2x256xf32>
      tpu.vector_store %arg15[%c1, %c0_49, %c0_50], %95 {strides = array<i32>} : memref<2x2x256xf32, #tpu.memory_space<vmem>>, vector<1x2x256xf32>,
      %c0_51 = arith.constant 0 : index
      %c0_52 = arith.constant 0 : index
      %c0_53 = arith.constant 0 : index
      %96 = vector.load %arg16[%c0_51, %c0_52, %c0_53] : memref<2x2x256xf32, #tpu.memory_space<vmem>>, vector<1x2x256xf32>
      %97 = vector.shape_cast %96 : vector<1x2x256xf32> to vector<2x256xf32>
      %98 = vector.shape_cast %39 : vector<2x256xf32> to vector<1x2x256xf32>
      tpu.vector_store %arg16[%c0_51, %c0_52, %c0_53], %98 {strides = array<i32>} : memref<2x2x256xf32, #tpu.memory_space<vmem>>, vector<1x2x256xf32>,
      %c1_54 = arith.constant 1 : index
      %c0_55 = arith.constant 0 : index
      %c0_56 = arith.constant 0 : index
      %99 = vector.load %arg16[%c1_54, %c0_55, %c0_56] : memref<2x2x256xf32, #tpu.memory_space<vmem>>, vector<1x2x256xf32>
      %100 = vector.shape_cast %99 : vector<1x2x256xf32> to vector<2x256xf32>
      %101 = vector.shape_cast %74 : vector<2x256xf32> to vector<1x2x256xf32>
      tpu.vector_store %arg16[%c1_54, %c0_55, %c0_56], %101 {strides = array<i32>} : memref<2x2x256xf32, #tpu.memory_space<vmem>>, vector<1x2x256xf32>,
    } else {
    }
    return
  }
  func.func @transform_0(%arg0: i32) -> (i32, i32) {
    %c0_i32 = arith.constant 0 : i32
    %c0_i32_0 = arith.constant 0 : i32
    return %c0_i32, %arg0 : i32, i32
  }
  func.func @transform_1(%arg0: i32) -> (i32, i32) {
    %c0_i32 = arith.constant 0 : i32
    %c0_i32_0 = arith.constant 0 : i32
    return %arg0, %c0_i32 : i32, i32
  }
  func.func @transform_2(%arg0: i32) -> (i32, i32) {
    %c0_i32 = arith.constant 0 : i32
    %c0_i32_0 = arith.constant 0 : i32
    %c0_i32_1 = arith.constant 0 : i32
    return %c0_i32, %c0_i32_0 : i32, i32
  }
  func.func @transform_3(%arg0: i32) -> (i32, i32) {
    %c0_i32 = arith.constant 0 : i32
    %c0_i32_0 = arith.constant 0 : i32
    %c0_i32_1 = arith.constant 0 : i32
    return %c0_i32, %c0_i32_0 : i32, i32
  }
  func.func @transform_4(%arg0: i32) -> (i32, i32) {
    %c0_i32 = arith.constant 0 : i32
    %c0_i32_0 = arith.constant 0 : i32
    %c0_i32_1 = arith.constant 0 : i32
    return %c0_i32, %c0_i32_0 : i32, i32
  }
  func.func @transform_5(%arg0: i32) -> (i32, i32) {
    %c0_i32 = arith.constant 0 : i32
    %c0_i32_0 = arith.constant 0 : i32
    %c0_i32_1 = arith.constant 0 : i32
    return %c0_i32, %c0_i32_0 : i32, i32
  }
  func.func @transform_6(%arg0: i32) -> (i32, i32) {
    %c0_i32 = arith.constant 0 : i32
    %c0_i32_0 = arith.constant 0 : i32
    %c0_i32_1 = arith.constant 0 : i32
    return %c0_i32, %c0_i32_0 : i32, i32
  }
  func.func @transform_7(%arg0: i32) -> (i32, i32) {
    %c0_i32 = arith.constant 0 : i32
    %c0_i32_0 = arith.constant 0 : i32
    %c0_i32_1 = arith.constant 0 : i32
    return %c0_i32, %c0_i32_0 : i32, i32
  }
  func.func @transform_8(%arg0: i32) -> (i32, i32) {
    %c0_i32 = arith.constant 0 : i32
    %c0_i32_0 = arith.constant 0 : i32
    %c0_i32_1 = arith.constant 0 : i32
    return %c0_i32, %c0_i32_0 : i32, i32
  }
  func.func @transform_9(%arg0: i32) -> (i32, i32) {
    %c0_i32 = arith.constant 0 : i32
    %c0_i32_0 = arith.constant 0 : i32
    %c0_i32_1 = arith.constant 0 : i32
    return %c0_i32, %c0_i32_0 : i32, i32
  }
  func.func @transform_10(%arg0: i32) -> (i32, i32) {
    %c0_i32 = arith.constant 0 : i32
    %c0_i32_0 = arith.constant 0 : i32
    %c0_i32_1 = arith.constant 0 : i32
    return %c0_i32, %c0_i32_0 : i32, i32
  }
  func.func @transform_11(%arg0: i32) -> (i32, i32) {
    %c0_i32 = arith.constant 0 : i32
    %c0_i32_0 = arith.constant 0 : i32
    %c0_i32_1 = arith.constant 0 : i32
    return %c0_i32, %c0_i32_0 : i32, i32
  }
  func.func @transform_12(%arg0: i32) -> (i32, i32) {
    %c0_i32 = arith.constant 0 : i32
    %c0_i32_0 = arith.constant 0 : i32
    %c0_i32_1 = arith.constant 0 : i32
    return %c0_i32, %c0_i32_0 : i32, i32
  }
  func.func @transform_13(%arg0: i32) -> (i32, i32) {
    %c0_i32 = arith.constant 0 : i32
    %c0_i32_0 = arith.constant 0 : i32
    %c0_i32_1 = arith.constant 0 : i32
    return %c0_i32, %c0_i32_0 : i32, i32
  }
  func.func @transform_14(%arg0: i32) -> (i32, i32, i32) {
    %c0_i32 = arith.constant 0 : i32
    %c0_i32_0 = arith.constant 0 : i32
    %c0_i32_1 = arith.constant 0 : i32
    %c0_i32_2 = arith.constant 0 : i32
    return %c0_i32, %c0_i32_0, %c0_i32_1 : i32, i32, i32
  }
  func.func @transform_15(%arg0: i32) -> (i32, i32, i32) {
    %c0_i32 = arith.constant 0 : i32
    %c0_i32_0 = arith.constant 0 : i32
    %c0_i32_1 = arith.constant 0 : i32
    %c0_i32_2 = arith.constant 0 : i32
    return %c0_i32, %c0_i32_0, %c0_i32_1 : i32, i32, i32
  }
}

</mosaic_0001>

<bundles_post_ra>
// kernel: tpu_custom_call.1
= control target key start
LH: loop header
LB: loop body
LE: loop exit
PB: predicated region body
PF: predicated region fallthrough
CT: control target
= control target key end

     0   :  { %s6094_s0 = inlined_call_operand.hbm [shape: bf16[2,768], index: 0, kind: input, shape index: {}]   ;;  %s6095_s1 = inlined_call_operand.hbm [shape: bf16[768,1024], index: 1, kind: input, shape index: {}]   ;;  %s6096_s2 = inlined_call_operand.hbm [shape: f32[1,1024], index: 2, kind: input, shape index: {}]   ;;  %s6097_s3 = inlined_call_operand.hbm [shape: f32[2,256], index: 3, kind: input, shape index: {}]   ;;  %s6098_s4 = inlined_call_operand.hbm [shape: f32[2,256], index: 4, kind: input, shape index: {}]   ;;  %s6099_s5 = inlined_call_operand.hbm [shape: f32[2,256], index: 5, kind: input, shape index: {}]   ;;  %s6100_s6 = inlined_call_operand.hbm [shape: f32[256,1024], index: 6, kind: input, shape index: {}]   ;;  %s6101_s7 = inlined_call_operand.hbm [shape: f32[256,1024], index: 7, kind: input, shape index: {}]   ;;  %s6102_s8 = inlined_call_operand.hbm [shape: f32[1,1024], index: 8, kind: input, shape index: {}]   ;;  %s6103_s9 = inlined_call_operand.hbm [shape: f32[256,256], index: 9, kind: input, shape index: {}]   ;;  %s6104_s10 = inlined_call_operand.hbm [shape: f32[1,256], index: 10, kind: input, shape index: {}]   ;;  %s6105_s11 = inlined_call_operand.hbm [shape: f32[256,256], index: 11, kind: input, shape index: {}]   ;;  %s6106_s12 = inlined_call_operand.hbm [shape: f32[1,256], index: 12, kind: input, shape index: {}]   ;;  %s6107_s13 = inlined_call_operand.hbm [shape: f32[2,256], index: 13, kind: output, shape index: {0}]   ;;  %s6108_s14 = inlined_call_operand.hbm [shape: f32[2,2,256], index: 14, kind: output, shape index: {1}]   ;;  %s6109_s15 = inlined_call_operand.hbm [shape: f32[2,2,256], index: 15, kind: output, shape index: {2}]  }
   0x1   :  { %6112 = sst [smem:[#allocation39_spill]] %s6096_s2 }
   0x2   :  { %6113 = sst [smem:[#allocation40_spill]] %s6097_s3 }
   0x3   :  { %6114 = sst [smem:[#allocation41_spill]] %s6098_s4 }
   0x4   :  { %6115 = sst [smem:[#allocation42_spill]] %s6099_s5 }
   0x5   :  { %6116 = sst [smem:[#allocation43_spill]] %s6100_s6 }
   0x6   :  { %6117 = sst [smem:[#allocation44_spill]] %s6101_s7 }
   0x7   :  { %6118 = sst [smem:[#allocation45_spill]] %s6102_s8 }
   0x8   :  { %6119 = sst [smem:[#allocation46_spill]] %s6107_s13 }
   0x9   :  { %6120 = sst [smem:[#allocation47_spill]] %s6108_s14 }
   0xa   :  { %6121 = sst [smem:[#allocation48_spill]] %s6109_s15 }
   0xb   :  { %21 = vsyncpa [#allocation4], 0 }
   0xc   :  { %23 = vsyncpa [#allocation4 + $0x1], 0 }
   0xd   :  { %24 = vsyncpa [#allocation7], 0 }
   0xe   :  { %26 = vsyncpa [#allocation7 + $0x1], 0 }
   0xf   :  { %27 = vsyncpa [#allocation10], 0 }
  0x10   :  { %28 = vsyncpa [#allocation13], 0 }
  0x11   :  { %29 = vsyncpa [#allocation16], 0 }
  0x12   :  { %30 = vsyncpa [#allocation19], 0 }
  0x13   :  { %31 = vsyncpa [#allocation22], 0 }
  0x14   :  { %32 = vsyncpa [#allocation5], 0 }
  0x15   :  { %33 = vsyncpa [#allocation26], 0  ;;  %s5292_s18 = smov 0   ;;  %s5294_s19 = smov 0  }
  0x16   :  { %s5296_s20 = smov 0   ;;  %s5298_s21 = smov 0  }
  0x17 LB: > { %s6122_s2 = sld [smem:[#allocation39_spill]]  ;;  %s5316_s25 = sadd.s32 4294967295, %s5187_s21   ;;  %s5187_s21 = sphi %s5298_s21, %s6160_s21   ;;  %s5183_s20 = sphi %s5296_s20, %s6159_s20   ;;  %s5179_s19 = sphi %s5294_s19, %s6158_s19   ;;  %s5175_s18 = sphi %s5292_s18, %s6157_s18  }
  0x18   : > { %p3716_p0 = scmp.ge.s32.totalorder %s5187_s21, 1  ;;  %p60_p1 = scmp.eq.s32.totalorder %s5316_s25, 0 }
  0x19   : > { %p390_p2 = scmp.lt.s32.totalorder %s5187_s21, 4  ;;  %p3717_p3 = scmp.ne.s32.totalorder %s5316_s25, 0 }
  0x1a   : > { %s5189_s27 = smov [#allocation8]   ;;  %s6125_s3 = sld [smem:[#allocation40_spill]] }
  0x1b   : > { %p5322_p4 = pnand %p3716_p0, %p390_p2  ;;  %s404_s28 = sshll.u32 %s5189_s27, 4  ;;  %s405_s28 = int_to_ptr.vmem [resolvable:$true] %s404_s28 }
  0x1c   : > { %s5190_s22 = smov [#allocation9]   ;;  %s6127_s5 = sld [smem:[#allocation42_spill]] }
  0x1d   : > { %s402_s24 = sshll.u32 %s6122_s2, 4  ;;  %p4470_p5 = pneg %p5322_p4  ;;  %s403_s24 = int_to_ptr.hbm [resolvable:$true] %s402_s24 }
  0x1e   : > { %s6123_s26 = scalar_select %p5322_p4, 1, 0 }
  0x1f   : > { %p5333_p6 = pnand %p4470_p5, %p60_p1  ;;  %s416_s23 = sshll.u32 %s5190_s22, 4  ;;  %s417_s23 = int_to_ptr.vmem [resolvable:$true] %s416_s23 }
  0x20   : > { %6124 = sst [smem:[#allocation38_spill]] %s6123_s26  ;;  %s414_s16 = sshll.u32 %s6125_s3, 4  ;;  %s415_s16 = int_to_ptr.hbm [resolvable:$true] %s414_s16 }
  0x21   : > { %4473 = dma.hbm_to_vmem [thread:$0]  (!%p5333_p6), %s403_s24, 128, %s405_s28, [#allocation7]  }
  0x22   : > { %s438_s15 = sshll.u32 %s6127_s5, 4  ;;  %s5191_s29 = smov [#allocation12]   ;;  %s439_s15 = int_to_ptr.hbm [resolvable:$true] %s438_s15 }
  0x23   : > { %4476 = dma.hbm_to_vmem [thread:$0]  (!%p5333_p6), %s415_s16, 64, %s417_s23, [#allocation10]  }
  0x24   : > { %s440_s30 = sshll.u32 %s5191_s29, 4  ;;  %s6128_s7 = sld [smem:[#allocation44_spill]]  ;;  %s441_s30 = int_to_ptr.vmem [resolvable:$true] %s440_s30 }
  0x25   : > { %4482 = dma.hbm_to_vmem [thread:$0]  (!%p5333_p6), %s439_s15, 64, %s441_s30, [#allocation13]  }
  0x26   : > { %s5192_s22 = smov [#allocation15]   ;;  %s489_s26 = sshll.u32 %s6103_s9, 4  ;;  %s490_s26 = int_to_ptr.hbm [resolvable:$true] %s489_s26 }
  0x27   : > { %s465_s2 = sshll.u32 %s5192_s22, 4  ;;  %s6111_s24 = smov 1024   ;;  %s466_s2 = int_to_ptr.vmem [resolvable:$true] %s465_s2 }
  0x28   : > { %s5194_s28 = smov 64   ;;  %s5195_s3 = smov [#allocation18]  }
  0x29   : > { %s491_s13 = sshll.u32 %s5195_s3, 4  ;;  %s515_s23 = sshll.u32 %s6105_s11, 4  ;;  %s492_s13 = int_to_ptr.vmem [resolvable:$true] %s491_s13  ;;  %s516_s23 = int_to_ptr.hbm [resolvable:$true] %s515_s23 }
  0x2a   : > { %s463_s14 = sshll.u32 %s6128_s7, 4  ;;  %s5196_s5 = smov 256   ;;  %s464_s14 = int_to_ptr.hbm [resolvable:$true] %s463_s14 }
  0x2b   : > { %4488 = dma.hbm_to_vmem [thread:$0]  (!%p5333_p6), %s464_s14, 32768, %s466_s2, [#allocation16], %s6111_s24, %s6111_s24, %s5194_s28  }
  0x2c   : > { %s5197_s29 = smov 16   ;;  %s5198_s30 = smov [#allocation21]  }
  0x2d   : > { %4494 = dma.hbm_to_vmem [thread:$0]  (!%p5333_p6), %s490_s26, 8192, %s492_s13, [#allocation19], %s5196_s5, %s5196_s5, %s5197_s29  }
  0x2e   : > { %s517_s22 = sshll.u32 %s5198_s30, 4  ;;  %s6129_s4 = sld [smem:[#allocation41_spill]]  ;;  %s518_s22 = int_to_ptr.vmem [resolvable:$true] %s517_s22 }
  0x2f   : > { %4500 = dma.hbm_to_vmem [thread:$0]  (!%p5333_p6), %s516_s23, 8192, %s518_s22, [#allocation22], %s5196_s5, %s5196_s5, %s5197_s29  }
  0x30   : > { %s6130_s6 = sld [smem:[#allocation43_spill]]  ;;  %s5199_s16 = smov [#allocation11]  }
  0x31   : > { %s428_s24 = sshll.u32 %s5199_s16, 4  ;;  %s5200_s26 = smov [#allocation14]   ;;  %s429_s24 = int_to_ptr.vmem [resolvable:$true] %s428_s24 }
  0x32   : > { %s451_s13 = sshll.u32 %s5200_s26, 4  ;;  %s6131_s8 = sld [smem:[#allocation45_spill]]  ;;  %s452_s13 = int_to_ptr.vmem [resolvable:$true] %s451_s13 }
  0x33   : > { %s6132_s23 = smov 1024   ;;  %s504_s22 = sshll.u32 %s6104_s10, 4  ;;  %s505_s22 = int_to_ptr.hbm [resolvable:$true] %s504_s22 }
  0x34   : > { %s426_s14 = sshll.u32 %s6129_s4, 4  ;;  %s5202_s2 = smov [#allocation20]   ;;  %s427_s14 = int_to_ptr.hbm [resolvable:$true] %s426_s14 }
  0x35   : > { %4479 = dma.hbm_to_vmem [thread:$0]  (!%p5333_p6), %s427_s14, 64, %s429_s24, [#allocation10]  }
  0x36   : > { %s449_s15 = sshll.u32 %s6130_s6, 4  ;;  %s5201_s24 = smov [#allocation17]   ;;  %s450_s15 = int_to_ptr.hbm [resolvable:$true] %s449_s15 }
  0x37   : > { %4485 = dma.hbm_to_vmem [thread:$0]  (!%p5333_p6), %s450_s15, 32768, %s452_s13, [#allocation13], %s6132_s23, %s6132_s23, %s5194_s28  }
  0x38   : > { %s478_s27 = sshll.u32 %s6131_s8, 4  ;;  %s480_s14 = sshll.u32 %s5201_s24, 4  ;;  %s479_s27 = int_to_ptr.hbm [resolvable:$true] %s478_s27  ;;  %s481_s14 = int_to_ptr.vmem [resolvable:$true] %s480_s14 }
  0x39   : > { %4491 = dma.hbm_to_vmem [thread:$0]  (!%p5333_p6), %s479_s27, 128, %s481_s14, [#allocation16]  }
  0x3a   : > { %s506_s28 = sshll.u32 %s5202_s2, 4  ;;  %s530_s16 = sshll.u32 %s6106_s12, 4  ;;  %s507_s28 = int_to_ptr.vmem [resolvable:$true] %s506_s28  ;;  %s531_s16 = int_to_ptr.hbm [resolvable:$true] %s530_s16 }
  0x3b   : > { %4497 = dma.hbm_to_vmem [thread:$0]  (!%p5333_p6), %s505_s22, 32, %s507_s28, [#allocation19]  }
  0x3c   : > { %s5203_s26 = smov [#allocation23]   ;;  %s5393_s7 = sadd.s32 1, %s5187_s21  }
  0x3d   : > { %s532_s13 = sshll.u32 %s5203_s26, 4  ;;  %s43_s30 = ssub.s32 %s5187_s21, %s5393_s7  ;;  %s533_s13 = int_to_ptr.vmem [resolvable:$true] %s532_s13 }
  0x3e   : > { %4503 = dma.hbm_to_vmem [thread:$0]  (!%p5333_p6), %s531_s16, 32, %s533_s13, [#allocation22]  }
  0x3f   : > { %s46_s27 = sadd.s32 1, %s5183_s20  ;;  %p44_p7 = scmp.eq.s32.totalorder %s43_s30, 0 }
  0x40   : > { %p53_p8 = scmp.ne.s32.totalorder %s5183_s20, %s5179_s19  ;;  %p54_p9 = scmp.eq.s32.totalorder %s5187_s21, 0 }
  0x41   : > { %p59_p10 = scmp.ne.s32.totalorder %s5179_s19, %s5175_s18  ;;  %p4522_p13 = scmp.lt.s32.totalorder %s5187_s21, 3 }
  0x42   : > { %s5404_s23 = scalar_select %p44_p7, %s5183_s20, %s46_s27  }
  0x43   : > { %p55_p11 = por %p54_p9, %p53_p8  ;;  %p5408_p12 = por %p60_p1, %p59_p10 }
  0x44   : > { %s543_s17 = sand.u32 1, %s5183_s20   ;;  %s3730_s22 = sshll.u32 %s5187_s21, 1 }
  0x45   : > { %s3729_s29 = sshll.u32 %s543_s17, 1  ;;  %s551_s2 = scalar_lea.hbm %s6094_s0, %s3730_s22 }
  0x46   : > { %s547_s28 = scalar_lea.vmem [#allocation3], %s3729_s29  ;;  %s553_s18 = sshll.u32 %s551_s2, 4  ;;  %s554_s18 = int_to_ptr.hbm [resolvable:$true] %s553_s18 }
  0x47   : > { %s555_s3 = sshll.u32 %s547_s28, 4  ;;  %p5418_p0 = pnand %p4522_p13, %p55_p11  ;;  %s556_s3 = int_to_ptr.vmem [resolvable:$true] %s555_s3 }
  0x48   : > { %s3731_s16 = sshll.u32 %s543_s17, 10  ;;  %s562_s26 = sand.u32 1, %s5187_s21  }
  0x49   : > { %s544_s13 = scalar_lea.sflag [#allocation4], %s543_s17  ;;  %s4973_s30 = sshra.s32 %s554_s18, 4  ;;  %s4974_s30 = int_to_ptr.hbm [resolvable:$true] %s4973_s30 }
  0x4a   : > { %s4975_s27 = scalar_lea.hbm %s4974_s30, 2  ;;  %p4977_p5 = pneg %p5418_p0 }
  0x4b   : > { %p4976_p2 = scmp.ne.s32.totalorder %s4974_s30, %s4975_s27  ;;  %s4980_s24 = scalar_lea.hbm %s6094_s0, 6 }
  0x4c   : > { %p4981_p8 = scmp.lt.s32.totalorder %s4974_s30, %s6094_s0  ;;  %p4982_p9 = scmp.lt.s32.totalorder %s4980_s24, %s4975_s27 }
  0x4d   : > { %p4978_p6 = pnand %p4977_p5, %p4976_p2 }
  0x4e   : > { %p4983_p10 = por %p4982_p9, %p4981_p8 }
  0x4f   : > { %p4979_p7 = pneg %p4978_p6 }
  0x51   : > { %p4984_p11 = pnand %p4983_p10, %p4979_p7 }
  0x53   : > { %4987 = shalt.err (!%p4984_p11)
}
  0x54   : > { %4507 = dma.hbm_to_vmem [thread:$0]  (!%p5418_p0), %s554_s18, 32, %s556_s3, %s544_s13  }
  0x55   : > { %s566_s17 = scalar_lea.vmem [#allocation6], %s3731_s16  ;;  %s4281_s4 = sshll.u32 %s5187_s21, 10 }
  0x56   : > { %s575_s28 = sshll.u32 %s566_s17, 4  ;;  %s572_s22 = scalar_lea.hbm %s6095_s1, %s4281_s4  ;;  %s576_s28 = int_to_ptr.vmem [resolvable:$true] %s575_s28 }
  0x57   : > { %s573_s8 = sshll.u32 %s572_s22, 4  ;;  %s563_s30 = scalar_lea.sflag [#allocation7], %s562_s26  ;;  %s574_s8 = int_to_ptr.hbm [resolvable:$true] %s573_s8 }
  0x58   : > { %s5003_s27 = sshra.s32 %s574_s8, 4  ;;  %s5010_s16 = scalar_lea.hbm %s6095_s1, 3072  ;;  %s5004_s27 = int_to_ptr.hbm [resolvable:$true] %s5003_s27 }
  0x59   : > { %s5005_s24 = scalar_lea.hbm %s5004_s27, 1024  ;;  %p5011_p7 = scmp.lt.s32.totalorder %s5004_s27, %s6095_s1 }
  0x5a   : > { %p5006_p13 = scmp.ne.s32.totalorder %s5004_s27, %s5005_s24  ;;  %p5012_p8 = scmp.lt.s32.totalorder %s5010_s16, %s5005_s24 }
  0x5c   : > { %p5008_p2 = pnand %p5006_p13, %p4977_p5  ;;  %p5013_p9 = por %p5012_p8, %p5011_p7 }
  0x5e   : > { %p5009_p6 = pneg %p5008_p2 }
  0x60   : > { %p5014_p10 = pnand %p5013_p9, %p5009_p6 }
  0x62   : > { %5017 = shalt.err (!%p5014_p10)
}
  0x63   : > { %s5204_s4 = smov 512   ;;  %s5205_s6 = smov 32  }
  0x64   : > { %4510 = dma.hbm_to_vmem [thread:$0]  (!%p5418_p0), %s574_s8, 16384, %s576_s28, %s563_s30, %s5204_s4, %s5204_s4, %s5205_s6  }
  0x65   : > { %587 = sbr.rel (%p5322_p4) target bundleno = 1134 (0x46e), region = 72  ;;  %s589_s14 = sand.u32 (!%p5322_p4), 1, %s5179_s19  }
  0x66   : > { %s3736_s2 = sshll.u32 (!%p5322_p4), %s589_s14, 1  ;;  %s590_s17 = scalar_lea.sflag (!%p5322_p4), [#allocation4], %s589_s14 }
  0x67   : > { %s5454_s29 = scalar_lea.vmem (!%p5322_p4), [#allocation3], %s3736_s2 }
  0x6a   : > { %5134 = dma.done.wait (%p5408_p12), %s590_s17, 32  }
  0x6b   : > { %5136 = vsyncadd (%p5408_p12), %s590_s17, 4294967264  ;;  %s599_s22 = sand.u32 1, %s5316_s25   ;;  %s3737_s15 = sshll.u32 %s589_s14, 10 }
  0x6c   : > { %s600_s8 = scalar_lea.sflag [#allocation7], %s599_s22  ;;  %s5461_s28 = scalar_lea.vmem [#allocation6], %s3737_s15 }
  0x6d   : > { %5138 = dma.done.wait (%p5408_p12), %s600_s8, 16384  }
  0x6e   : > { %5140 = vsyncadd (%p5408_p12), %s600_s8, 4294950912 }
  0x6f   : > { %5142 = dma.done.wait (%p60_p1), [#allocation7], 128  }
  0x70   : > { %5144 = vsyncadd (%p60_p1), [#allocation7], 4294967168 }
  0x71   : > { %5146 = dma.done.wait (%p60_p1), [#allocation10], 128  }
  0x72   : > { %5148 = vsyncadd (%p60_p1), [#allocation10], 4294967168 }
  0x73   : > { %5150 = dma.done.wait (%p60_p1), [#allocation13], 32832  }
  0x74   : > { %5152 = vsyncadd (%p60_p1), [#allocation13], 4294934464 }
  0x75   : > { %5154 = dma.done.wait (%p60_p1), [#allocation16], 32896  }
  0x76   : > { %5156 = vsyncadd (%p60_p1), [#allocation16], 4294934400 }
  0x77   : > { %5158 = dma.done.wait (%p60_p1), [#allocation19], 8224  }
  0x78   : > { %5160 = vsyncadd (%p60_p1), [#allocation19], 4294959072 }
  0x79   : > { %5162 = dma.done.wait (%p60_p1), [#allocation22], 8224  }
  0x7a   : > { %5164 = vsyncadd (%p60_p1), [#allocation22], 4294959072  ;;  %711 = sbr.rel (%p3717_p3) target bundleno = 130 (0x82), region = 128 }
  0x7f   : > { %v5206_v0 = vmov 0.0  }
  0x80   : > { %712 = vst [vmem:[#allocation2] sm:$0xff] %v5206_v0 }
  0x81   : > { %713 = vst [vmem:[#allocation2 + $0x8] sm:$0xff] %v5206_v0 }
  0x82 PF: > { %v3976_v1 = vld [vmem:[%s5461_s28 + $0x1c0] sm:$0xf]  ;;  %v4338_v6 = vld [vmem:[%s5461_s28 + $0x1c4] sm:$0xf]  ;;  %vm1713_vm0 = vcmask 1041408   ;;  %vm1715_vm1 = vcmask 1045508  }
  0x83   : > { %v4342_v2 = vld [vmem:[%s5461_s28 + $0x1dc] sm:$0xf0]  ;;  %v3978_v7 = vld [vmem:[%s5461_s28 + $0x1e0] sm:$0xf0]  ;;  %vm1717_vm2 = vcmask 1043456   ;;  %p4262_p1 = scmp.ne.s32.totalorder %s5316_s25, 2 }
  0x84   : > { %v4232_v3 = vld [vmem:[%s5461_s28 + $0x3c0] sm:$0xf]  ;;  %v3977_v4 = vor.u32 %v4342_v2, %v3976_v1  ;;  %v3981_v9 = vor.u32 %v4338_v6, %v3978_v7  ;;  %v4402_v10 = vld [vmem:[%s5461_s28 + $0x3c4] sm:$0xf] }
  0x85   : > { %v4406_v5 = vld [vmem:[%s5461_s28 + $0x3dc] sm:$0xf0]  ;;  %v4234_v11 = vld [vmem:[%s5461_s28 + $0x3e0] sm:$0xf0] }
  0x86   : > { %v4233_v8 = vor.u32 %v4406_v5, %v4232_v3  ;;  %v3944_v12 = vld [vmem:[%s5461_s28 + $0x180] sm:$0xf]  ;;  %1491 = vmatpush.bf16.msra.mxu0 %v3977_v4  ;;  %v4237_v13 = vor.u32 %v4402_v10, %v4234_v11  ;;  %1517 = vmatpush.bf16.msra.mxu2 %v3981_v9  ;;  %v4330_v19 = vld [vmem:[%s5461_s28 + $0x184] sm:$0xf] }
  0x87   : > { %v4334_v14 = vld [vmem:[%s5461_s28 + $0x19c] sm:$0xf0]  ;;  %v3946_v20 = vld [vmem:[%s5461_s28 + $0x1a0] sm:$0xf0] }
  0x88   : > { %v4200_v15 = vld [vmem:[%s5461_s28 + $0x380] sm:$0xf]  ;;  %1504 = vmatpush.bf16.msra.mxu1 %v4233_v8  ;;  %v3945_v17 = vor.u32 %v4334_v14, %v3944_v12  ;;  %v4394_v21 = vld [vmem:[%s5461_s28 + $0x384] sm:$0xf]  ;;  %1530 = vmatpush.bf16.msra.mxu3 %v4237_v13  ;;  %v3949_v22 = vor.u32 %v4330_v19, %v3946_v20 }
  0x89   : > { %v4398_v16 = vld [vmem:[%s5461_s28 + $0x39c] sm:$0xf0]  ;;  %v4202_v23 = vld [vmem:[%s5461_s28 + $0x3a0] sm:$0xf0] }
  0x8a   : > { %v4201_v18 = vor.u32 %v4398_v16, %v4200_v15  ;;  %v3912_v24 = vld [vmem:[%s5461_s28 + $0x140] sm:$0xf]  ;;  %v4205_v26 = vor.u32 %v4394_v21, %v4202_v23  ;;  %v4322_v29 = vld [vmem:[%s5461_s28 + $0x144] sm:$0xf]  ;;  %1492 = vmatpush.bf16.msra.mxu0 %v3945_v17  ;;  %1518 = vmatpush.bf16.msra.mxu2 %v3949_v22 }
  0x8b   : > { %v4326_v25 = vld [vmem:[%s5461_s28 + $0x15c] sm:$0xf0]  ;;  %v3914_v31 = vld [vmem:[%s5461_s28 + $0x160] sm:$0xf0] }
  0x8c   : > { %v4168_v27 = vld [vmem:[%s5461_s28 + $0x340] sm:$0xf]  ;;  %v3913_v30 = vor.u32 %v4326_v25, %v3912_v24  ;;  %v4386_v32 = vld [vmem:[%s5461_s28 + $0x344] sm:$0xf]  ;;  %1505 = vmatpush.bf16.msra.mxu1 %v4201_v18  ;;  %v3917_v35 = vor.u32 %v4322_v29, %v3914_v31  ;;  %1531 = vmatpush.bf16.msra.mxu3 %v4205_v26  ;;  %v3984_v29 = vld [vmem:[%s5461_s28 + $0x1c8] sm:$0xf] }
  0x8d   : > { %v4390_v28 = vld [vmem:[%s5461_s28 + $0x35c] sm:$0xf0]  ;;  %v4170_v33 = vld [vmem:[%s5461_s28 + $0x360] sm:$0xf0]  ;;  %v4240_v31 = vld [vmem:[%s5461_s28 + $0x3c8] sm:$0xf] }
  0x8e   : > { %v4169_v34 = vor.u32 %v4390_v28, %v4168_v27  ;;  %v3880_v36 = vld [vmem:[%s5461_s28 + $0x100] sm:$0xf]  ;;  %v4173_v39 = vor.u32 %v4386_v32, %v4170_v33  ;;  %v4314_v41 = vld [vmem:[%s5461_s28 + $0x104] sm:$0xf]  ;;  %1493 = vmatpush.bf16.msra.mxu0 %v3913_v30  ;;  %1519 = vmatpush.bf16.msra.mxu2 %v3917_v35  ;;  %v4343_v30 = vld [vmem:[%s5461_s28 + $0x1e4] sm:$0xf0] }
  0x8f   : > { %v4318_v37 = vld [vmem:[%s5461_s28 + $0x11c] sm:$0xf0]  ;;  %v3882_v42 = vld [vmem:[%s5461_s28 + $0x120] sm:$0xf0]  ;;  %v4407_v33 = vld [vmem:[%s5461_s28 + $0x3e4] sm:$0xf0] }
  0x90   : > { %v4136_v38 = vld [vmem:[%s5461_s28 + $0x300] sm:$0xf]  ;;  %v4378_v43 = vld [vmem:[%s5461_s28 + $0x304] sm:$0xf]  ;;  %v3881_v45 = vor.u32 %v4318_v37, %v3880_v36  ;;  %1506 = vmatpush.bf16.msra.mxu1 %v4169_v34  ;;  %v3885_v47 = vor.u32 %v4314_v41, %v3882_v42  ;;  %1532 = vmatpush.bf16.msra.mxu3 %v4173_v39  ;;  %v4339_v34 = vld [vmem:[%s5461_s28 + $0x1cc] sm:$0xf]  ;;  %v3985_v41 = vor.u32 %v4343_v30, %v3984_v29 }
  0x91   : > { %v4382_v40 = vld [vmem:[%s5461_s28 + $0x31c] sm:$0xf0]  ;;  %v4138_v44 = vld [vmem:[%s5461_s28 + $0x320] sm:$0xf0]  ;;  %v3986_v35 = vld [vmem:[%s5461_s28 + $0x1e8] sm:$0xf0]  ;;  %v4241_v42 = vor.u32 %v4407_v33, %v4240_v31 }
  0x92   : > { %v4137_v46 = vor.u32 %v4382_v40, %v4136_v38  ;;  %v3848_v48 = vld [vmem:[%s5461_s28 + $0xc0] sm:$0xf]  ;;  %v4141_v51 = vor.u32 %v4378_v43, %v4138_v44  ;;  %v4306_v53 = vld [vmem:[%s5461_s28 + $0xc4] sm:$0xf]  ;;  %1494 = vmatpush.bf16.msra.mxu0 %v3881_v45  ;;  %1520 = vmatpush.bf16.msra.mxu2 %v3885_v47  ;;  %v4403_v38 = vld [vmem:[%s5461_s28 + $0x3cc] sm:$0xf]  ;;  %v3989_v43 = vor.u32 %v4339_v34, %v3986_v35 }
  0x93   : > { %v4310_v49 = vld [vmem:[%s5461_s28 + $0xdc] sm:$0xf0]  ;;  %v3850_v54 = vld [vmem:[%s5461_s28 + $0xe0] sm:$0xf0]  ;;  %v4242_v39 = vld [vmem:[%s5461_s28 + $0x3e8] sm:$0xf0] }
  0x94   : > { %v4104_v50 = vld [vmem:[%s5461_s28 + $0x2c0] sm:$0xf]  ;;  %v4370_v55 = vld [vmem:[%s5461_s28 + $0x2c4] sm:$0xf]  ;;  %v3849_v57 = vor.u32 %v4310_v49, %v3848_v48  ;;  %1507 = vmatpush.bf16.msra.mxu1 %v4137_v46  ;;  %v3853_v59 = vor.u32 %v4306_v53, %v3850_v54  ;;  %1533 = vmatpush.bf16.msra.mxu3 %v4141_v51  ;;  %v3952_v44 = vld [vmem:[%s5461_s28 + $0x188] sm:$0xf]  ;;  %v4245_v47 = vor.u32 %v4403_v38, %v4242_v39 }
  0x95   : > { %v4374_v52 = vld [vmem:[%s5461_s28 + $0x2dc] sm:$0xf0]  ;;  %v4106_v56 = vld [vmem:[%s5461_s28 + $0x2e0] sm:$0xf0]  ;;  %v4335_v45 = vld [vmem:[%s5461_s28 + $0x1a4] sm:$0xf0] }
  0x96   : > { %v4105_v58 = vor.u32 %v4374_v52, %v4104_v50  ;;  %v3816_v60 = vld [vmem:[%s5461_s28 + $0x80] sm:$0xf]  ;;  %v4109_v63 = vor.u32 %v4370_v55, %v4106_v56  ;;  %v4298_v1 = vld [vmem:[%s5461_s28 + $0x84] sm:$0xf]  ;;  %1495 = vmatpush.bf16.msra.mxu0 %v3849_v57  ;;  %1521 = vmatpush.bf16.msra.mxu2 %v3853_v59  ;;  %v4208_v46 = vld [vmem:[%s5461_s28 + $0x388] sm:$0xf]  ;;  %v3953_v54 = vor.u32 %v4335_v45, %v3952_v44 }
  0x97   : > { %v4302_v61 = vld [vmem:[%s5461_s28 + $0x9c] sm:$0xf0]  ;;  %v3818_v2 = vld [vmem:[%s5461_s28 + $0xa0] sm:$0xf0]  ;;  %v4399_v48 = vld [vmem:[%s5461_s28 + $0x3a4] sm:$0xf0] }
  0x98   : > { %v4072_v62 = vld [vmem:[%s5461_s28 + $0x280] sm:$0xf]  ;;  %v4362_v3 = vld [vmem:[%s5461_s28 + $0x284] sm:$0xf]  ;;  %v3817_v5 = vor.u32 %v4302_v61, %v3816_v60  ;;  %1508 = vmatpush.bf16.msra.mxu1 %v4105_v58  ;;  %v3821_v7 = vor.u32 %v4298_v1, %v3818_v2  ;;  %1534 = vmatpush.bf16.msra.mxu3 %v4109_v63  ;;  %v4331_v49 = vld [vmem:[%s5461_s28 + $0x18c] sm:$0xf]  ;;  %v4209_v55 = vor.u32 %v4399_v48, %v4208_v46 }
  0x99   : > { %v4366_v0 = vld [vmem:[%s5461_s28 + $0x29c] sm:$0xf0]  ;;  %v4074_v4 = vld [vmem:[%s5461_s28 + $0x2a0] sm:$0xf0]  ;;  %v3954_v50 = vld [vmem:[%s5461_s28 + $0x1a8] sm:$0xf0] }
  0x9a   : > { %v4073_v6 = vor.u32 %v4366_v0, %v4072_v62  ;;  %v3784_v8 = vld [vmem:[%s5461_s28 + $0x40] sm:$0xf]  ;;  %v4077_v11 = vor.u32 %v4362_v3, %v4074_v4  ;;  %v4290_v13 = vld [vmem:[%s5461_s28 + $0x44] sm:$0xf]  ;;  %1496 = vmatpush.bf16.msra.mxu0 %v3817_v5  ;;  %1522 = vmatpush.bf16.msra.mxu2 %v3821_v7  ;;  %v4395_v51 = vld [vmem:[%s5461_s28 + $0x38c] sm:$0xf]  ;;  %v3957_v56 = vor.u32 %v4331_v49, %v3954_v50 }
  0x9b   : > { %v4294_v9 = vld [vmem:[%s5461_s28 + $0x5c] sm:$0xf0]  ;;  %v3786_v14 = vld [vmem:[%s5461_s28 + $0x60] sm:$0xf0]  ;;  %v4210_v52 = vld [vmem:[%s5461_s28 + $0x3a8] sm:$0xf0] }
  0x9c   : > { %v4040_v10 = vld [vmem:[%s5461_s28 + $0x240] sm:$0xf]  ;;  %v4354_v15 = vld [vmem:[%s5461_s28 + $0x244] sm:$0xf]  ;;  %v3785_v17 = vor.u32 %v4294_v9, %v3784_v8  ;;  %1509 = vmatpush.bf16.msra.mxu1 %v4073_v6  ;;  %v3789_v21 = vor.u32 %v4290_v13, %v3786_v14  ;;  %1535 = vmatpush.bf16.msra.mxu3 %v4077_v11  ;;  %v716_v53 = vld [vmem:[%s5454_s29] sm:$0x3]  ;;  %v4213_v60 = vor.u32 %v4395_v51, %v4210_v52 }
  0x9d   : > { %v4358_v12 = vld [vmem:[%s5461_s28 + $0x25c] sm:$0xf0]  ;;  %v4042_v16 = vld [vmem:[%s5461_s28 + $0x260] sm:$0xf0]  ;;  %846 = vst [vmem:[#allocation1] ss:$9 sm:$0xff] %v716_v53 }
  0x9e   : > { %v3752_v18 = vld [vmem:[%s5461_s28] sm:$0xf]  ;;  %v4041_v20 = vor.u32 %v4358_v12, %v4040_v10  ;;  %v4282_v24 = vld [vmem:[%s5461_s28 + $0x4] sm:$0xf]  ;;  %v4045_v25 = vor.u32 %v4354_v15, %v4042_v16  ;;  %1497 = vmatpush.bf16.msra.mxu0 %v3785_v17  ;;  %1523 = vmatpush.bf16.msra.mxu2 %v3789_v21  ;;  %v3920_v57 = vld [vmem:[%s5461_s28 + $0x148] sm:$0xf] }
  0x9f   : > { %v4286_v19 = vld [vmem:[%s5461_s28 + $0x1c] sm:$0xf0]  ;;  %v3754_v26 = vld [vmem:[%s5461_s28 + $0x20] sm:$0xf0]  ;;  %v4327_v58 = vld [vmem:[%s5461_s28 + $0x164] sm:$0xf0] }
  0xa0   : > { %v4008_v22 = vld [vmem:[%s5461_s28 + $0x200] sm:$0xf]  ;;  %v4346_v27 = vld [vmem:[%s5461_s28 + $0x204] sm:$0xf]  ;;  %v3753_v32 = vor.u32 %v4286_v19, %v3752_v18  ;;  %1510 = vmatpush.bf16.msra.mxu1 %v4041_v20  ;;  %v3757_v37 = vor.u32 %v4282_v24, %v3754_v26  ;;  %1536 = vmatpush.bf16.msra.mxu3 %v4045_v25  ;;  %v4176_v59 = vld [vmem:[%s5461_s28 + $0x348] sm:$0xf]  ;;  %v3921_v2 = vor.u32 %v4327_v58, %v3920_v57 }
  0xa1   : > { %v4350_v23 = vld [vmem:[%s5461_s28 + $0x21c] sm:$0xf0]  ;;  %v4010_v28 = vld [vmem:[%s5461_s28 + $0x220] sm:$0xf0]  ;;  %v4391_v61 = vld [vmem:[%s5461_s28 + $0x364] sm:$0xf0] }
  0xa2   : > { %v4009_v36 = vor.u32 %v4350_v23, %v4008_v22  ;;  %v4013_v40 = vor.u32 %v4346_v27, %v4010_v28  ;;  %1498 = vmatpush.bf16.msra.mxu0 %v3753_v32  ;;  %1524 = vmatpush.bf16.msra.mxu2 %v3757_v37  ;;  %v4323_v62 = vld [vmem:[%s5461_s28 + $0x14c] sm:$0xf]  ;;  %v4177_v3 = vor.u32 %v4391_v61, %v4176_v59  ;;  %v3888_v5 = vld [vmem:[%s5461_s28 + $0x108] sm:$0xf] }
  0xa3   : > { %v3922_v63 = vld [vmem:[%s5461_s28 + $0x168] sm:$0xf0]  ;;  %v4319_v6 = vld [vmem:[%s5461_s28 + $0x124] sm:$0xf0] }
  0xa4   : > { %1511 = vmatpush.bf16.msra.mxu1 %v4009_v36  ;;  %1537 = vmatpush.bf16.msra.mxu3 %v4013_v40  ;;  %v4387_v0 = vld [vmem:[%s5461_s28 + $0x34c] sm:$0xf]  ;;  %v3925_v4 = vor.u32 %v4323_v62, %v3922_v63  ;;  %v4144_v7 = vld [vmem:[%s5461_s28 + $0x308] sm:$0xf]  ;;  %v3889_v15 = vor.u32 %v4319_v6, %v3888_v5  ;;  %v4340_v5 = vld [vmem:[%s5461_s28 + $0x1d4] sm:$0xf] }
  0xa5   : > { %v4178_v1 = vld [vmem:[%s5461_s28 + $0x368] sm:$0xf0]  ;;  %v4383_v9 = vld [vmem:[%s5461_s28 + $0x324] sm:$0xf0]  ;;  %v3994_v6 = vld [vmem:[%s5461_s28 + $0x1f0] sm:$0xf0] }
  0xa6   : > { %1543 = vmatpush.bf16.msrb.mxu0 %v3985_v41  ;;  %1569 = vmatpush.bf16.msrb.mxu2 %v3989_v43  ;;  %v4181_v8 = vor.u32 %v4387_v0, %v4178_v1  ;;  %v4315_v10 = vld [vmem:[%s5461_s28 + $0x10c] sm:$0xf]  ;;  %v5590_v14 = vld [vmem:[#allocation1] sm:$0xff]  ;;  %v4145_v17 = vor.u32 %v4383_v9, %v4144_v7  ;;  %v3992_v0 = vld [vmem:[%s5461_s28 + $0x1d0] sm:$0xf] }
  0xa7   : > { %v3890_v11 = vld [vmem:[%s5461_s28 + $0x128] sm:$0xf0]  ;;  %1525 = vmatmul.bf16.vlgmr.msra.gmra.mxu2 %v5590_v14  ;;  %v3856_v19 = vld [vmem:[%s5461_s28 + $0xc8] sm:$0xf]  ;;  %1499 = vmatmul.bf16.vlgmr.msra.gmra.mxu0 %v5590_v14  ;;  %v4344_v1 = vld [vmem:[%s5461_s28 + $0x1ec] sm:$0xf0] }
  0xa8   : > { %1556 = vmatpush.bf16.msrb.mxu1 %v4241_v42  ;;  %1582 = vmatpush.bf16.msrb.mxu3 %v4245_v47  ;;  %v4379_v12 = vld [vmem:[%s5461_s28 + $0x30c] sm:$0xf]  ;;  %v3893_v18 = vor.u32 %v4315_v10, %v3890_v11  ;;  %v4311_v20 = vld [vmem:[%s5461_s28 + $0xe4] sm:$0xf0]  ;;  %v4404_v9 = vld [vmem:[%s5461_s28 + $0x3d4] sm:$0xf] }
  0xa9   : > { %v4146_v13 = vld [vmem:[%s5461_s28 + $0x328] sm:$0xf0]  ;;  %v4112_v21 = vld [vmem:[%s5461_s28 + $0x2c8] sm:$0xf]  ;;  %v3857_v28 = vor.u32 %v4311_v20, %v3856_v19  ;;  %v4250_v10 = vld [vmem:[%s5461_s28 + $0x3f0] sm:$0xf0] }
  0xaa   : > { %1544 = vmatpush.bf16.msrb.mxu0 %v3953_v54  ;;  %1570 = vmatpush.bf16.msrb.mxu2 %v3957_v56  ;;  %v5593_v16 = vld [vmem:[#allocation1 + $0x9] sm:$0xff]  ;;  %v4149_v22 = vor.u32 %v4379_v12, %v4146_v13  ;;  %v4375_v23 = vld [vmem:[%s5461_s28 + $0x2e4] sm:$0xf0]  ;;  %v3993_v12 = vor.u32 %v4344_v1, %v3992_v0  ;;  %v4253_v20 = vor.u32 %v4404_v9, %v4250_v10 }
  0xab   : > { %v4307_v24 = vld [vmem:[%s5461_s28 + $0xcc] sm:$0xf]  ;;  %1538 = vmatmul.bf16.vlgmr.msra.gmra.mxu3 %v5593_v16  ;;  %1512 = vmatmul.bf16.vlgmr.msra.gmra.mxu1 %v5593_v16  ;;  %v4113_v29 = vor.u32 %v4375_v23, %v4112_v21  ;;  %v3824_v31 = vld [vmem:[%s5461_s28 + $0x88] sm:$0xf]  ;;  %v4216_v19 = vld [vmem:[%s5461_s28 + $0x390] sm:$0xf] }
  0xac   : > { %1557 = vmatpush.bf16.msrb.mxu1 %v4209_v55  ;;  %1583 = vmatpush.bf16.msrb.mxu3 %v4213_v60  ;;  %v3858_v25 = vld [vmem:[%s5461_s28 + $0xe8] sm:$0xf0]  ;;  %v4303_v32 = vld [vmem:[%s5461_s28 + $0xa4] sm:$0xf0]  ;;  %v4400_v21 = vld [vmem:[%s5461_s28 + $0x3ac] sm:$0xf0] }
  0xad   : > { %v4371_v26 = vld [vmem:[%s5461_s28 + $0x2cc] sm:$0xf]  ;;  %v3861_v30 = vor.u32 %v4307_v24, %v3858_v25  ;;  %v4080_v33 = vld [vmem:[%s5461_s28 + $0x288] sm:$0xf]  ;;  %v3825_v40 = vor.u32 %v4303_v32, %v3824_v31  ;;  %v3962_v23 = vld [vmem:[%s5461_s28 + $0x1b0] sm:$0xf0] }
  0xae   : > { %1545 = vmatpush.bf16.msrb.mxu0 %v3921_v2  ;;  %1571 = vmatpush.bf16.msrb.mxu2 %v3925_v4  ;;  %v4114_v27 = vld [vmem:[%s5461_s28 + $0x2e8] sm:$0xf0]  ;;  %v4367_v35 = vld [vmem:[%s5461_s28 + $0x2a4] sm:$0xf0]  ;;  %v4248_v2 = vld [vmem:[%s5461_s28 + $0x3d0] sm:$0xf] }
  0xaf   : > { %v4117_v34 = vor.u32 %v4371_v26, %v4114_v27  ;;  %v4299_v36 = vld [vmem:[%s5461_s28 + $0x8c] sm:$0xf]  ;;  %v4081_v41 = vor.u32 %v4367_v35, %v4080_v33  ;;  %v3792_v43 = vld [vmem:[%s5461_s28 + $0x48] sm:$0xf]  ;;  %v4408_v4 = vld [vmem:[%s5461_s28 + $0x3ec] sm:$0xf0]  ;;  %v4217_v27 = vor.u32 %v4400_v21, %v4216_v19 }
  0xb0   : > { %1558 = vmatpush.bf16.msrb.mxu1 %v4177_v3  ;;  %1584 = vmatpush.bf16.msrb.mxu3 %v4181_v8  ;;  %v3826_v37 = vld [vmem:[%s5461_s28 + $0xa8] sm:$0xf0]  ;;  %v4295_v44 = vld [vmem:[%s5461_s28 + $0x64] sm:$0xf0]  ;;  %v4249_v13 = vor.u32 %v4408_v4, %v4248_v2  ;;  %v4396_v24 = vld [vmem:[%s5461_s28 + $0x394] sm:$0xf] }
  0xb1   : > { %v4363_v38 = vld [vmem:[%s5461_s28 + $0x28c] sm:$0xf]  ;;  %v3829_v42 = vor.u32 %v4299_v36, %v3826_v37  ;;  %v4048_v45 = vld [vmem:[%s5461_s28 + $0x248] sm:$0xf]  ;;  %v3793_v52 = vor.u32 %v4295_v44, %v3792_v43  ;;  %v4218_v25 = vld [vmem:[%s5461_s28 + $0x3b0] sm:$0xf0] }
  0xb2   : > { %1546 = vmatpush.bf16.msrb.mxu0 %v3889_v15  ;;  %1572 = vmatpush.bf16.msrb.mxu2 %v3893_v18  ;;  %v4082_v39 = vld [vmem:[%s5461_s28 + $0x2a8] sm:$0xf0]  ;;  %v4359_v47 = vld [vmem:[%s5461_s28 + $0x264] sm:$0xf0]  ;;  %v3997_v15 = vor.u32 %v4340_v5, %v3994_v6  ;;  %v4336_v18 = vld [vmem:[%s5461_s28 + $0x1ac] sm:$0xf0]  ;;  %v4221_v32 = vor.u32 %v4396_v24, %v4218_v25 }
  0xb3   : > { %v4085_v46 = vor.u32 %v4363_v38, %v4082_v39  ;;  %v4291_v48 = vld [vmem:[%s5461_s28 + $0x4c] sm:$0xf]  ;;  %v3760_v53 = vld [vmem:[%s5461_s28 + $0x8] sm:$0xf]  ;;  %v4049_v55 = vor.u32 %v4359_v47, %v4048_v45  ;;  %v4184_v31 = vld [vmem:[%s5461_s28 + $0x350] sm:$0xf] }
  0xb4   : > { %1559 = vmatpush.bf16.msrb.mxu1 %v4145_v17  ;;  %1585 = vmatpush.bf16.msrb.mxu3 %v4149_v22  ;;  %v3794_v49 = vld [vmem:[%s5461_s28 + $0x68] sm:$0xf0]  ;;  %v4287_v54 = vld [vmem:[%s5461_s28 + $0x24] sm:$0xf0]  ;;  %v3960_v17 = vld [vmem:[%s5461_s28 + $0x190] sm:$0xf] }
  0xb5   : > { %v4355_v50 = vld [vmem:[%s5461_s28 + $0x24c] sm:$0xf]  ;;  %v3797_v56 = vor.u32 %v4291_v48, %v3794_v49  ;;  %v4016_v57 = vld [vmem:[%s5461_s28 + $0x208] sm:$0xf]  ;;  %v3761_v3 = vor.u32 %v4287_v54, %v3760_v53  ;;  %v4332_v22 = vld [vmem:[%s5461_s28 + $0x194] sm:$0xf]  ;;  %v3961_v26 = vor.u32 %v4336_v18, %v3960_v17 }
  0xb6   : > { %1547 = vmatpush.bf16.msrb.mxu0 %v3857_v28  ;;  %1573 = vmatpush.bf16.msrb.mxu2 %v3861_v30  ;;  %v4050_v51 = vld [vmem:[%s5461_s28 + $0x268] sm:$0xf0]  ;;  %v4351_v58 = vld [vmem:[%s5461_s28 + $0x224] sm:$0xf0]  ;;  %v3965_v28 = vor.u32 %v4332_v22, %v3962_v23  ;;  %v4328_v30 = vld [vmem:[%s5461_s28 + $0x16c] sm:$0xf0] }
  0xb7   : > { %v4283_v59 = vld [vmem:[%s5461_s28 + $0xc] sm:$0xf]  ;;  %v4053_v60 = vor.u32 %v4355_v50, %v4050_v51  ;;  %v4017_v7 = vor.u32 %v4351_v58, %v4016_v57  ;;  %v4392_v33 = vld [vmem:[%s5461_s28 + $0x36c] sm:$0xf0]  ;;  %v3930_v35 = vld [vmem:[%s5461_s28 + $0x170] sm:$0xf0] }
  0xb8   : > { %1560 = vmatpush.bf16.msrb.mxu1 %v4113_v29  ;;  %1586 = vmatpush.bf16.msrb.mxu3 %v4117_v34  ;;  %v3762_v61 = vld [vmem:[%s5461_s28 + $0x28] sm:$0xf0]  ;;  %v3928_v29 = vld [vmem:[%s5461_s28 + $0x150] sm:$0xf]  ;;  %v4324_v34 = vld [vmem:[%s5461_s28 + $0x154] sm:$0xf]  ;;  %v4185_v39 = vor.u32 %v4392_v33, %v4184_v31 }
  0xb9   : > { %v4347_v62 = vld [vmem:[%s5461_s28 + $0x20c] sm:$0xf]  ;;  %v3765_v8 = vor.u32 %v4283_v59, %v3762_v61  ;;  %v4388_v36 = vld [vmem:[%s5461_s28 + $0x354] sm:$0xf]  ;;  %v3929_v38 = vor.u32 %v4328_v30, %v3928_v29  ;;  %v4152_v43 = vld [vmem:[%s5461_s28 + $0x310] sm:$0xf] }
  0xba   : > { %1548 = vmatpush.bf16.msrb.mxu0 %v3825_v40  ;;  %1574 = vmatpush.bf16.msrb.mxu2 %v3829_v42  ;;  %v4018_v63 = vld [vmem:[%s5461_s28 + $0x228] sm:$0xf0]  ;;  %v4186_v37 = vld [vmem:[%s5461_s28 + $0x370] sm:$0xf0]  ;;  %v3933_v40 = vor.u32 %v4324_v34, %v3930_v35  ;;  %v4320_v42 = vld [vmem:[%s5461_s28 + $0x12c] sm:$0xf0] }
  0xbb   : > { %v4021_v11 = vor.u32 %v4347_v62, %v4018_v63  ;;  %v4189_v44 = vor.u32 %v4388_v36, %v4186_v37  ;;  %v4384_v45 = vld [vmem:[%s5461_s28 + $0x32c] sm:$0xf0]  ;;  %v3898_v47 = vld [vmem:[%s5461_s28 + $0x130] sm:$0xf0]  ;;  %v4000_v36 = vld [vmem:[%s5461_s28 + $0x1d8] sm:$0xf] }
  0xbc   : > { %1561 = vmatpush.bf16.msrb.mxu1 %v4081_v41  ;;  %1587 = vmatpush.bf16.msrb.mxu3 %v4085_v46  ;;  %v3896_v41 = vld [vmem:[%s5461_s28 + $0x110] sm:$0xf]  ;;  %v4316_v46 = vld [vmem:[%s5461_s28 + $0x114] sm:$0xf]  ;;  %v4153_v51 = vor.u32 %v4384_v45, %v4152_v43  ;;  %v4345_v37 = vld [vmem:[%s5461_s28 + $0x1f4] sm:$0xf0] }
  0xbd   : > { %v4380_v48 = vld [vmem:[%s5461_s28 + $0x314] sm:$0xf]  ;;  %v3897_v50 = vor.u32 %v4320_v42, %v3896_v41  ;;  %v3864_v53 = vld [vmem:[%s5461_s28 + $0xd0] sm:$0xf]  ;;  %v4341_v41 = vld [vmem:[%s5461_s28 + $0x1dc] sm:$0xf] }
  0xbe   : > { %1549 = vmatpush.bf16.msrb.mxu0 %v3793_v52  ;;  %1575 = vmatpush.bf16.msrb.mxu2 %v3797_v56  ;;  %v4154_v49 = vld [vmem:[%s5461_s28 + $0x330] sm:$0xf0]  ;;  %v3901_v52 = vor.u32 %v4316_v46, %v3898_v47  ;;  %v4312_v54 = vld [vmem:[%s5461_s28 + $0xec] sm:$0xf0]  ;;  %v4002_v42 = vld [vmem:[%s5461_s28 + $0x1f8] sm:$0xf0] }
  0xbf   : > { %v4157_v56 = vor.u32 %v4380_v48, %v4154_v49  ;;  %v4376_v57 = vld [vmem:[%s5461_s28 + $0x2ec] sm:$0xf0]  ;;  %v4308_v58 = vld [vmem:[%s5461_s28 + $0xd4] sm:$0xf]  ;;  %v3865_v62 = vor.u32 %v4312_v54, %v3864_v53  ;;  %v4405_v45 = vld [vmem:[%s5461_s28 + $0x3dc] sm:$0xf]  ;;  %v4001_v48 = vor.u32 %v4345_v37, %v4000_v36 }
  0xc0   : > { %1562 = vmatpush.bf16.msrb.mxu1 %v4049_v55  ;;  %1588 = vmatpush.bf16.msrb.mxu3 %v4053_v60  ;;  %v4120_v55 = vld [vmem:[%s5461_s28 + $0x2d0] sm:$0xf]  ;;  %v3866_v59 = vld [vmem:[%s5461_s28 + $0xf0] sm:$0xf0]  ;;  %v4258_v46 = vld [vmem:[%s5461_s28 + $0x3f8] sm:$0xf0] }
  0xc1   : > { %v4372_v60 = vld [vmem:[%s5461_s28 + $0x2d4] sm:$0xf]  ;;  %v4121_v63 = vor.u32 %v4376_v57, %v4120_v55  ;;  %v3869_v0 = vor.u32 %v4308_v58, %v3866_v59  ;;  %v3832_v1 = vld [vmem:[%s5461_s28 + $0x90] sm:$0xf]  ;;  %v4224_v53 = vld [vmem:[%s5461_s28 + $0x398] sm:$0xf]  ;;  %v4261_v54 = vor.u32 %v4405_v45, %v4258_v46 }
  0xc2   : > { %1550 = vmatpush.bf16.msrb.mxu0 %v3761_v3  ;;  %1576 = vmatpush.bf16.msrb.mxu2 %v3765_v8  ;;  %v4122_v61 = vld [vmem:[%s5461_s28 + $0x2f0] sm:$0xf0]  ;;  %v4304_v2 = vld [vmem:[%s5461_s28 + $0xac] sm:$0xf0]  ;;  %v4401_v55 = vld [vmem:[%s5461_s28 + $0x3b4] sm:$0xf0] }
  0xc3   : > { %v4088_v3 = vld [vmem:[%s5461_s28 + $0x290] sm:$0xf]  ;;  %v4125_v4 = vor.u32 %v4372_v60, %v4122_v61  ;;  %v4300_v6 = vld [vmem:[%s5461_s28 + $0x94] sm:$0xf]  ;;  %v3833_v10 = vor.u32 %v4304_v2, %v3832_v1  ;;  %v3970_v57 = vld [vmem:[%s5461_s28 + $0x1b8] sm:$0xf0]  ;;  %v4225_v61 = vor.u32 %v4401_v55, %v4224_v53 }
  0xc4   : > { %1563 = vmatpush.bf16.msrb.mxu1 %v4017_v7  ;;  %1589 = vmatpush.bf16.msrb.mxu3 %v4021_v11  ;;  %v4368_v5 = vld [vmem:[%s5461_s28 + $0x2ac] sm:$0xf0]  ;;  %v3834_v7 = vld [vmem:[%s5461_s28 + $0xb0] sm:$0xf0]  ;;  %v4397_v58 = vld [vmem:[%s5461_s28 + $0x39c] sm:$0xf] }
  0xc5   : > { %1577 = vmatmul.bf16.vlgmr.msrb.gmra.mxu2 %v5590_v14  ;;  %1551 = vmatmul.bf16.vlgmr.msrb.gmra.mxu0 %v5590_v14  ;;  %v4364_v8 = vld [vmem:[%s5461_s28 + $0x294] sm:$0xf]  ;;  %v4089_v11 = vor.u32 %v4368_v5, %v4088_v3  ;;  %v4056_v17 = vld [vmem:[%s5461_s28 + $0x250] sm:$0xf]  ;;  %v4226_v59 = vld [vmem:[%s5461_s28 + $0x3b8] sm:$0xf0] }
  0xc6   : > { %1595 = vmatpush.bf16.msra.mxu0 %v3993_v12  ;;  %1621 = vmatpush.bf16.msra.mxu2 %v3997_v15  ;;  %v4090_v9 = vld [vmem:[%s5461_s28 + $0x2b0] sm:$0xf0]  ;;  %v3837_v12 = vor.u32 %v4300_v6, %v3834_v7  ;;  %v4296_v15 = vld [vmem:[%s5461_s28 + $0x6c] sm:$0xf0]  ;;  %v4192_v1 = vld [vmem:[%s5461_s28 + $0x358] sm:$0xf]  ;;  %v4229_v2 = vor.u32 %v4397_v58, %v4226_v59 }
  0xc7   : > { %1590 = vmatmul.bf16.vlgmr.msrb.gmra.mxu3 %v5593_v16  ;;  %1564 = vmatmul.bf16.vlgmr.msrb.gmra.mxu1 %v5593_v16  ;;  %v4093_v18 = vor.u32 %v4364_v8, %v4090_v9  ;;  %v4360_v19 = vld [vmem:[%s5461_s28 + $0x26c] sm:$0xf0]  ;;  %v3802_v21 = vld [vmem:[%s5461_s28 + $0x70] sm:$0xf0]  ;;  %v4393_v3 = vld [vmem:[%s5461_s28 + $0x374] sm:$0xf0] }
  0xc8   : > { %1608 = vmatpush.bf16.msra.mxu1 %v4249_v13  ;;  %1634 = vmatpush.bf16.msra.mxu3 %v4253_v20  ;;  %v3800_v13 = vld [vmem:[%s5461_s28 + $0x50] sm:$0xf]  ;;  %v4292_v20 = vld [vmem:[%s5461_s28 + $0x54] sm:$0xf]  ;;  %v3938_v5 = vld [vmem:[%s5461_s28 + $0x178] sm:$0xf0]  ;;  %v4193_v9 = vor.u32 %v4393_v3, %v4192_v1 }
  0xc9   : > { %v4356_v22 = vld [vmem:[%s5461_s28 + $0x254] sm:$0xf]  ;;  %v3801_v24 = vor.u32 %v4296_v15, %v3800_v13  ;;  %v3768_v25 = vld [vmem:[%s5461_s28 + $0x10] sm:$0xf]  ;;  %v4389_v6 = vld [vmem:[%s5461_s28 + $0x35c] sm:$0xf] }
  0xca   : > { %1596 = vmatpush.bf16.msra.mxu0 %v3961_v26  ;;  %1622 = vmatpush.bf16.msra.mxu2 %v3965_v28  ;;  %v4058_v23 = vld [vmem:[%s5461_s28 + $0x270] sm:$0xf0]  ;;  %v4288_v26 = vld [vmem:[%s5461_s28 + $0x2c] sm:$0xf0]  ;;  %v3805_v28 = vor.u32 %v4292_v20, %v3802_v21  ;;  %v4194_v7 = vld [vmem:[%s5461_s28 + $0x378] sm:$0xf0] }
  0xcb   : > { %v4024_v29 = vld [vmem:[%s5461_s28 + $0x210] sm:$0xf]  ;;  %v4284_v31 = vld [vmem:[%s5461_s28 + $0x14] sm:$0xf]  ;;  %v4160_v13 = vld [vmem:[%s5461_s28 + $0x318] sm:$0xf]  ;;  %v4197_v15 = vor.u32 %v4389_v6, %v4194_v7 }
  0xcc   : > { %1609 = vmatpush.bf16.msra.mxu1 %v4217_v27  ;;  %1635 = vmatpush.bf16.msra.mxu3 %v4221_v32  ;;  %v4057_v27 = vor.u32 %v4360_v19, %v4056_v17  ;;  %v4352_v30 = vld [vmem:[%s5461_s28 + $0x22c] sm:$0xf0]  ;;  %v4061_v32 = vor.u32 %v4356_v22, %v4058_v23  ;;  %v3770_v33 = vld [vmem:[%s5461_s28 + $0x30] sm:$0xf0]  ;;  %v4385_v17 = vld [vmem:[%s5461_s28 + $0x334] sm:$0xf0] }
  0xcd   : > { %v4348_v34 = vld [vmem:[%s5461_s28 + $0x214] sm:$0xf]  ;;  %v4025_v43 = vor.u32 %v4352_v30, %v4024_v29  ;;  %v3906_v19 = vld [vmem:[%s5461_s28 + $0x138] sm:$0xf0]  ;;  %v4161_v23 = vor.u32 %v4385_v17, %v4160_v13  ;;  %v4377_v29 = vld [vmem:[%s5461_s28 + $0x2f4] sm:$0xf0] }
  0xce   : > { %1597 = vmatpush.bf16.msra.mxu0 %v3929_v38  ;;  %1623 = vmatpush.bf16.msra.mxu2 %v3933_v40  ;;  %v4026_v35 = vld [vmem:[%s5461_s28 + $0x230] sm:$0xf0]  ;;  %v4256_v38 = vld [vmem:[%s5461_s28 + $0x3d8] sm:$0xf]  ;;  %v4381_v20 = vld [vmem:[%s5461_s28 + $0x31c] sm:$0xf] }
  0xcf   : > { %v4409_v40 = vld [vmem:[%s5461_s28 + $0x3f4] sm:$0xf0]  ;;  %v4029_v47 = vor.u32 %v4348_v34, %v4026_v35  ;;  %v4162_v21 = vld [vmem:[%s5461_s28 + $0x338] sm:$0xf0] }
  0xd0   : > { %1610 = vmatpush.bf16.msra.mxu1 %v4185_v39  ;;  %1636 = vmatpush.bf16.msra.mxu3 %v4189_v44  ;;  %v3769_v39 = vor.u32 %v4288_v26, %v3768_v25  ;;  %v3773_v44 = vor.u32 %v4284_v31, %v3770_v33  ;;  %v4257_v49 = vor.u32 %v4409_v40, %v4256_v38  ;;  %v3872_v25 = vld [vmem:[%s5461_s28 + $0xd8] sm:$0xf]  ;;  %v4309_v30 = vld [vmem:[%s5461_s28 + $0xdc] sm:$0xf] }
  0xd1   : > { %v4313_v26 = vld [vmem:[%s5461_s28 + $0xf4] sm:$0xf0]  ;;  %v3874_v31 = vld [vmem:[%s5461_s28 + $0xf8] sm:$0xf0] }
  0xd2   : > { %1598 = vmatpush.bf16.msra.mxu0 %v3897_v50  ;;  %1624 = vmatpush.bf16.msra.mxu2 %v3901_v52  ;;  %v4005_v50 = vor.u32 %v4341_v41, %v4002_v42  ;;  %v4337_v52 = vld [vmem:[%s5461_s28 + $0x1b4] sm:$0xf0]  ;;  %v4130_v33 = vld [vmem:[%s5461_s28 + $0x2f8] sm:$0xf0]  ;;  %v3873_v34 = vor.u32 %v4313_v26, %v3872_v25  ;;  %v3877_v36 = vor.u32 %v4309_v30, %v3874_v31  ;;  %v714_v31 = vld [vmem:[#allocation2] sm:$0xff] }
  0xd3   : > { %v3840_v37 = vld [vmem:[%s5461_s28 + $0x98] sm:$0xf]  ;;  %v4301_v42 = vld [vmem:[%s5461_s28 + $0x9c] sm:$0xf] }
  0xd4   : > { %1611 = vmatpush.bf16.msra.mxu1 %v4153_v51  ;;  %1637 = vmatpush.bf16.msra.mxu3 %v4157_v56  ;;  %v3968_v51 = vld [vmem:[%s5461_s28 + $0x198] sm:$0xf]  ;;  %v4333_v56 = vld [vmem:[%s5461_s28 + $0x19c] sm:$0xf] }
  0xd5   : > { %v3969_v60 = vor.u32 %v4337_v52, %v3968_v51  ;;  %v4305_v38 = vld [vmem:[%s5461_s28 + $0xb4] sm:$0xf0]  ;;  %v4098_v45 = vld [vmem:[%s5461_s28 + $0x2b8] sm:$0xf0] }
  0xd6   : > { %1599 = vmatpush.bf16.msra.mxu0 %v3865_v62  ;;  %1625 = vmatpush.bf16.msra.mxu2 %v3869_v0  ;;  %v3973_v62 = vor.u32 %v4333_v56, %v3970_v57  ;;  %v4329_v0 = vld [vmem:[%s5461_s28 + $0x174] sm:$0xf0]  ;;  %v3841_v46 = vor.u32 %v4305_v38, %v3840_v37  ;;  %v3810_v55 = vld [vmem:[%s5461_s28 + $0x78] sm:$0xf0] }
  0xd7   : > { %v4369_v41 = vld [vmem:[%s5461_s28 + $0x2b4] sm:$0xf0]  ;;  %v4357_v56 = vld [vmem:[%s5461_s28 + $0x25c] sm:$0xf] }
  0xd8   : > { %1612 = vmatpush.bf16.msra.mxu1 %v4121_v63  ;;  %1638 = vmatpush.bf16.msra.mxu3 %v4125_v4  ;;  %v3936_v63 = vld [vmem:[%s5461_s28 + $0x158] sm:$0xf]  ;;  %v4325_v4 = vld [vmem:[%s5461_s28 + $0x15c] sm:$0xf] }
  0xd9   : > { %v3937_v8 = vor.u32 %v4329_v0, %v3936_v63  ;;  %v4064_v51 = vld [vmem:[%s5461_s28 + $0x258] sm:$0xf]  ;;  %v4066_v57 = vld [vmem:[%s5461_s28 + $0x278] sm:$0xf0] }
  0xda   : > { %1600 = vmatpush.bf16.msra.mxu0 %v3833_v10  ;;  %1626 = vmatpush.bf16.msra.mxu2 %v3837_v12  ;;  %v3941_v10 = vor.u32 %v4325_v4, %v3938_v5  ;;  %v4321_v12 = vld [vmem:[%s5461_s28 + $0x134] sm:$0xf0]  ;;  %v4069_v0 = vor.u32 %v4357_v56, %v4066_v57  ;;  %v3778_v3 = vld [vmem:[%s5461_s28 + $0x38] sm:$0xf0] }
  0xdb   : > { %v4361_v53 = vld [vmem:[%s5461_s28 + $0x274] sm:$0xf0]  ;;  %v4349_v4 = vld [vmem:[%s5461_s28 + $0x21c] sm:$0xf] }
  0xdc   : > { %1613 = vmatpush.bf16.msra.mxu1 %v4089_v11  ;;  %1639 = vmatpush.bf16.msra.mxu3 %v4093_v18  ;;  %v3904_v11 = vld [vmem:[%s5461_s28 + $0x118] sm:$0xf]  ;;  %v4317_v18 = vld [vmem:[%s5461_s28 + $0x11c] sm:$0xf]  ;;  %v4065_v59 = vor.u32 %v4361_v53, %v4064_v51 }
  0xdd   : > { %v3905_v22 = vor.u32 %v4321_v12, %v3904_v11  ;;  %v4032_v63 = vld [vmem:[%s5461_s28 + $0x218] sm:$0xf]  ;;  %v4034_v5 = vld [vmem:[%s5461_s28 + $0x238] sm:$0xf0] }
  0xde   : > { %1601 = vmatpush.bf16.msra.mxu0 %v3801_v24  ;;  %1627 = vmatpush.bf16.msra.mxu2 %v3805_v28  ;;  %v3909_v24 = vor.u32 %v4317_v18, %v3906_v19  ;;  %v4165_v28 = vor.u32 %v4381_v20, %v4162_v21  ;;  %v4353_v1 = vld [vmem:[%s5461_s28 + $0x234] sm:$0xf0] }
  0xdf   : > { %v4033_v7 = vor.u32 %v4353_v1, %v4032_v63 }
  0xe0   : > { %1614 = vmatpush.bf16.msra.mxu1 %v4057_v27  ;;  %1640 = vmatpush.bf16.msra.mxu3 %v4061_v32  ;;  %v4128_v27 = vld [vmem:[%s5461_s28 + $0x2d8] sm:$0xf]  ;;  %v4373_v32 = vld [vmem:[%s5461_s28 + $0x2dc] sm:$0xf] }
  0xe1   : > { %v4129_v35 = vor.u32 %v4377_v29, %v4128_v27  ;;  %v4133_v40 = vor.u32 %v4373_v32, %v4130_v33 }
  0xe2   : > { %1602 = vmatpush.bf16.msra.mxu0 %v3769_v39  ;;  %1628 = vmatpush.bf16.msra.mxu2 %v3773_v44  ;;  %v4096_v39 = vld [vmem:[%s5461_s28 + $0x298] sm:$0xf]  ;;  %v4365_v44 = vld [vmem:[%s5461_s28 + $0x29c] sm:$0xf] }
  0xe3   : > { %v4101_v52 = vor.u32 %v4365_v44, %v4098_v45 }
  0xe4   : > { %1615 = vmatpush.bf16.msra.mxu1 %v4025_v43  ;;  %1641 = vmatpush.bf16.msra.mxu3 %v4029_v47  ;;  %v3842_v43 = vld [vmem:[%s5461_s28 + $0xb8] sm:$0xf0]  ;;  %v4097_v47 = vor.u32 %v4369_v41, %v4096_v39 }
  0xe5   : > { %1629 = vmatmul.bf16.vlgmr.msra.gmra.mxu2 %v5590_v14  ;;  %1603 = vmatmul.bf16.vlgmr.msra.gmra.mxu0 %v5590_v14 }
  0xe6   : > { %1647 = vmatpush.bf16.msrb.mxu0 %v4001_v48  ;;  %1673 = vmatpush.bf16.msrb.mxu2 %v4005_v50  ;;  %v3845_v48 = vor.u32 %v4301_v42, %v3842_v43  ;;  %v4297_v50 = vld [vmem:[%s5461_s28 + $0x74] sm:$0xf0] }
  0xe7   : > { %1642 = vmatmul.bf16.vlgmr.msra.gmra.mxu3 %v5593_v16  ;;  %1616 = vmatmul.bf16.vlgmr.msra.gmra.mxu1 %v5593_v16 }
  0xe8   : > { %1660 = vmatpush.bf16.msrb.mxu1 %v4257_v49  ;;  %1686 = vmatpush.bf16.msrb.mxu3 %v4261_v54  ;;  %v3808_v49 = vld [vmem:[%s5461_s28 + $0x58] sm:$0xf]  ;;  %v4293_v54 = vld [vmem:[%s5461_s28 + $0x5c] sm:$0xf] }
  0xe9   : > { %v3809_v58 = vor.u32 %v4297_v50, %v3808_v49 }
  0xea   : > { %1648 = vmatpush.bf16.msrb.mxu0 %v3969_v60  ;;  %1674 = vmatpush.bf16.msrb.mxu2 %v3973_v62  ;;  %v3813_v60 = vor.u32 %v4293_v54, %v3810_v55  ;;  %v4289_v62 = vld [vmem:[%s5461_s28 + $0x34] sm:$0xf0] }
  0xec   : > { %1661 = vmatpush.bf16.msrb.mxu1 %v4225_v61  ;;  %1687 = vmatpush.bf16.msrb.mxu3 %v4229_v2  ;;  %v3776_v61 = vld [vmem:[%s5461_s28 + $0x18] sm:$0xf]  ;;  %v4285_v2 = vld [vmem:[%s5461_s28 + $0x1c] sm:$0xf] }
  0xed   : > { %v3777_v6 = vor.u32 %v4289_v62, %v3776_v61 }
  0xee   : > { %1649 = vmatpush.bf16.msrb.mxu0 %v3937_v8  ;;  %1675 = vmatpush.bf16.msrb.mxu2 %v3941_v10  ;;  %v3781_v8 = vor.u32 %v4285_v2, %v3778_v3 }
  0xf0   : > { %1662 = vmatpush.bf16.msrb.mxu1 %v4193_v9  ;;  %1688 = vmatpush.bf16.msrb.mxu3 %v4197_v15  ;;  %v4037_v9 = vor.u32 %v4349_v4, %v4034_v5 }
  0xf2   : > { %1650 = vmatpush.bf16.msrb.mxu0 %v3905_v22  ;;  %1676 = vmatpush.bf16.msrb.mxu2 %v3909_v24 }
  0xf4   : > { %1663 = vmatpush.bf16.msrb.mxu1 %v4161_v23  ;;  %1689 = vmatpush.bf16.msrb.mxu3 %v4165_v28 }
  0xf6   : > { %1651 = vmatpush.bf16.msrb.mxu0 %v3873_v34  ;;  %1677 = vmatpush.bf16.msrb.mxu2 %v3877_v36 }
  0xf8   : > { %1664 = vmatpush.bf16.msrb.mxu1 %v4129_v35  ;;  %1690 = vmatpush.bf16.msrb.mxu3 %v4133_v40 }
  0xfa   : > { %1652 = vmatpush.bf16.msrb.mxu0 %v3841_v46  ;;  %1678 = vmatpush.bf16.msrb.mxu2 %v3845_v48 }
  0xfc   : > { %1665 = vmatpush.bf16.msrb.mxu1 %v4097_v47  ;;  %1691 = vmatpush.bf16.msrb.mxu3 %v4101_v52 }
  0xfe   : > { %1653 = vmatpush.bf16.msrb.mxu0 %v3809_v58  ;;  %1679 = vmatpush.bf16.msrb.mxu2 %v3813_v60 }
 0x100   : > { %1666 = vmatpush.bf16.msrb.mxu1 %v4065_v59  ;;  %1692 = vmatpush.bf16.msrb.mxu3 %v4069_v0  ;;  %v715_v59 = vld [vmem:[#allocation2 + $0x8] sm:$0xff] }
 0x102   : > { %1654 = vmatpush.bf16.msrb.mxu0 %v3777_v6  ;;  %1680 = vmatpush.bf16.msrb.mxu2 %v3781_v8 }
 0x104   : > { %1667 = vmatpush.bf16.msrb.mxu1 %v4033_v7  ;;  %1693 = vmatpush.bf16.msrb.mxu3 %v4037_v9 }
 0x105   : > { %1655 = vmatmul.bf16.vlgmr.msrb.gmra.mxu0 %v5590_v14  ;;  %1681 = vmatmul.bf16.vlgmr.msrb.gmra.mxu2 %v5590_v14 }
 0x107   : > { %1668 = vmatmul.bf16.vlgmr.msrb.gmra.mxu1 %v5593_v16  ;;  %1694 = vmatmul.bf16.vlgmr.msrb.gmra.mxu3 %v5593_v16 }
 0x124   : > { %v1500_v10 = vpop.f32.mrf.mxu0 }
 0x128   : > { %v1513_v11 = vpop.f32.mrf.mxu1 }
 0x129   : > { %v1514_v26 = vadd.f32 %v1513_v11, %v1500_v10 }
 0x12a   : > { %v1526_v12 = vpop.f32.mrf.mxu2 }
 0x12c   : > { %v1502_v15 = vpop.f32.mrf.mxu0 }
 0x12e   : > { %v1539_v13 = vpop.f32.mrf.mxu3 }
 0x12f   : > { %v1540_v22 = vadd.f32 %v1539_v13, %v1526_v12 }
 0x130   : > { %v1515_v17 = vpop.f32.mrf.mxu1 }
 0x131   : > { %v1707_v27 = vrot.slane %v1540_v22, 6 }
 0x132   : > { %v1528_v18 = vpop.f32.mrf.mxu2 }
 0x133   : > { %v1714_v32 = vsel %vm1713_vm0, %v1514_v26, %v1707_v27 }
 0x136   : > { %v1541_v19 = vpop.f32.mrf.mxu3 }
 0x142   : > { %v1552_v20 = vpop.f32.mrf.mxu0 }
 0x144   : > { %v1565_v21 = vpop.f32.mrf.mxu1 }
 0x145   : > { %v1566_v23 = vadd.f32 %v1565_v21, %v1552_v20 }
 0x147   : > { %v1708_v28 = vrot.slane %v1566_v23, 4 }
 0x148   : > { %v1578_v24 = vpop.f32.mrf.mxu2 }
 0x14a   : > { %v1591_v25 = vpop.f32.mrf.mxu3  ;;  %v1554_v16 = vpop.f32.mrf.mxu0 }
 0x14b   : > { %v1592_v14 = vadd.f32 %v1591_v25, %v1578_v24 }
 0x14c   : > { %v1567_v30 = vpop.f32.mrf.mxu1 }
 0x14d   : > { %v1709_v29 = vrot.slane %v1592_v14, 2 }
 0x14f   : > { %v1716_v33 = vsel %vm1715_vm1, %v1708_v28, %v1709_v29 }
 0x150   : > { %v1718_v34 = vsel %vm1717_vm2, %v1714_v32, %v1716_v33  ;;  %v1580_v36 = vpop.f32.mrf.mxu2 }
 0x151   : > { %v1724_v35 = vadd.f32 %v1718_v34, %v714_v31 }
 0x152   : > { %v1593_v37 = vpop.f32.mrf.mxu3 }
 0x153   : > { %1726 = vst [vmem:[#allocation2] sm:$0xff] %v1724_v35 }
 0x162   : > { %v1604_v38 = vpop.f32.mrf.mxu0 }
 0x164   : > { %v1617_v39 = vpop.f32.mrf.mxu1 }
 0x165   : > { %v1618_v53 = vadd.f32 %v1617_v39, %v1604_v38 }
 0x168   : > { %v1630_v40 = vpop.f32.mrf.mxu2 }
 0x16a   : > { %v1643_v41 = vpop.f32.mrf.mxu3  ;;  %v1606_v42 = vpop.f32.mrf.mxu0 }
 0x16b   : > { %v1644_v48 = vadd.f32 %v1643_v41, %v1630_v40 }
 0x16c   : > { %v1619_v43 = vpop.f32.mrf.mxu1 }
 0x16d   : > { %v1710_v54 = vrot.slane %v1644_v48, 6 }
 0x16f   : > { %v1719_v60 = vsel %vm1713_vm0, %v1618_v53, %v1710_v54 }
 0x170   : > { %v1632_v44 = vpop.f32.mrf.mxu2 }
 0x172   : > { %v1645_v45 = vpop.f32.mrf.mxu3 }
 0x182   : > { %v1656_v46 = vpop.f32.mrf.mxu0 }
 0x184   : > { %v1669_v47 = vpop.f32.mrf.mxu1 }
 0x185   : > { %v1670_v49 = vadd.f32 %v1669_v47, %v1656_v46 }
 0x187   : > { %v1711_v55 = vrot.slane %v1670_v49, 4 }
 0x188   : > { %v1682_v50 = vpop.f32.mrf.mxu2 }
 0x18a   : > { %v1695_v51 = vpop.f32.mrf.mxu3  ;;  %v1658_v52 = vpop.f32.mrf.mxu0 }
 0x18b   : > { %v1696_v56 = vadd.f32 %v1695_v51, %v1682_v50 }
 0x18c   : > { %v1671_v57 = vpop.f32.mrf.mxu1 }
 0x18d   : > { %v1712_v58 = vrot.slane %v1696_v56, 2 }
 0x18f   : > { %v1720_v61 = vsel %vm1715_vm1, %v1711_v55, %v1712_v58  ;;  %1731 = sbr.rel (%p4262_p1) target bundleno = 1117 (0x45d), region = 132 }
 0x190   : > { %v1721_v62 = vsel %vm1717_vm2, %v1719_v60, %v1720_v61  ;;  %v1684_v0 = vpop.f32.mrf.mxu2 }
 0x191   : > { %v1725_v63 = vadd.f32 %v1721_v62, %v715_v59 }
 0x192   : > { %v1697_v1 = vpop.f32.mrf.mxu3 }
 0x193   : > { %1727 = vst [vmem:[#allocation2 + $0x8] sm:$0xff] %v1725_v63 }
 0x194   : > { %v2207_v2 = vld [vmem:[#allocation15 + $0x3c0] sm:$0xff]  ;;  %v2208_v3 = vld [vmem:[#allocation15 + $0x3c8] sm:$0xff]  ;;  %v2209_v0 = vld [vmem:[#allocation15 + $0x3d0] sm:$0xff] }
 0x195   : > { %v2199_v4 = vld [vmem:[#allocation15 + $0x380] sm:$0xff]  ;;  %2349 = vmatpush.msra.mxu0 %v2207_v2  ;;  %2389 = vmatpush.msra.mxu2 %v2208_v3  ;;  %v2200_v6 = vld [vmem:[#allocation15 + $0x388] sm:$0xff]  ;;  %v2210_v1 = vld [vmem:[#allocation15 + $0x3d8] sm:$0xff] }
 0x196   : > { %v2335_v5 = vld [vmem:[#allocation15 + $0x7c0] sm:$0xff]  ;;  %v2336_v7 = vld [vmem:[#allocation15 + $0x7c8] sm:$0xff] }
 0x197   : > { %2369 = vmatpush.msra.mxu1 %v2335_v5  ;;  %2409 = vmatpush.msra.mxu3 %v2336_v7  ;;  %v2191_v8 = vld [vmem:[#allocation15 + $0x340] sm:$0xff]  ;;  %v2192_v10 = vld [vmem:[#allocation15 + $0x348] sm:$0xff]  ;;  %v2337_v5 = vld [vmem:[#allocation15 + $0x7d0] sm:$0xff] }
 0x198   : > { %v2327_v9 = vld [vmem:[#allocation15 + $0x780] sm:$0xff]  ;;  %2350 = vmatpush.msra.mxu0 %v2199_v4  ;;  %2390 = vmatpush.msra.mxu2 %v2200_v6  ;;  %v2328_v11 = vld [vmem:[#allocation15 + $0x788] sm:$0xff]  ;;  %v2201_v4 = vld [vmem:[#allocation15 + $0x390] sm:$0xff] }
 0x199   : > { %v2319_v12 = vld [vmem:[#allocation15 + $0x740] sm:$0xff]  ;;  %2370 = vmatpush.msra.mxu1 %v2327_v9  ;;  %2410 = vmatpush.msra.mxu3 %v2328_v11  ;;  %v2184_v15 = vld [vmem:[#allocation15 + $0x308] sm:$0xff]  ;;  %v2202_v6 = vld [vmem:[#allocation15 + $0x398] sm:$0xff] }
 0x19a   : > { %v2183_v13 = vld [vmem:[#allocation15 + $0x300] sm:$0xff]  ;;  %v2320_v17 = vld [vmem:[#allocation15 + $0x748] sm:$0xff]  ;;  %2351 = vmatpush.msra.mxu0 %v2191_v8  ;;  %2391 = vmatpush.msra.mxu2 %v2192_v10  ;;  %v2338_v7 = vld [vmem:[#allocation15 + $0x7d8] sm:$0xff] }
 0x19b   : > { %v2311_v18 = vld [vmem:[#allocation15 + $0x700] sm:$0xff]  ;;  %v2312_v19 = vld [vmem:[#allocation15 + $0x708] sm:$0xff]  ;;  %2371 = vmatpush.msra.mxu1 %v2319_v12  ;;  %2411 = vmatpush.msra.mxu3 %v2320_v17  ;;  %v2193_v8 = vld [vmem:[#allocation15 + $0x350] sm:$0xff] }
 0x19c   : > { %v2175_v20 = vld [vmem:[#allocation15 + $0x2c0] sm:$0xff]  ;;  %v2176_v21 = vld [vmem:[#allocation15 + $0x2c8] sm:$0xff]  ;;  %2352 = vmatpush.msra.mxu0 %v2183_v13  ;;  %2392 = vmatpush.msra.mxu2 %v2184_v15  ;;  %v2329_v9 = vld [vmem:[#allocation15 + $0x790] sm:$0xff] }
 0x19d   : > { %v2303_v22 = vld [vmem:[#allocation15 + $0x6c0] sm:$0xff]  ;;  %v2304_v23 = vld [vmem:[#allocation15 + $0x6c8] sm:$0xff]  ;;  %2372 = vmatpush.msra.mxu1 %v2311_v18  ;;  %2412 = vmatpush.msra.mxu3 %v2312_v19  ;;  %v2194_v10 = vld [vmem:[#allocation15 + $0x358] sm:$0xff] }
 0x19e   : > { %v2167_v24 = vld [vmem:[#allocation15 + $0x280] sm:$0xff]  ;;  %v2168_v25 = vld [vmem:[#allocation15 + $0x288] sm:$0xff]  ;;  %2353 = vmatpush.msra.mxu0 %v2175_v20  ;;  %2393 = vmatpush.msra.mxu2 %v2176_v21  ;;  %v2330_v11 = vld [vmem:[#allocation15 + $0x798] sm:$0xff] }
 0x19f   : > { %v2295_v26 = vld [vmem:[#allocation15 + $0x680] sm:$0xff]  ;;  %v2296_v27 = vld [vmem:[#allocation15 + $0x688] sm:$0xff]  ;;  %2373 = vmatpush.msra.mxu1 %v2303_v22  ;;  %2413 = vmatpush.msra.mxu3 %v2304_v23  ;;  %v2185_v12 = vld [vmem:[#allocation15 + $0x310] sm:$0xff] }
 0x1a0   : > { %v2159_v28 = vld [vmem:[#allocation15 + $0x240] sm:$0xff]  ;;  %v2160_v14 = vld [vmem:[#allocation15 + $0x248] sm:$0xff]  ;;  %2354 = vmatpush.msra.mxu0 %v2167_v24  ;;  %2394 = vmatpush.msra.mxu2 %v2168_v25  ;;  %v2321_v13 = vld [vmem:[#allocation15 + $0x750] sm:$0xff] }
 0x1a1   : > { %v2287_v16 = vld [vmem:[#allocation15 + $0x640] sm:$0xff]  ;;  %v2288_v29 = vld [vmem:[#allocation15 + $0x648] sm:$0xff]  ;;  %2374 = vmatpush.msra.mxu1 %v2295_v26  ;;  %2414 = vmatpush.msra.mxu3 %v2296_v27  ;;  %v2186_v15 = vld [vmem:[#allocation15 + $0x318] sm:$0xff] }
 0x1a2   : > { %v2151_v30 = vld [vmem:[#allocation15 + $0x200] sm:$0xff]  ;;  %v2152_v31 = vld [vmem:[#allocation15 + $0x208] sm:$0xff]  ;;  %2355 = vmatpush.msra.mxu0 %v2159_v28  ;;  %2395 = vmatpush.msra.mxu2 %v2160_v14  ;;  %v2322_v17 = vld [vmem:[#allocation15 + $0x758] sm:$0xff] }
 0x1a3   : > { %v2279_v32 = vld [vmem:[#allocation15 + $0x600] sm:$0xff]  ;;  %v2280_v33 = vld [vmem:[#allocation15 + $0x608] sm:$0xff]  ;;  %2375 = vmatpush.msra.mxu1 %v2287_v16  ;;  %2415 = vmatpush.msra.mxu3 %v2288_v29  ;;  %v2177_v18 = vld [vmem:[#allocation15 + $0x2d0] sm:$0xff] }
 0x1a4   : > { %v2143_v34 = vld [vmem:[#allocation15 + $0x1c0] sm:$0xff]  ;;  %v2144_v35 = vld [vmem:[#allocation15 + $0x1c8] sm:$0xff]  ;;  %2356 = vmatpush.msra.mxu0 %v2151_v30  ;;  %2396 = vmatpush.msra.mxu2 %v2152_v31  ;;  %v2313_v19 = vld [vmem:[#allocation15 + $0x710] sm:$0xff] }
 0x1a5   : > { %v2271_v36 = vld [vmem:[#allocation15 + $0x5c0] sm:$0xff]  ;;  %v2272_v37 = vld [vmem:[#allocation15 + $0x5c8] sm:$0xff]  ;;  %2376 = vmatpush.msra.mxu1 %v2279_v32  ;;  %2416 = vmatpush.msra.mxu3 %v2280_v33  ;;  %v2178_v20 = vld [vmem:[#allocation15 + $0x2d8] sm:$0xff] }
 0x1a6   : > { %v2135_v38 = vld [vmem:[#allocation15 + $0x180] sm:$0xff]  ;;  %v2136_v39 = vld [vmem:[#allocation15 + $0x188] sm:$0xff]  ;;  %2357 = vmatpush.msra.mxu0 %v2143_v34  ;;  %2397 = vmatpush.msra.mxu2 %v2144_v35  ;;  %v2314_v21 = vld [vmem:[#allocation15 + $0x718] sm:$0xff] }
 0x1a7   : > { %v2263_v40 = vld [vmem:[#allocation15 + $0x580] sm:$0xff]  ;;  %v2264_v41 = vld [vmem:[#allocation15 + $0x588] sm:$0xff]  ;;  %2377 = vmatpush.msra.mxu1 %v2271_v36  ;;  %2417 = vmatpush.msra.mxu3 %v2272_v37  ;;  %v2169_v22 = vld [vmem:[#allocation15 + $0x290] sm:$0xff] }
 0x1a8   : > { %v2127_v42 = vld [vmem:[#allocation15 + $0x140] sm:$0xff]  ;;  %v2128_v43 = vld [vmem:[#allocation15 + $0x148] sm:$0xff]  ;;  %2358 = vmatpush.msra.mxu0 %v2135_v38  ;;  %2398 = vmatpush.msra.mxu2 %v2136_v39  ;;  %v2305_v23 = vld [vmem:[#allocation15 + $0x6d0] sm:$0xff] }
 0x1a9   : > { %v2255_v44 = vld [vmem:[#allocation15 + $0x540] sm:$0xff]  ;;  %v2256_v45 = vld [vmem:[#allocation15 + $0x548] sm:$0xff]  ;;  %2378 = vmatpush.msra.mxu1 %v2263_v40  ;;  %2418 = vmatpush.msra.mxu3 %v2264_v41  ;;  %v2170_v24 = vld [vmem:[#allocation15 + $0x298] sm:$0xff] }
 0x1aa   : > { %v2119_v46 = vld [vmem:[#allocation15 + $0x100] sm:$0xff]  ;;  %v2120_v47 = vld [vmem:[#allocation15 + $0x108] sm:$0xff]  ;;  %2359 = vmatpush.msra.mxu0 %v2127_v42  ;;  %2399 = vmatpush.msra.mxu2 %v2128_v43  ;;  %v2306_v25 = vld [vmem:[#allocation15 + $0x6d8] sm:$0xff] }
 0x1ab   : > { %v2247_v48 = vld [vmem:[#allocation15 + $0x500] sm:$0xff]  ;;  %v2248_v49 = vld [vmem:[#allocation15 + $0x508] sm:$0xff]  ;;  %2379 = vmatpush.msra.mxu1 %v2255_v44  ;;  %2419 = vmatpush.msra.mxu3 %v2256_v45  ;;  %v2161_v26 = vld [vmem:[#allocation15 + $0x250] sm:$0xff] }
 0x1ac   : > { %v2111_v50 = vld [vmem:[#allocation15 + $0xc0] sm:$0xff]  ;;  %v2112_v51 = vld [vmem:[#allocation15 + $0xc8] sm:$0xff]  ;;  %2360 = vmatpush.msra.mxu0 %v2119_v46  ;;  %2400 = vmatpush.msra.mxu2 %v2120_v47  ;;  %v2297_v27 = vld [vmem:[#allocation15 + $0x690] sm:$0xff] }
 0x1ad   : > { %v2239_v52 = vld [vmem:[#allocation15 + $0x4c0] sm:$0xff]  ;;  %v2240_v53 = vld [vmem:[#allocation15 + $0x4c8] sm:$0xff]  ;;  %2380 = vmatpush.msra.mxu1 %v2247_v48  ;;  %2420 = vmatpush.msra.mxu3 %v2248_v49  ;;  %v2162_v28 = vld [vmem:[#allocation15 + $0x258] sm:$0xff] }
 0x1ae   : > { %v2103_v54 = vld [vmem:[#allocation15 + $0x80] sm:$0xff]  ;;  %v2104_v55 = vld [vmem:[#allocation15 + $0x88] sm:$0xff]  ;;  %2361 = vmatpush.msra.mxu0 %v2111_v50  ;;  %2401 = vmatpush.msra.mxu2 %v2112_v51  ;;  %v2298_v14 = vld [vmem:[#allocation15 + $0x698] sm:$0xff] }
 0x1af   : > { %v2231_v56 = vld [vmem:[#allocation15 + $0x480] sm:$0xff]  ;;  %v2232_v57 = vld [vmem:[#allocation15 + $0x488] sm:$0xff]  ;;  %2381 = vmatpush.msra.mxu1 %v2239_v52  ;;  %2421 = vmatpush.msra.mxu3 %v2240_v53  ;;  %v2086_v16 = vld [vmem:[#allocation11] sm:$0xf] }
 0x1b0   : > { %v2095_v58 = vld [vmem:[#allocation15 + $0x40] sm:$0xff]  ;;  %v2096_v59 = vld [vmem:[#allocation15 + $0x48] sm:$0xff]  ;;  %2362 = vmatpush.msra.mxu0 %v2103_v54  ;;  %2402 = vmatpush.msra.mxu2 %v2104_v55  ;;  %v2153_v29 = vld [vmem:[#allocation15 + $0x210] sm:$0xff]  ;;  %2344 = vst [vmem:[#allocation1] ss:$4 sm:$0xff] %v2086_v16 }
 0x1b1   : > { %v2223_v60 = vld [vmem:[#allocation15 + $0x440] sm:$0xff]  ;;  %v2224_v61 = vld [vmem:[#allocation15 + $0x448] sm:$0xff]  ;;  %2382 = vmatpush.msra.mxu1 %v2231_v56  ;;  %2422 = vmatpush.msra.mxu3 %v2232_v57  ;;  %v2289_v30 = vld [vmem:[#allocation15 + $0x650] sm:$0xff] }
 0x1b2   : > { %v2087_v62 = vld [vmem:[#allocation15] sm:$0xff]  ;;  %v2088_v63 = vld [vmem:[#allocation15 + $0x8] sm:$0xff]  ;;  %2363 = vmatpush.msra.mxu0 %v2095_v58  ;;  %2403 = vmatpush.msra.mxu2 %v2096_v59  ;;  %v2154_v32 = vld [vmem:[#allocation15 + $0x218] sm:$0xff] }
 0x1b3   : > { %2383 = vmatpush.msra.mxu1 %v2223_v60  ;;  %2423 = vmatpush.msra.mxu3 %v2224_v61  ;;  %v2215_v2 = vld [vmem:[#allocation15 + $0x400] sm:$0xff]  ;;  %v2216_v3 = vld [vmem:[#allocation15 + $0x408] sm:$0xff]  ;;  %v2290_v33 = vld [vmem:[#allocation15 + $0x658] sm:$0xff] }
 0x1b4   : > { %2364 = vmatpush.msra.mxu0 %v2087_v62  ;;  %2404 = vmatpush.msra.mxu2 %v2088_v63  ;;  %v1734_v31 = vld [vmem:[#allocation8] sm:$0xff]  ;;  %v2146_v44 = vld [vmem:[#allocation15 + $0x1d8] sm:$0xff]  ;;  %v1733_v57 = vld [vmem:[#allocation2 + $0x8] sm:$0xff] }
 0x1b5   : > { %2384 = vmatpush.msra.mxu1 %v2215_v2  ;;  %2424 = vmatpush.msra.mxu3 %v2216_v3  ;;  %v1736_v34 = vperm.slane %v1734_v31, 0  ;;  %v1737_v35 = vperm.slane %v1734_v31, 1  ;;  %v1738_v36 = vperm.slane %v1734_v31, 2  ;;  %v1739_v37 = vperm.slane %v1734_v31, 3  ;;  %v2145_v38 = vld [vmem:[#allocation15 + $0x1d0] sm:$0xff]  ;;  %v2282_v45 = vld [vmem:[#allocation15 + $0x618] sm:$0xff] }
 0x1b6   : > { %2429 = vmatpush.msrb.mxu0 %v2209_v0  ;;  %2469 = vmatpush.msrb.mxu2 %v2210_v1  ;;  %v2281_v39 = vld [vmem:[#allocation15 + $0x610] sm:$0xff]  ;;  %v1740_v40 = vperm.slane %v1734_v31, 4  ;;  %v1741_v41 = vperm.slane %v1734_v31, 5  ;;  %v1742_v42 = vperm.slane %v1734_v31, 6  ;;  %v1743_v43 = vperm.slane %v1734_v31, 7  ;;  %v1732_v51 = vld [vmem:[#allocation2] sm:$0xff] }
 0x1b7   : > { %2449 = vmatpush.msrb.mxu1 %v2337_v5  ;;  %2489 = vmatpush.msrb.mxu3 %v2338_v7  ;;  %v1744_v46 = vrot.slane %v1737_v35, 6  ;;  %v1745_v47 = vrot.slane %v1738_v36, 4  ;;  %v1746_v48 = vrot.slane %v1739_v37, 2  ;;  %v2137_v49 = vld [vmem:[#allocation15 + $0x190] sm:$0xff]  ;;  %v2138_v55 = vld [vmem:[#allocation15 + $0x198] sm:$0xff]  ;;  %v2211_v36 = vld [vmem:[#allocation15 + $0x3e0] sm:$0xff] }
 0x1b8   : > { %2430 = vmatpush.msrb.mxu0 %v2201_v4  ;;  %2470 = vmatpush.msrb.mxu2 %v2202_v6  ;;  %v2273_v50 = vld [vmem:[#allocation15 + $0x5d0] sm:$0xff]  ;;  %v1747_v52 = vrot.slane %v1741_v41, 6  ;;  %v1748_v53 = vrot.slane %v1742_v42, 4  ;;  %v1749_v54 = vrot.slane %v1743_v43, 2  ;;  %v2274_v56 = vld [vmem:[#allocation15 + $0x5d8] sm:$0xff]  ;;  %v2203_v43 = vld [vmem:[#allocation15 + $0x3a0] sm:$0xff] }
 0x1b9   : > { %2450 = vmatpush.msrb.mxu1 %v2329_v9  ;;  %2490 = vmatpush.msrb.mxu3 %v2330_v11  ;;  %v1750_v58 = vsel %vm1713_vm0, %v1736_v34, %v1744_v46  ;;  %v1751_v59 = vsel %vm1715_vm1, %v1745_v47, %v1746_v48  ;;  %v2129_v60 = vld [vmem:[#allocation15 + $0x150] sm:$0xff]  ;;  %v2130_v1 = vld [vmem:[#allocation15 + $0x158] sm:$0xff]  ;;  %v2340_v46 = vld [vmem:[#allocation15 + $0x7e8] sm:$0xff] }
 0x1ba   : > { %2431 = vmatpush.msrb.mxu0 %v2193_v8  ;;  %2471 = vmatpush.msrb.mxu2 %v2194_v10  ;;  %v2265_v61 = vld [vmem:[#allocation15 + $0x590] sm:$0xff]  ;;  %v1752_v62 = vsel %vm1717_vm2, %v1750_v58, %v1751_v59  ;;  %v1753_v63 = vsel %vm1713_vm0, %v1740_v40, %v1747_v52  ;;  %v1754_v0 = vsel %vm1715_vm1, %v1748_v53, %v1749_v54  ;;  %v2266_v2 = vld [vmem:[#allocation15 + $0x598] sm:$0xff]  ;;  %v2195_v47 = vld [vmem:[#allocation15 + $0x360] sm:$0xff] }
 0x1bb   : > { %2451 = vmatpush.msrb.mxu1 %v2321_v13  ;;  %2491 = vmatpush.msrb.mxu3 %v2322_v17  ;;  %v1755_v3 = vsel %vm1717_vm2, %v1753_v63, %v1754_v0  ;;  %v1758_v4 = vadd.f32 %v1752_v62, %v1732_v51  ;;  %v2121_v5 = vld [vmem:[#allocation15 + $0x110] sm:$0xff]  ;;  %v2122_v8 = vld [vmem:[#allocation15 + $0x118] sm:$0xff]  ;;  %v2331_v48 = vld [vmem:[#allocation15 + $0x7a0] sm:$0xff] }
 0x1bc   : > { %2432 = vmatpush.msrb.mxu0 %v2185_v12  ;;  %2472 = vmatpush.msrb.mxu2 %v2186_v15  ;;  %v2257_v6 = vld [vmem:[#allocation15 + $0x550] sm:$0xff]  ;;  %v5783_v7 = vadd.f32 %v1755_v3, %v1733_v57  ;;  %v2258_v9 = vld [vmem:[#allocation15 + $0x558] sm:$0xff]  ;;  %v2187_v52 = vld [vmem:[#allocation15 + $0x320] sm:$0xff] }
 0x1bd   : > { %2452 = vmatpush.msrb.mxu1 %v2313_v19  ;;  %2492 = vmatpush.msrb.mxu3 %v2314_v21  ;;  %v4263_v10 = vmul.f32 -1.442695, %v1758_v4  ;;  %v1781_v11 = vrot.slane %v1758_v4, 4  ;;  %v2113_v12 = vld [vmem:[#allocation15 + $0xd0] sm:$0xff]  ;;  %v2114_v17 = vld [vmem:[#allocation15 + $0xd8] sm:$0xff]  ;;  %v2323_v53 = vld [vmem:[#allocation15 + $0x760] sm:$0xff] }
 0x1be   : > { %2433 = vmatpush.msrb.mxu0 %v2177_v18  ;;  %2473 = vmatpush.msrb.mxu2 %v2178_v20  ;;  %v2249_v13 = vld [vmem:[#allocation15 + $0x510] sm:$0xff]  ;;  %v1804_v15 = vrot.slane %v5783_v7, 4  ;;  %v2250_v18 = vld [vmem:[#allocation15 + $0x518] sm:$0xff]  ;;  %v2324_v57 = vld [vmem:[#allocation15 + $0x768] sm:$0xff] }
 0x1bf   : > { %2453 = vmatpush.msrb.mxu1 %v2305_v23  ;;  %2493 = vmatpush.msrb.mxu3 %v2306_v25  ;;  %4595 = vpow2.f32 %v4263_v10  ;;  %v4264_v19 = vmul.f32 -1.442695, %v1781_v11  ;;  %v2105_v20 = vld [vmem:[#allocation15 + $0x90] sm:$0xff]  ;;  %v2106_v23 = vld [vmem:[#allocation15 + $0x98] sm:$0xff]  ;;  %v2179_v58 = vld [vmem:[#allocation15 + $0x2e0] sm:$0xff] }
 0x1c0   : > { %2434 = vmatpush.msrb.mxu0 %v2169_v22  ;;  %2474 = vmatpush.msrb.mxu2 %v2170_v24  ;;  %v2241_v21 = vld [vmem:[#allocation15 + $0x4d0] sm:$0xff]  ;;  %v4265_v22 = vmul.f32 -1.442695, %v1804_v15  ;;  %v2242_v24 = vld [vmem:[#allocation15 + $0x4d8] sm:$0xff]  ;;  %v2315_v59 = vld [vmem:[#allocation15 + $0x720] sm:$0xff] }
 0x1c1   : > { %2454 = vmatpush.msrb.mxu1 %v2297_v27  ;;  %2494 = vmatpush.msrb.mxu3 %v2298_v14  ;;  %4597 = vpow2.f32 %v4264_v19  ;;  %v2097_v25 = vld [vmem:[#allocation15 + $0x50] sm:$0xff]  ;;  %v2098_v27 = vld [vmem:[#allocation15 + $0x58] sm:$0xff]  ;;  %v2180_v63 = vld [vmem:[#allocation15 + $0x2e8] sm:$0xff] }
 0x1c2   : > { %2435 = vmatpush.msrb.mxu0 %v2161_v26  ;;  %2475 = vmatpush.msrb.mxu2 %v2162_v28  ;;  %v2233_v26 = vld [vmem:[#allocation15 + $0x490] sm:$0xff]  ;;  %4599 = vpow2.f32 %v4265_v22  ;;  %v2234_v28 = vld [vmem:[#allocation15 + $0x498] sm:$0xff]  ;;  %v2316_v0 = vld [vmem:[#allocation15 + $0x728] sm:$0xff] }
 0x1c3   : > { %2455 = vmatpush.msrb.mxu1 %v2289_v30  ;;  %2495 = vmatpush.msrb.mxu3 %v2290_v33  ;;  %v2089_v14 = vld [vmem:[#allocation15 + $0x10] sm:$0xff]  ;;  %v2090_v30 = vld [vmem:[#allocation15 + $0x18] sm:$0xff]  ;;  %v2171_v3 = vld [vmem:[#allocation15 + $0x2a0] sm:$0xff] }
 0x1c4   : > { %2436 = vmatpush.msrb.mxu0 %v2153_v29  ;;  %2476 = vmatpush.msrb.mxu2 %v2154_v32  ;;  %v2225_v16 = vld [vmem:[#allocation15 + $0x450] sm:$0xff]  ;;  %v2226_v31 = vld [vmem:[#allocation15 + $0x458] sm:$0xff]  ;;  %v2307_v4 = vld [vmem:[#allocation15 + $0x6e0] sm:$0xff] }
 0x1c5   : > { %2456 = vmatpush.msrb.mxu1 %v2281_v39  ;;  %2496 = vmatpush.msrb.mxu3 %v2282_v45  ;;  %v4596_v29 = vpop.eup %4595  ;;  %v5786_v32 = vld.sshfl [vmem:[#allocation1] sm:$0xff pattern:$0x73625140]  ;;  %v5790_v35 = vld.sshfl [vmem:[#allocation1 + $0x8] sm:$0xff pattern:$0x73625140] }
 0x1c6   : > { %2437 = vmatpush.msrb.mxu0 %v2145_v38  ;;  %2477 = vmatpush.msrb.mxu2 %v2146_v44  ;;  %v5788_v33 = vadd.f32 1.0, %v4596_v29  ;;  %v2212_v38 = vld [vmem:[#allocation15 + $0x3e8] sm:$0xff]  ;;  %v2217_v39 = vld [vmem:[#allocation15 + $0x410] sm:$0xff]  ;;  %v2218_v42 = vld [vmem:[#allocation15 + $0x418] sm:$0xff] }
 0x1c7   : > { %2457 = vmatpush.msrb.mxu1 %v2273_v50  ;;  %2497 = vmatpush.msrb.mxu3 %v2274_v56  ;;  %v4598_v34 = vpop.eup %4597  ;;  %v2339_v44 = vld [vmem:[#allocation15 + $0x7e0] sm:$0xff]  ;;  %v2204_v45 = vld [vmem:[#allocation15 + $0x3a8] sm:$0xff] }
 0x1c8   : > { %2438 = vmatpush.msrb.mxu0 %v2137_v49  ;;  %2478 = vmatpush.msrb.mxu2 %v2138_v55  ;;  %v4600_v37 = vpop.eup %4599  ;;  %4601 = vrcp.f32 %v5788_v33  ;;  %v5795_v40 = vadd.f32 1.0, %v4598_v34  ;;  %v2196_v49 = vld [vmem:[#allocation15 + $0x368] sm:$0xff]  ;;  %v1776_v55 = vand.u32 2147483648, %v5788_v33  ;;  %vm1770_vm3 = vweird.f32 %v5788_v33  ;;  %v2163_v15 = vld [vmem:[#allocation15 + $0x260] sm:$0xff] }
 0x1c9   : > { %2458 = vmatpush.msrb.mxu1 %v2265_v61  ;;  %2498 = vmatpush.msrb.mxu3 %v2266_v2  ;;  %v5797_v41 = vadd.f32 1.0, %v4600_v37  ;;  %v2332_v50 = vld [vmem:[#allocation15 + $0x7a8] sm:$0xff]  ;;  %v1774_v62 = vand.u32 2147483647, %v5788_v33  ;;  %v2147_v34 = vld [vmem:[#allocation15 + $0x1e0] sm:$0xff] }
 0x1ca   : > { %2439 = vmatpush.msrb.mxu0 %v2129_v60  ;;  %2479 = vmatpush.msrb.mxu2 %v2130_v1  ;;  %4603 = vrcp.f32 %v5795_v40  ;;  %v2188_v56 = vld [vmem:[#allocation15 + $0x328] sm:$0xff]  ;;  %vm1792_vm6 = vweird.f32 %v5795_v40  ;;  %v1760_v37 = vld [vmem:[#allocation9] sm:$0xf]  ;;  %v2235_v11 = vld [vmem:[#allocation15 + $0x4a0] sm:$0xff] }
 0x1cb   : > { %2459 = vmatpush.msrb.mxu1 %v2257_v6  ;;  %2499 = vmatpush.msrb.mxu3 %v2258_v9  ;;  %4605 = vrcp.f32 %v5797_v41  ;;  %v1777_v6 = vor.u32 1.1754944e-38, %v1776_v55  ;;  %v2172_v9 = vld [vmem:[#allocation15 + $0x2a8] sm:$0xff]  ;;  %vm5834_vm8 = vcmp.eq.f32.partialorder %v1774_v62, 8.507059e+37  ;;  %vm1815_vm11 = vweird.f32 %v5797_v41 }
 0x1cc   : > { %2440 = vmatpush.msrb.mxu0 %v2121_v5  ;;  %2480 = vmatpush.msrb.mxu2 %v2122_v8  ;;  %4607 = vtanh.f32 %v5783_v7  ;;  %v1798_v7 = vand.u32 2147483648, %v5795_v40  ;;  %v2308_v10 = vld [vmem:[#allocation15 + $0x6e8] sm:$0xff] }
 0x1cd   : > { %2460 = vmatpush.msrb.mxu1 %v2249_v13  ;;  %2500 = vmatpush.msrb.mxu3 %v2250_v18  ;;  %v1796_v13 = vand.u32 2147483647, %v5795_v40  ;;  %v2300_v22 = vld [vmem:[#allocation15 + $0x6a8] sm:$0xff] }
 0x1ce   : > { %2441 = vmatpush.msrb.mxu0 %v2113_v12  ;;  %2481 = vmatpush.msrb.mxu2 %v2114_v17  ;;  %v5803_v51 = vpop.eup %4601  ;;  %v2299_v17 = vld [vmem:[#allocation15 + $0x6a0] sm:$0xff]  ;;  %v2292_v29 = vld [vmem:[#allocation15 + $0x668] sm:$0xff] }
 0x1cf   : > { %2461 = vmatpush.msrb.mxu1 %v2241_v21  ;;  %2501 = vmatpush.msrb.mxu3 %v2242_v24  ;;  %v1766_v54 = vmul.f32 %v5803_v51, %v5788_v33  ;;  %vm1771_vm4 = vweird.f32 %v5803_v51  ;;  %v2164_v21 = vld [vmem:[#allocation15 + $0x268] sm:$0xff]  ;;  %vm5853_vm10 = vcmp.eq.f32.partialorder %v1796_v13, 8.507059e+37  ;;  %v2325_v33 = vld [vmem:[#allocation15 + $0x770] sm:$0xff] }
 0x1d0   : > { %2442 = vmatpush.msrb.mxu0 %v2105_v20  ;;  %2482 = vmatpush.msrb.mxu2 %v2106_v23  ;;  %v5809_v60 = vpop.eup %4603  ;;  %vm5826_vm5 = vmor %vm1770_vm3, %vm1771_vm4  ;;  %v2132_v55 = vld [vmem:[#allocation15 + $0x168] sm:$0xff] }
 0x1d1   : > { %2462 = vmatpush.msrb.mxu1 %v2233_v26  ;;  %2502 = vmatpush.msrb.mxu3 %v2234_v28  ;;  %v1767_v61 = vsub.f32 1.0, %v1766_v54  ;;  %v5814_v1 = vpop.eup %4605  ;;  %v1788_v2 = vmul.f32 %v5809_v60, %v5795_v40  ;;  %vm1793_vm7 = vweird.f32 %v5809_v60  ;;  %v2291_v26 = vld [vmem:[#allocation15 + $0x660] sm:$0xff]  ;;  %v2284_v40 = vld [vmem:[#allocation15 + $0x628] sm:$0xff]  ;;  %v1819_v54 = vand.u32 2147483647, %v5797_v41  ;;  %v2342_v28 = vld [vmem:[#allocation15 + $0x7f8] sm:$0xff] }
 0x1d2   : > { %2443 = vmatpush.msrb.mxu0 %v2097_v25  ;;  %2483 = vmatpush.msrb.mxu2 %v2098_v27  ;;  %v1811_v8 = vmul.f32 %v5814_v1, %v5797_v41  ;;  %v4608_v23 = vpop.eup %4607  ;;  %v2155_v25 = vld [vmem:[#allocation15 + $0x220] sm:$0xff]  ;;  %vm5846_vm9 = vmor %vm1792_vm6, %vm1793_vm7  ;;  %vm1816_vm12 = vweird.f32 %v5814_v1  ;;  %v2260_v62 = vld [vmem:[#allocation15 + $0x568] sm:$0xff] }
 0x1d3   : > { %2463 = vmatpush.msrb.mxu1 %v2225_v16  ;;  %2503 = vmatpush.msrb.mxu3 %v2226_v31  ;;  %v1768_v5 = vmul.f32 %v5803_v51, %v1767_v61  ;;  %v1789_v12 = vsub.f32 1.0, %v1788_v2  ;;  %v2156_v16 = vld [vmem:[#allocation15 + $0x228] sm:$0xff]  ;;  %vm5872_vm13 = vmor %vm1815_vm11, %vm1816_vm12  ;;  %vm1820_vm14 = vcmp.eq.f32.partialorder %v1819_v54, 8.507059e+37  ;;  %v2149_v54 = vld [vmem:[#allocation15 + $0x1f0] sm:$0xff] }
 0x1d4   : > { %2444 = vmatpush.msrb.mxu0 %v2089_v14  ;;  %2484 = vmatpush.msrb.mxu2 %v2090_v30  ;;  %v1812_v20 = vsub.f32 1.0, %v1811_v8  ;;  %v1799_v14 = vor.u32 1.1754944e-38, %v1798_v7  ;;  %v2124_v61 = vld [vmem:[#allocation15 + $0x128] sm:$0xff] }
 0x1d5   : > { %2365 = vmatmul.f32.vlgmr.msra.gmra.mxu0 %v5786_v32  ;;  %2405 = vmatmul.f32.vlgmr.msra.gmra.mxu2 %v5786_v32  ;;  %v1769_v18 = vadd.f32 %v5803_v51, %v1768_v5  ;;  %v1790_v24 = vmul.f32 %v5809_v60, %v1789_v12  ;;  %v2107_v5 = vld [vmem:[#allocation15 + $0xa0] sm:$0xff]  ;;  %v2108_v7 = vld [vmem:[#allocation15 + $0xa8] sm:$0xff] }
 0x1d6   : > { %2425 = vmatmul.f32.vlgmr.msra.gmra.mxu3 %v5790_v35  ;;  %2509 = vmatpush.msra.mxu0 %v2211_v36  ;;  %v2283_v36 = vld [vmem:[#allocation15 + $0x620] sm:$0xff]  ;;  %v2244_v8 = vld [vmem:[#allocation15 + $0x4e8] sm:$0xff] }
 0x1d7   : > { %2549 = vmatpush.msra.mxu2 %v2212_v38  ;;  %2464 = vmatpush.msrb.mxu1 %v2217_v39  ;;  %v1773_v27 = vsel %vm5826_vm5, %v5803_v51, %v1769_v18  ;;  %v1791_v31 = vadd.f32 %v5809_v60, %v1790_v24  ;;  %v1813_v38 = vmul.f32 %v5814_v1, %v1812_v20  ;;  %v2148_v39 = vld [vmem:[#allocation15 + $0x1e8] sm:$0xff]  ;;  %v2131_v51 = vld [vmem:[#allocation15 + $0x160] sm:$0xff] }
 0x1d8   : > { %2504 = vmatpush.msrb.mxu3 %v2218_v42  ;;  %2385 = vmatmul.f32.vlgmr.msra.gmra.mxu1 %v5790_v35  ;;  %v1778_v30 = vsel %vm5834_vm8, %v1777_v6, %v1773_v27  ;;  %v2243_v6 = vld [vmem:[#allocation15 + $0x4e0] sm:$0xff]  ;;  %v2236_v12 = vld [vmem:[#allocation15 + $0x4a8] sm:$0xff]  ;;  %v2206_v27 = vld [vmem:[#allocation15 + $0x3b8] sm:$0xff] }
 0x1d9   : > { %2510 = vmatpush.msra.mxu0 %v2203_v43  ;;  %2529 = vmatpush.msra.mxu1 %v2339_v44  ;;  %v1795_v42 = vsel %vm5846_vm9, %v5809_v60, %v1791_v31  ;;  %v1826_v43 = vmul.f32 %v4608_v23, %v1778_v30  ;;  %v2139_v44 = vld [vmem:[#allocation15 + $0x1a0] sm:$0xff]  ;;  %v2092_v19 = vld [vmem:[#allocation15 + $0x28] sm:$0xff]  ;;  %v2334_v30 = vld [vmem:[#allocation15 + $0x7b8] sm:$0xff] }
 0x1da   : > { %2550 = vmatpush.msra.mxu2 %v2204_v45  ;;  %2569 = vmatpush.msra.mxu3 %v2340_v46  ;;  %v2275_v45 = vld [vmem:[#allocation15 + $0x5e0] sm:$0xff]  ;;  %v1800_v46 = vsel %vm5853_vm10, %v1799_v14, %v1795_v42  ;;  %v2228_v20 = vld [vmem:[#allocation15 + $0x468] sm:$0xff]  ;;  %v2197_v14 = vld [vmem:[#allocation15 + $0x370] sm:$0xff] }
 0x1db   : > { %2511 = vmatpush.msra.mxu0 %v2195_v47  ;;  %2530 = vmatpush.msra.mxu1 %v2331_v48  ;;  %v2140_v47 = vld [vmem:[#allocation15 + $0x1a8] sm:$0xff]  ;;  %v2259_v60 = vld [vmem:[#allocation15 + $0x560] sm:$0xff]  ;;  %v2189_v31 = vld [vmem:[#allocation15 + $0x330] sm:$0xff] }
 0x1dc   : > { %2551 = vmatpush.msra.mxu2 %v2196_v49  ;;  %2570 = vmatpush.msra.mxu3 %v2332_v50  ;;  %v2276_v48 = vld [vmem:[#allocation15 + $0x5e8] sm:$0xff]  ;;  %v1821_v49 = vand.u32 2147483648, %v5797_v41  ;;  %v1825_v50 = vmul.f32 %v1800_v46, %v1760_v37  ;;  %v2251_v41 = vld [vmem:[#allocation15 + $0x520] sm:$0xff]  ;;  %v2181_v37 = vld [vmem:[#allocation15 + $0x2f0] sm:$0xff] }
 0x1dd   : > { %2512 = vmatpush.msra.mxu0 %v2187_v52  ;;  %2531 = vmatpush.msra.mxu1 %v2323_v53  ;;  %v2267_v52 = vld [vmem:[#allocation15 + $0x5a0] sm:$0xff]  ;;  %v1814_v53 = vadd.f32 %v5814_v1, %v1813_v38  ;;  %v2220_v24 = vld [vmem:[#allocation15 + $0x428] sm:$0xff]  ;;  %v2317_v38 = vld [vmem:[#allocation15 + $0x730] sm:$0xff] }
 0x1de   : > { %2552 = vmatpush.msra.mxu2 %v2188_v56  ;;  %2571 = vmatpush.msra.mxu3 %v2324_v57  ;;  %v2268_v56 = vld [vmem:[#allocation15 + $0x5a8] sm:$0xff]  ;;  %v2219_v23 = vld [vmem:[#allocation15 + $0x420] sm:$0xff]  ;;  %v2173_v42 = vld [vmem:[#allocation15 + $0x2b0] sm:$0xff] }
 0x1df   : > { %2513 = vmatpush.msra.mxu0 %v2179_v58  ;;  %2532 = vmatpush.msra.mxu1 %v2315_v59  ;;  %v1827_v58 = vadd.f32 %v1826_v43, %v1825_v50  ;;  %v2123_v59 = vld [vmem:[#allocation15 + $0x120] sm:$0xff]  ;;  %v1818_v2 = vsel %vm5872_vm13, %v5814_v1, %v1814_v53  ;;  %v2100_v1 = vld [vmem:[#allocation15 + $0x68] sm:$0xff]  ;;  %v2309_v43 = vld [vmem:[#allocation15 + $0x6f0] sm:$0xff] }
 0x1e0   : > { %2553 = vmatpush.msra.mxu2 %v2180_v63  ;;  %2572 = vmatpush.msra.mxu3 %v2316_v0  ;;  %v1822_v63 = vor.u32 1.1754944e-38, %v1821_v49  ;;  %v2115_v0 = vld [vmem:[#allocation15 + $0xe0] sm:$0xff]  ;;  %v2165_v46 = vld [vmem:[#allocation15 + $0x270] sm:$0xff]  ;;  %v2302_v49 = vld [vmem:[#allocation15 + $0x6b8] sm:$0xff] }
 0x1e1   : > { %2514 = vmatpush.msra.mxu0 %v2171_v3  ;;  %2533 = vmatpush.msra.mxu1 %v2307_v4  ;;  %4609 = vtanh.f32 %v1827_v58  ;;  %3470 = vst [vmem:[#allocation27] sm:$0xf] %v1827_v58  ;;  %v2116_v3 = vld [vmem:[#allocation15 + $0xe8] sm:$0xff]  ;;  %v2157_v50 = vld [vmem:[#allocation15 + $0x230] sm:$0xff]  ;;  %v2294_v53 = vld [vmem:[#allocation15 + $0x678] sm:$0xff] }
 0x1e2   : > { %2554 = vmatpush.msra.mxu2 %v2172_v9  ;;  %2573 = vmatpush.msra.mxu3 %v2308_v10  ;;  %v2252_v4 = vld [vmem:[#allocation15 + $0x528] sm:$0xff]  ;;  %v1823_v9 = vsel %vm1820_vm14, %v1822_v63, %v1818_v2  ;;  %v2099_v10 = vld [vmem:[#allocation15 + $0x60] sm:$0xff]  ;;  %v2286_v57 = vld [vmem:[#allocation15 + $0x638] sm:$0xff] }
 0x1e3   : > { %2515 = vmatpush.msra.mxu0 %v2163_v15  ;;  %2534 = vmatpush.msra.mxu1 %v2299_v17  ;;  %v2091_v15 = vld [vmem:[#allocation15 + $0x20] sm:$0xff]  ;;  %v2141_v58 = vld [vmem:[#allocation15 + $0x1b0] sm:$0xff] }
 0x1e4   : > { %2555 = vmatpush.msra.mxu2 %v2164_v21  ;;  %2574 = vmatpush.msra.mxu3 %v2300_v22  ;;  %v2227_v17 = vld [vmem:[#allocation15 + $0x460] sm:$0xff]  ;;  %v2213_v21 = vld [vmem:[#allocation15 + $0x3f0] sm:$0xff]  ;;  %v2214_v22 = vld [vmem:[#allocation15 + $0x3f8] sm:$0xff] }
 0x1e5   : > { %2516 = vmatpush.msra.mxu0 %v2155_v25  ;;  %2535 = vmatpush.msra.mxu1 %v2291_v26  ;;  %v2205_v25 = vld [vmem:[#allocation15 + $0x3b0] sm:$0xff] }
 0x1e6   : > { %2556 = vmatpush.msra.mxu2 %v2156_v16  ;;  %2575 = vmatpush.msra.mxu3 %v2292_v29  ;;  %v2341_v26 = vld [vmem:[#allocation15 + $0x7f0] sm:$0xff]  ;;  %v2198_v29 = vld [vmem:[#allocation15 + $0x378] sm:$0xff] }
 0x1e7   : > { %2517 = vmatpush.msra.mxu0 %v2147_v34  ;;  %2536 = vmatpush.msra.mxu1 %v2283_v36  ;;  %v4610_v13 = vpop.eup %4609  ;;  %v2333_v16 = vld [vmem:[#allocation15 + $0x7b0] sm:$0xff]  ;;  %v2190_v34 = vld [vmem:[#allocation15 + $0x338] sm:$0xff] }
 0x1e8   : > { %2557 = vmatpush.msra.mxu2 %v2148_v39  ;;  %2576 = vmatpush.msra.mxu3 %v2284_v40  ;;  %v1829_v18 = vmul.f32 %v4610_v13, %v1823_v9  ;;  %v2326_v36 = vld [vmem:[#allocation15 + $0x778] sm:$0xff]  ;;  %v2269_v63 = vld [vmem:[#allocation15 + $0x5b0] sm:$0xff] }
 0x1e9   : > { %2518 = vmatpush.msra.mxu0 %v2139_v44  ;;  %2537 = vmatpush.msra.mxu1 %v2275_v45  ;;  %v2182_v39 = vld [vmem:[#allocation15 + $0x2f8] sm:$0xff]  ;;  %v2125_v2 = vld [vmem:[#allocation15 + $0x130] sm:$0xff] }
 0x1ea   : > { %2558 = vmatpush.msra.mxu2 %v2140_v47  ;;  %2577 = vmatpush.msra.mxu3 %v2276_v48  ;;  %2670 = vst [vmem:[#allocation1] ss:$4 sm:$0xff] %v1829_v18  ;;  %v2318_v40 = vld [vmem:[#allocation15 + $0x738] sm:$0xff]  ;;  %v2301_v47 = vld [vmem:[#allocation15 + $0x6b0] sm:$0xff] }
 0x1eb   : > { %2519 = vmatpush.msra.mxu0 %v2131_v51  ;;  %2538 = vmatpush.msra.mxu1 %v2267_v52  ;;  %3462 = vst [vmem:[#allocation25] sm:$0xf] %v1829_v18  ;;  %v2174_v44 = vld [vmem:[#allocation15 + $0x2b8] sm:$0xff]  ;;  %v2293_v51 = vld [vmem:[#allocation15 + $0x670] sm:$0xff] }
 0x1ec   : > { %2559 = vmatpush.msra.mxu2 %v2132_v55  ;;  %2578 = vmatpush.msra.mxu3 %v2268_v56  ;;  %v2310_v45 = vld [vmem:[#allocation15 + $0x6f8] sm:$0xff]  ;;  %v2285_v55 = vld [vmem:[#allocation15 + $0x630] sm:$0xff] }
 0x1ed   : > { %2520 = vmatpush.msra.mxu0 %v2123_v59  ;;  %2539 = vmatpush.msra.mxu1 %v2259_v60  ;;  %v2166_v48 = vld [vmem:[#allocation15 + $0x278] sm:$0xff]  ;;  %v2277_v59 = vld [vmem:[#allocation15 + $0x5f0] sm:$0xff] }
 0x1ee   : > { %2560 = vmatpush.msra.mxu2 %v2124_v61  ;;  %2579 = vmatpush.msra.mxu3 %v2260_v62  ;;  %v2158_v52 = vld [vmem:[#allocation15 + $0x238] sm:$0xff]  ;;  %v2133_v62 = vld [vmem:[#allocation15 + $0x170] sm:$0xff] }
 0x1ef   : > { %2521 = vmatpush.msra.mxu0 %v2115_v0  ;;  %2540 = vmatpush.msra.mxu1 %v2251_v41  ;;  %v2150_v56 = vld [vmem:[#allocation15 + $0x1f8] sm:$0xff]  ;;  %v2101_v13 = vld [vmem:[#allocation15 + $0x70] sm:$0xff] }
 0x1f0   : > { %2561 = vmatpush.msra.mxu2 %v2116_v3  ;;  %2580 = vmatpush.msra.mxu3 %v2252_v4  ;;  %v2142_v60 = vld [vmem:[#allocation15 + $0x1b8] sm:$0xff]  ;;  %v2261_v3 = vld [vmem:[#allocation15 + $0x570] sm:$0xff] }
 0x1f1   : > { %2522 = vmatpush.msra.mxu0 %v2107_v5  ;;  %2541 = vmatpush.msra.mxu1 %v2243_v6  ;;  %v2278_v61 = vld [vmem:[#allocation15 + $0x5f8] sm:$0xff]  ;;  %v2117_v6 = vld [vmem:[#allocation15 + $0xf0] sm:$0xff] }
 0x1f2   : > { %2562 = vmatpush.msra.mxu2 %v2108_v7  ;;  %2581 = vmatpush.msra.mxu3 %v2244_v8  ;;  %v2134_v0 = vld [vmem:[#allocation15 + $0x178] sm:$0xff]  ;;  %v2253_v7 = vld [vmem:[#allocation15 + $0x530] sm:$0xff] }
 0x1f3   : > { %2523 = vmatpush.msra.mxu0 %v2099_v10  ;;  %2542 = vmatpush.msra.mxu1 %v2235_v11  ;;  %v2270_v41 = vld [vmem:[#allocation15 + $0x5b8] sm:$0xff]  ;;  %v2109_v10 = vld [vmem:[#allocation15 + $0xb0] sm:$0xff] }
 0x1f4   : > { %2563 = vmatpush.msra.mxu2 %v2100_v1  ;;  %2582 = vmatpush.msra.mxu3 %v2236_v12  ;;  %v2126_v4 = vld [vmem:[#allocation15 + $0x138] sm:$0xff]  ;;  %v2245_v11 = vld [vmem:[#allocation15 + $0x4f0] sm:$0xff] }
 0x1f5   : > { %2524 = vmatpush.msra.mxu0 %v2091_v15  ;;  %2543 = vmatpush.msra.mxu1 %v2227_v17  ;;  %v2262_v5 = vld [vmem:[#allocation15 + $0x578] sm:$0xff]  ;;  %v2237_v15 = vld [vmem:[#allocation15 + $0x4b0] sm:$0xff] }
 0x1f6   : > { %2564 = vmatpush.msra.mxu2 %v2092_v19  ;;  %2583 = vmatpush.msra.mxu3 %v2228_v20  ;;  %v2118_v8 = vld [vmem:[#allocation15 + $0xf8] sm:$0xff]  ;;  %v2093_v19 = vld [vmem:[#allocation15 + $0x30] sm:$0xff] }
 0x1f7   : > { %2445 = vmatmul.f32.vlgmr.msrb.gmra.mxu0 %v5786_v32  ;;  %2485 = vmatmul.f32.vlgmr.msrb.gmra.mxu2 %v5786_v32  ;;  %v2254_v9 = vld [vmem:[#allocation15 + $0x538] sm:$0xff]  ;;  %v2229_v20 = vld [vmem:[#allocation15 + $0x470] sm:$0xff] }
 0x1f8   : > { %2505 = vmatmul.f32.vlgmr.msrb.gmra.mxu3 %v5790_v35  ;;  %2589 = vmatpush.msrb.mxu0 %v2213_v21  ;;  %v2110_v1 = vld [vmem:[#allocation15 + $0xb8] sm:$0xff] }
 0x1f9   : > { %2629 = vmatpush.msrb.mxu2 %v2214_v22  ;;  %2544 = vmatpush.msra.mxu1 %v2219_v23  ;;  %v2246_v12 = vld [vmem:[#allocation15 + $0x4f8] sm:$0xff]  ;;  %v1950_v23 = vld [vmem:[#allocation14 + $0x3c0] sm:$0xff] }
 0x1fa   : > { %2584 = vmatpush.msra.mxu3 %v2220_v24  ;;  %2465 = vmatmul.f32.vlgmr.msrb.gmra.mxu1 %v5790_v35  ;;  %v2102_v17 = vld [vmem:[#allocation15 + $0x78] sm:$0xff]  ;;  %v1951_v24 = vld [vmem:[#allocation14 + $0x3c8] sm:$0xff] }
 0x1fb   : > { %2590 = vmatpush.msrb.mxu0 %v2205_v25  ;;  %2609 = vmatpush.msrb.mxu1 %v2341_v26  ;;  %v2238_v18 = vld [vmem:[#allocation15 + $0x4b8] sm:$0xff]  ;;  %v2221_v25 = vld [vmem:[#allocation15 + $0x430] sm:$0xff] }
 0x1fc   : > { %2630 = vmatpush.msrb.mxu2 %v2206_v27  ;;  %2649 = vmatpush.msrb.mxu3 %v2342_v28  ;;  %v2094_v21 = vld [vmem:[#allocation15 + $0x38] sm:$0xff]  ;;  %v1942_v27 = vld [vmem:[#allocation14 + $0x380] sm:$0xff] }
 0x1fd   : > { %2591 = vmatpush.msrb.mxu0 %v2197_v14  ;;  %2610 = vmatpush.msrb.mxu1 %v2333_v16  ;;  %v2230_v22 = vld [vmem:[#allocation15 + $0x478] sm:$0xff]  ;;  %v2078_v28 = vld [vmem:[#allocation14 + $0x7c0] sm:$0xff]  ;;  %v1943_v14 = vld [vmem:[#allocation14 + $0x388] sm:$0xff] }
 0x1fe   : > { %2631 = vmatpush.msrb.mxu2 %v2198_v29  ;;  %2650 = vmatpush.msrb.mxu3 %v2334_v30  ;;  %v2222_v26 = vld [vmem:[#allocation15 + $0x438] sm:$0xff]  ;;  %v2079_v16 = vld [vmem:[#allocation14 + $0x7c8] sm:$0xff]  ;;  %v1934_v29 = vld [vmem:[#allocation14 + $0x340] sm:$0xff] }
 0x1ff   : > { %2592 = vmatpush.msrb.mxu0 %v2189_v31  ;;  %2611 = vmatpush.msrb.mxu1 %v2325_v33  ;;  %v2070_v30 = vld [vmem:[#allocation14 + $0x780] sm:$0xff]  ;;  %v1935_v31 = vld [vmem:[#allocation14 + $0x348] sm:$0xff] }
 0x200   : > { %2632 = vmatpush.msrb.mxu2 %v2190_v34  ;;  %2651 = vmatpush.msrb.mxu3 %v2326_v36  ;;  %v2071_v33 = vld [vmem:[#allocation14 + $0x788] sm:$0xff]  ;;  %v1926_v34 = vld [vmem:[#allocation14 + $0x300] sm:$0xff] }
 0x201   : > { %2593 = vmatpush.msrb.mxu0 %v2181_v37  ;;  %2612 = vmatpush.msrb.mxu1 %v2317_v38  ;;  %v2062_v36 = vld [vmem:[#allocation14 + $0x740] sm:$0xff]  ;;  %v1927_v37 = vld [vmem:[#allocation14 + $0x308] sm:$0xff] }
 0x202   : > { %2633 = vmatpush.msrb.mxu2 %v2182_v39  ;;  %2652 = vmatpush.msrb.mxu3 %v2318_v40  ;;  %v2063_v38 = vld [vmem:[#allocation14 + $0x748] sm:$0xff]  ;;  %v1918_v39 = vld [vmem:[#allocation14 + $0x2c0] sm:$0xff]  ;;  %v5887_v40 = vld.sshfl [vmem:[#allocation1] sm:$0xff pattern:$0x73625140] }
 0x203   : > { %2594 = vmatpush.msrb.mxu0 %v2173_v42  ;;  %2613 = vmatpush.msrb.mxu1 %v2309_v43  ;;  %v2054_v42 = vld [vmem:[#allocation14 + $0x700] sm:$0xff]  ;;  %v5889_v43 = vld.sshfl [vmem:[#allocation1 + $0x8] sm:$0xff pattern:$0x73625140] }
 0x204   : > { %2634 = vmatpush.msrb.mxu2 %v2174_v44  ;;  %2653 = vmatpush.msrb.mxu3 %v2310_v45  ;;  %v3021_v44 = vld [vmem:[#allocation12] sm:$0xf]  ;;  %v1919_v45 = vld [vmem:[#allocation14 + $0x2c8] sm:$0xff] }
 0x205   : > { %2595 = vmatpush.msrb.mxu0 %v2165_v46  ;;  %2614 = vmatpush.msrb.mxu1 %v2301_v47  ;;  %v2055_v46 = vld [vmem:[#allocation14 + $0x708] sm:$0xff]  ;;  %3139 = vst [vmem:[#allocation1] ss:$4 sm:$0xff] %v3021_v44  ;;  %v1910_v47 = vld [vmem:[#allocation14 + $0x280] sm:$0xff]  ;;  %v2065_v44 = vld [vmem:[#allocation14 + $0x758] sm:$0xff] }
 0x206   : > { %2635 = vmatpush.msrb.mxu2 %v2166_v48  ;;  %2654 = vmatpush.msrb.mxu3 %v2302_v49  ;;  %v2046_v48 = vld [vmem:[#allocation14 + $0x6c0] sm:$0xff]  ;;  %v1911_v49 = vld [vmem:[#allocation14 + $0x288] sm:$0xff] }
 0x207   : > { %2596 = vmatpush.msrb.mxu0 %v2157_v50  ;;  %2615 = vmatpush.msrb.mxu1 %v2293_v51  ;;  %v2047_v50 = vld [vmem:[#allocation14 + $0x6c8] sm:$0xff]  ;;  %v1902_v51 = vld [vmem:[#allocation14 + $0x240] sm:$0xff] }
 0x208   : > { %2636 = vmatpush.msrb.mxu2 %v2158_v52  ;;  %2655 = vmatpush.msrb.mxu3 %v2294_v53  ;;  %v2038_v52 = vld [vmem:[#allocation14 + $0x680] sm:$0xff]  ;;  %v1903_v53 = vld [vmem:[#allocation14 + $0x248] sm:$0xff] }
 0x209   : > { %2597 = vmatpush.msrb.mxu0 %v2149_v54  ;;  %2616 = vmatpush.msrb.mxu1 %v2285_v55  ;;  %v2039_v54 = vld [vmem:[#allocation14 + $0x688] sm:$0xff]  ;;  %v1894_v55 = vld [vmem:[#allocation14 + $0x200] sm:$0xff] }
 0x20a   : > { %2637 = vmatpush.msrb.mxu2 %v2150_v56  ;;  %2656 = vmatpush.msrb.mxu3 %v2286_v57  ;;  %v2030_v56 = vld [vmem:[#allocation14 + $0x640] sm:$0xff]  ;;  %v1895_v57 = vld [vmem:[#allocation14 + $0x208] sm:$0xff] }
 0x20b   : > { %2598 = vmatpush.msrb.mxu0 %v2141_v58  ;;  %2617 = vmatpush.msrb.mxu1 %v2277_v59  ;;  %v2031_v58 = vld [vmem:[#allocation14 + $0x648] sm:$0xff]  ;;  %v1886_v59 = vld [vmem:[#allocation14 + $0x1c0] sm:$0xff] }
 0x20c   : > { %2638 = vmatpush.msrb.mxu2 %v2142_v60  ;;  %2657 = vmatpush.msrb.mxu3 %v2278_v61  ;;  %v2022_v60 = vld [vmem:[#allocation14 + $0x600] sm:$0xff]  ;;  %v1887_v61 = vld [vmem:[#allocation14 + $0x1c8] sm:$0xff] }
 0x20d   : > { %2599 = vmatpush.msrb.mxu0 %v2133_v62  ;;  %2618 = vmatpush.msrb.mxu1 %v2269_v63  ;;  %v2023_v62 = vld [vmem:[#allocation14 + $0x608] sm:$0xff]  ;;  %v1878_v63 = vld [vmem:[#allocation14 + $0x180] sm:$0xff] }
 0x20e   : > { %2639 = vmatpush.msrb.mxu2 %v2134_v0  ;;  %2658 = vmatpush.msrb.mxu3 %v2270_v41  ;;  %v2014_v0 = vld [vmem:[#allocation14 + $0x5c0] sm:$0xff]  ;;  %v1879_v41 = vld [vmem:[#allocation14 + $0x188] sm:$0xff] }
 0x20f   : > { %2600 = vmatpush.msrb.mxu0 %v2125_v2  ;;  %2619 = vmatpush.msrb.mxu1 %v2261_v3  ;;  %v2015_v2 = vld [vmem:[#allocation14 + $0x5c8] sm:$0xff]  ;;  %v1870_v3 = vld [vmem:[#allocation14 + $0x140] sm:$0xff] }
 0x210   : > { %2640 = vmatpush.msrb.mxu2 %v2126_v4  ;;  %2659 = vmatpush.msrb.mxu3 %v2262_v5  ;;  %v2006_v4 = vld [vmem:[#allocation14 + $0x580] sm:$0xff]  ;;  %v1871_v5 = vld [vmem:[#allocation14 + $0x148] sm:$0xff] }
 0x211   : > { %2601 = vmatpush.msrb.mxu0 %v2117_v6  ;;  %2620 = vmatpush.msrb.mxu1 %v2253_v7  ;;  %v2007_v6 = vld [vmem:[#allocation14 + $0x588] sm:$0xff]  ;;  %v1862_v7 = vld [vmem:[#allocation14 + $0x100] sm:$0xff] }
 0x212   : > { %2641 = vmatpush.msrb.mxu2 %v2118_v8  ;;  %2660 = vmatpush.msrb.mxu3 %v2254_v9  ;;  %v1998_v8 = vld [vmem:[#allocation14 + $0x540] sm:$0xff]  ;;  %v1863_v9 = vld [vmem:[#allocation14 + $0x108] sm:$0xff] }
 0x213   : > { %2602 = vmatpush.msrb.mxu0 %v2109_v10  ;;  %2621 = vmatpush.msrb.mxu1 %v2245_v11  ;;  %v1999_v10 = vld [vmem:[#allocation14 + $0x548] sm:$0xff]  ;;  %v1854_v11 = vld [vmem:[#allocation14 + $0xc0] sm:$0xff] }
 0x214   : > { %2642 = vmatpush.msrb.mxu2 %v2110_v1  ;;  %2661 = vmatpush.msrb.mxu3 %v2246_v12  ;;  %v1990_v1 = vld [vmem:[#allocation14 + $0x500] sm:$0xff]  ;;  %v1855_v12 = vld [vmem:[#allocation14 + $0xc8] sm:$0xff] }
 0x215   : > { %2603 = vmatpush.msrb.mxu0 %v2101_v13  ;;  %2622 = vmatpush.msrb.mxu1 %v2237_v15  ;;  %v1991_v13 = vld [vmem:[#allocation14 + $0x508] sm:$0xff]  ;;  %v1846_v15 = vld [vmem:[#allocation14 + $0x80] sm:$0xff] }
 0x216   : > { %2643 = vmatpush.msrb.mxu2 %v2102_v17  ;;  %2662 = vmatpush.msrb.mxu3 %v2238_v18  ;;  %v1982_v17 = vld [vmem:[#allocation14 + $0x4c0] sm:$0xff]  ;;  %v1847_v18 = vld [vmem:[#allocation14 + $0x88] sm:$0xff] }
 0x217   : > { %2604 = vmatpush.msrb.mxu0 %v2093_v19  ;;  %2623 = vmatpush.msrb.mxu1 %v2229_v20  ;;  %v1983_v19 = vld [vmem:[#allocation14 + $0x4c8] sm:$0xff]  ;;  %v1838_v20 = vld [vmem:[#allocation14 + $0x40] sm:$0xff] }
 0x218   : > { %2644 = vmatpush.msrb.mxu2 %v2094_v21  ;;  %2663 = vmatpush.msrb.mxu3 %v2230_v22  ;;  %v1974_v21 = vld [vmem:[#allocation14 + $0x480] sm:$0xff]  ;;  %v1839_v22 = vld [vmem:[#allocation14 + $0x48] sm:$0xff] }
 0x219   : > { %2525 = vmatmul.f32.vlgmr.msra.gmra.mxu0 %v5786_v32  ;;  %2565 = vmatmul.f32.vlgmr.msra.gmra.mxu2 %v5786_v32 }
 0x21a   : > { %2585 = vmatmul.f32.vlgmr.msra.gmra.mxu3 %v5790_v35  ;;  %2675 = vmatpush.msra.mxu0 %v1950_v23  ;;  %v1975_v23 = vld [vmem:[#allocation14 + $0x488] sm:$0xff] }
 0x21b   : > { %2715 = vmatpush.msra.mxu2 %v1951_v24  ;;  %2624 = vmatpush.msrb.mxu1 %v2221_v25  ;;  %v1966_v24 = vld [vmem:[#allocation14 + $0x440] sm:$0xff]  ;;  %v1831_v25 = vld [vmem:[#allocation14 + $0x8] sm:$0xff] }
 0x21c   : > { %2664 = vmatpush.msrb.mxu3 %v2222_v26  ;;  %2545 = vmatmul.f32.vlgmr.msra.gmra.mxu1 %v5790_v35  ;;  %v1967_v26 = vld [vmem:[#allocation14 + $0x448] sm:$0xff] }
 0x21d   : > { %2676 = vmatpush.msra.mxu0 %v1942_v27  ;;  %2695 = vmatpush.msra.mxu1 %v2078_v28  ;;  %v1952_v27 = vld [vmem:[#allocation14 + $0x3d0] sm:$0xff]  ;;  %v1958_v28 = vld [vmem:[#allocation14 + $0x400] sm:$0xff] }
 0x21e   : > { %2716 = vmatpush.msra.mxu2 %v1943_v14  ;;  %2735 = vmatpush.msra.mxu3 %v2079_v16  ;;  %v1959_v14 = vld [vmem:[#allocation14 + $0x408] sm:$0xff]  ;;  %v1944_v16 = vld [vmem:[#allocation14 + $0x390] sm:$0xff] }
 0x21f   : > { %2677 = vmatpush.msra.mxu0 %v1934_v29  ;;  %2696 = vmatpush.msra.mxu1 %v2070_v30  ;;  %v2080_v29 = vld [vmem:[#allocation14 + $0x7d0] sm:$0xff]  ;;  %v1945_v30 = vld [vmem:[#allocation14 + $0x398] sm:$0xff] }
 0x220   : > { %2717 = vmatpush.msra.mxu2 %v1935_v31  ;;  %2736 = vmatpush.msra.mxu3 %v2071_v33  ;;  %v2081_v31 = vld [vmem:[#allocation14 + $0x7d8] sm:$0xff]  ;;  %v1936_v33 = vld [vmem:[#allocation14 + $0x350] sm:$0xff] }
 0x221   : > { %2678 = vmatpush.msra.mxu0 %v1926_v34  ;;  %2697 = vmatpush.msra.mxu1 %v2062_v36  ;;  %v2072_v34 = vld [vmem:[#allocation14 + $0x790] sm:$0xff]  ;;  %v1937_v36 = vld [vmem:[#allocation14 + $0x358] sm:$0xff] }
 0x222   : > { %2718 = vmatpush.msra.mxu2 %v1927_v37  ;;  %2737 = vmatpush.msra.mxu3 %v2063_v38  ;;  %v2073_v37 = vld [vmem:[#allocation14 + $0x798] sm:$0xff]  ;;  %v1928_v38 = vld [vmem:[#allocation14 + $0x310] sm:$0xff] }
 0x223   : > { %2679 = vmatpush.msra.mxu0 %v1918_v39  ;;  %2698 = vmatpush.msra.mxu1 %v2054_v42  ;;  %v2064_v39 = vld [vmem:[#allocation14 + $0x750] sm:$0xff]  ;;  %v1929_v42 = vld [vmem:[#allocation14 + $0x318] sm:$0xff] }
 0x224   : > { %2719 = vmatpush.msra.mxu2 %v1919_v45  ;;  %2738 = vmatpush.msra.mxu3 %v2055_v46  ;;  %v1920_v45 = vld [vmem:[#allocation14 + $0x2d0] sm:$0xff] }
 0x225   : > { %2680 = vmatpush.msra.mxu0 %v1910_v47  ;;  %2699 = vmatpush.msra.mxu1 %v2046_v48  ;;  %v2056_v46 = vld [vmem:[#allocation14 + $0x710] sm:$0xff]  ;;  %v1921_v47 = vld [vmem:[#allocation14 + $0x2d8] sm:$0xff] }
 0x226   : > { %2720 = vmatpush.msra.mxu2 %v1911_v49  ;;  %2739 = vmatpush.msra.mxu3 %v2047_v50  ;;  %v2057_v48 = vld [vmem:[#allocation14 + $0x718] sm:$0xff]  ;;  %v1912_v49 = vld [vmem:[#allocation14 + $0x290] sm:$0xff] }
 0x227   : > { %2681 = vmatpush.msra.mxu0 %v1902_v51  ;;  %2700 = vmatpush.msra.mxu1 %v2038_v52  ;;  %v2048_v50 = vld [vmem:[#allocation14 + $0x6d0] sm:$0xff]  ;;  %v1913_v51 = vld [vmem:[#allocation14 + $0x298] sm:$0xff] }
 0x228   : > { %2721 = vmatpush.msra.mxu2 %v1903_v53  ;;  %2740 = vmatpush.msra.mxu3 %v2039_v54  ;;  %v2049_v52 = vld [vmem:[#allocation14 + $0x6d8] sm:$0xff]  ;;  %v1904_v53 = vld [vmem:[#allocation14 + $0x250] sm:$0xff] }
 0x229   : > { %2682 = vmatpush.msra.mxu0 %v1894_v55  ;;  %2701 = vmatpush.msra.mxu1 %v2030_v56  ;;  %v2040_v54 = vld [vmem:[#allocation14 + $0x690] sm:$0xff]  ;;  %v1905_v55 = vld [vmem:[#allocation14 + $0x258] sm:$0xff] }
 0x22a   : > { %2722 = vmatpush.msra.mxu2 %v1895_v57  ;;  %2741 = vmatpush.msra.mxu3 %v2031_v58  ;;  %v2041_v56 = vld [vmem:[#allocation14 + $0x698] sm:$0xff]  ;;  %v1896_v57 = vld [vmem:[#allocation14 + $0x210] sm:$0xff] }
 0x22b   : > { %2683 = vmatpush.msra.mxu0 %v1886_v59  ;;  %2702 = vmatpush.msra.mxu1 %v2022_v60  ;;  %v2032_v58 = vld [vmem:[#allocation14 + $0x650] sm:$0xff]  ;;  %v1897_v59 = vld [vmem:[#allocation14 + $0x218] sm:$0xff] }
 0x22c   : > { %2723 = vmatpush.msra.mxu2 %v1887_v61  ;;  %2742 = vmatpush.msra.mxu3 %v2023_v62  ;;  %v2033_v60 = vld [vmem:[#allocation14 + $0x658] sm:$0xff]  ;;  %v1888_v61 = vld [vmem:[#allocation14 + $0x1d0] sm:$0xff] }
 0x22d   : > { %2684 = vmatpush.msra.mxu0 %v1878_v63  ;;  %2703 = vmatpush.msra.mxu1 %v2014_v0  ;;  %v2024_v62 = vld [vmem:[#allocation14 + $0x610] sm:$0xff]  ;;  %v1889_v63 = vld [vmem:[#allocation14 + $0x1d8] sm:$0xff] }
 0x22e   : > { %2724 = vmatpush.msra.mxu2 %v1879_v41  ;;  %2743 = vmatpush.msra.mxu3 %v2015_v2  ;;  %v2025_v0 = vld [vmem:[#allocation14 + $0x618] sm:$0xff]  ;;  %v1880_v41 = vld [vmem:[#allocation14 + $0x190] sm:$0xff] }
 0x22f   : > { %2685 = vmatpush.msra.mxu0 %v1870_v3  ;;  %2704 = vmatpush.msra.mxu1 %v2006_v4  ;;  %v2016_v2 = vld [vmem:[#allocation14 + $0x5d0] sm:$0xff]  ;;  %v1881_v3 = vld [vmem:[#allocation14 + $0x198] sm:$0xff] }
 0x230   : > { %2725 = vmatpush.msra.mxu2 %v1871_v5  ;;  %2744 = vmatpush.msra.mxu3 %v2007_v6  ;;  %v2017_v4 = vld [vmem:[#allocation14 + $0x5d8] sm:$0xff]  ;;  %v1872_v5 = vld [vmem:[#allocation14 + $0x150] sm:$0xff] }
 0x231   : > { %2686 = vmatpush.msra.mxu0 %v1862_v7  ;;  %2705 = vmatpush.msra.mxu1 %v1998_v8  ;;  %v2008_v6 = vld [vmem:[#allocation14 + $0x590] sm:$0xff]  ;;  %v1873_v7 = vld [vmem:[#allocation14 + $0x158] sm:$0xff] }
 0x232   : > { %2726 = vmatpush.msra.mxu2 %v1863_v9  ;;  %2745 = vmatpush.msra.mxu3 %v1999_v10  ;;  %v2009_v8 = vld [vmem:[#allocation14 + $0x598] sm:$0xff]  ;;  %v1864_v9 = vld [vmem:[#allocation14 + $0x110] sm:$0xff] }
 0x233   : > { %2605 = vmatmul.f32.vlgmr.msrb.gmra.mxu0 %v5786_v32  ;;  %2645 = vmatmul.f32.vlgmr.msrb.gmra.mxu2 %v5786_v32  ;;  %v1830_v32 = vld [vmem:[#allocation14] sm:$0xff]  ;;  %v2000_v10 = vld [vmem:[#allocation14 + $0x550] sm:$0xff] }
 0x234   : > { %2687 = vmatpush.msra.mxu0 %v1854_v11  ;;  %2706 = vmatpush.msra.mxu1 %v1990_v1  ;;  %v1865_v11 = vld [vmem:[#allocation14 + $0x118] sm:$0xff] }
 0x235   : > { %2727 = vmatpush.msra.mxu2 %v1855_v12  ;;  %2746 = vmatpush.msra.mxu3 %v1991_v13  ;;  %v2001_v1 = vld [vmem:[#allocation14 + $0x558] sm:$0xff]  ;;  %v1856_v12 = vld [vmem:[#allocation14 + $0xd0] sm:$0xff] }
 0x236   : > { %2625 = vmatmul.f32.vlgmr.msrb.gmra.mxu1 %v5790_v35  ;;  %2665 = vmatmul.f32.vlgmr.msrb.gmra.mxu3 %v5790_v35  ;;  %v1953_v35 = vld [vmem:[#allocation14 + $0x3d8] sm:$0xff]  ;;  %v1992_v13 = vld [vmem:[#allocation14 + $0x510] sm:$0xff] }
 0x237   : > { %2688 = vmatpush.msra.mxu0 %v1846_v15  ;;  %2707 = vmatpush.msra.mxu1 %v1982_v17  ;;  %v1857_v15 = vld [vmem:[#allocation14 + $0xd8] sm:$0xff] }
 0x238   : > { %2728 = vmatpush.msra.mxu2 %v1847_v18  ;;  %2747 = vmatpush.msra.mxu3 %v1983_v19  ;;  %v1993_v17 = vld [vmem:[#allocation14 + $0x518] sm:$0xff]  ;;  %v1848_v18 = vld [vmem:[#allocation14 + $0x90] sm:$0xff] }
 0x239   : > { %2689 = vmatpush.msra.mxu0 %v1838_v20  ;;  %2708 = vmatpush.msra.mxu1 %v1974_v21  ;;  %v1984_v19 = vld [vmem:[#allocation14 + $0x4d0] sm:$0xff]  ;;  %v1849_v20 = vld [vmem:[#allocation14 + $0x98] sm:$0xff] }
 0x23a   : > { %2729 = vmatpush.msra.mxu2 %v1839_v22  ;;  %2748 = vmatpush.msra.mxu3 %v1975_v23  ;;  %v1985_v21 = vld [vmem:[#allocation14 + $0x4d8] sm:$0xff]  ;;  %v1840_v22 = vld [vmem:[#allocation14 + $0x50] sm:$0xff] }
 0x23b   : > { %2690 = vmatpush.msra.mxu0 %v1830_v32  ;;  %2709 = vmatpush.msra.mxu1 %v1966_v24  ;;  %v1976_v23 = vld [vmem:[#allocation14 + $0x490] sm:$0xff]  ;;  %v1841_v32 = vld [vmem:[#allocation14 + $0x58] sm:$0xff] }
 0x23c   : > { %2730 = vmatpush.msra.mxu2 %v1831_v25  ;;  %2749 = vmatpush.msra.mxu3 %v1967_v26  ;;  %v1977_v24 = vld [vmem:[#allocation14 + $0x498] sm:$0xff]  ;;  %v1832_v25 = vld [vmem:[#allocation14 + $0x10] sm:$0xff] }
 0x23d   : > { %2691 = vmatmul.f32.vlgmr.msra.gmra.mxu0 %v5887_v40  ;;  %2731 = vmatmul.f32.vlgmr.msra.gmra.mxu2 %v5887_v40  ;;  %v1968_v26 = vld [vmem:[#allocation14 + $0x450] sm:$0xff] }
 0x23e   : > { %2755 = vmatpush.msrb.mxu0 %v1952_v27  ;;  %2795 = vmatpush.msrb.mxu2 %v1953_v35  ;;  %v1833_v27 = vld [vmem:[#allocation14 + $0x18] sm:$0xff] }
 0x23f   : > { %2710 = vmatpush.msra.mxu1 %v1958_v28  ;;  %2750 = vmatpush.msra.mxu3 %v1959_v14  ;;  %v1969_v35 = vld [vmem:[#allocation14 + $0x458] sm:$0xff]  ;;  %v1954_v28 = vld [vmem:[#allocation14 + $0x3e0] sm:$0xff]  ;;  %v1955_v14 = vld [vmem:[#allocation14 + $0x3e8] sm:$0xff] }
 0x240   : > { %2711 = vmatmul.f32.vlgmr.msra.gmra.mxu1 %v5889_v43  ;;  %2751 = vmatmul.f32.vlgmr.msra.gmra.mxu3 %v5889_v43 }
 0x241   : > { %2756 = vmatpush.msrb.mxu0 %v1944_v16  ;;  %2775 = vmatpush.msrb.mxu1 %v2080_v29  ;;  %v1960_v16 = vld [vmem:[#allocation14 + $0x410] sm:$0xff]  ;;  %v1961_v29 = vld [vmem:[#allocation14 + $0x418] sm:$0xff] }
 0x242   : > { %2796 = vmatpush.msrb.mxu2 %v1945_v30  ;;  %2815 = vmatpush.msrb.mxu3 %v2081_v31  ;;  %v1946_v30 = vld [vmem:[#allocation14 + $0x3a0] sm:$0xff] }
 0x243   : > { %2757 = vmatpush.msrb.mxu0 %v1936_v33  ;;  %2776 = vmatpush.msrb.mxu1 %v2072_v34  ;;  %v2082_v31 = vld [vmem:[#allocation14 + $0x7e0] sm:$0xff]  ;;  %v1947_v33 = vld [vmem:[#allocation14 + $0x3a8] sm:$0xff] }
 0x244   : > { %2797 = vmatpush.msrb.mxu2 %v1937_v36  ;;  %2816 = vmatpush.msrb.mxu3 %v2073_v37  ;;  %v2083_v34 = vld [vmem:[#allocation14 + $0x7e8] sm:$0xff]  ;;  %v1938_v36 = vld [vmem:[#allocation14 + $0x360] sm:$0xff] }
 0x245   : > { %2758 = vmatpush.msrb.mxu0 %v1928_v38  ;;  %2777 = vmatpush.msrb.mxu1 %v2064_v39  ;;  %v2074_v37 = vld [vmem:[#allocation14 + $0x7a0] sm:$0xff]  ;;  %v1939_v38 = vld [vmem:[#allocation14 + $0x368] sm:$0xff] }
 0x246   : > { %2798 = vmatpush.msrb.mxu2 %v1929_v42  ;;  %2817 = vmatpush.msrb.mxu3 %v2065_v44  ;;  %v2075_v39 = vld [vmem:[#allocation14 + $0x7a8] sm:$0xff]  ;;  %v1930_v42 = vld [vmem:[#allocation14 + $0x320] sm:$0xff] }
 0x247   : > { %2759 = vmatpush.msrb.mxu0 %v1920_v45  ;;  %2778 = vmatpush.msrb.mxu1 %v2056_v46  ;;  %v2066_v44 = vld [vmem:[#allocation14 + $0x760] sm:$0xff]  ;;  %v1931_v45 = vld [vmem:[#allocation14 + $0x328] sm:$0xff] }
 0x248   : > { %2799 = vmatpush.msrb.mxu2 %v1921_v47  ;;  %2818 = vmatpush.msrb.mxu3 %v2057_v48  ;;  %v2067_v46 = vld [vmem:[#allocation14 + $0x768] sm:$0xff]  ;;  %v1922_v47 = vld [vmem:[#allocation14 + $0x2e0] sm:$0xff] }
 0x249   : > { %2760 = vmatpush.msrb.mxu0 %v1912_v49  ;;  %2779 = vmatpush.msrb.mxu1 %v2048_v50  ;;  %v2058_v48 = vld [vmem:[#allocation14 + $0x720] sm:$0xff]  ;;  %v1923_v49 = vld [vmem:[#allocation14 + $0x2e8] sm:$0xff] }
 0x24a   : > { %2800 = vmatpush.msrb.mxu2 %v1913_v51  ;;  %2819 = vmatpush.msrb.mxu3 %v2049_v52  ;;  %v2059_v50 = vld [vmem:[#allocation14 + $0x728] sm:$0xff]  ;;  %v1914_v51 = vld [vmem:[#allocation14 + $0x2a0] sm:$0xff] }
 0x24b   : > { %2761 = vmatpush.msrb.mxu0 %v1904_v53  ;;  %2780 = vmatpush.msrb.mxu1 %v2040_v54  ;;  %v2050_v52 = vld [vmem:[#allocation14 + $0x6e0] sm:$0xff]  ;;  %v1915_v53 = vld [vmem:[#allocation14 + $0x2a8] sm:$0xff] }
 0x24c   : > { %2801 = vmatpush.msrb.mxu2 %v1905_v55  ;;  %2820 = vmatpush.msrb.mxu3 %v2041_v56  ;;  %v2051_v54 = vld [vmem:[#allocation14 + $0x6e8] sm:$0xff]  ;;  %v1906_v55 = vld [vmem:[#allocation14 + $0x260] sm:$0xff] }
 0x24d   : > { %2762 = vmatpush.msrb.mxu0 %v1896_v57  ;;  %2781 = vmatpush.msrb.mxu1 %v2032_v58  ;;  %v2042_v56 = vld [vmem:[#allocation14 + $0x6a0] sm:$0xff]  ;;  %v1907_v57 = vld [vmem:[#allocation14 + $0x268] sm:$0xff] }
 0x24e   : > { %2802 = vmatpush.msrb.mxu2 %v1897_v59  ;;  %2821 = vmatpush.msrb.mxu3 %v2033_v60  ;;  %v2043_v58 = vld [vmem:[#allocation14 + $0x6a8] sm:$0xff]  ;;  %v1898_v59 = vld [vmem:[#allocation14 + $0x220] sm:$0xff] }
 0x24f   : > { %2763 = vmatpush.msrb.mxu0 %v1888_v61  ;;  %2782 = vmatpush.msrb.mxu1 %v2024_v62  ;;  %v2034_v60 = vld [vmem:[#allocation14 + $0x660] sm:$0xff]  ;;  %v1899_v61 = vld [vmem:[#allocation14 + $0x228] sm:$0xff] }
 0x250   : > { %2803 = vmatpush.msrb.mxu2 %v1889_v63  ;;  %2822 = vmatpush.msrb.mxu3 %v2025_v0  ;;  %v2035_v62 = vld [vmem:[#allocation14 + $0x668] sm:$0xff]  ;;  %v1890_v63 = vld [vmem:[#allocation14 + $0x1e0] sm:$0xff] }
 0x251   : > { %2764 = vmatpush.msrb.mxu0 %v1880_v41  ;;  %2783 = vmatpush.msrb.mxu1 %v2016_v2  ;;  %v2026_v0 = vld [vmem:[#allocation14 + $0x620] sm:$0xff]  ;;  %v1891_v41 = vld [vmem:[#allocation14 + $0x1e8] sm:$0xff] }
 0x252   : > { %2804 = vmatpush.msrb.mxu2 %v1881_v3  ;;  %2823 = vmatpush.msrb.mxu3 %v2017_v4  ;;  %v2027_v2 = vld [vmem:[#allocation14 + $0x628] sm:$0xff]  ;;  %v1882_v3 = vld [vmem:[#allocation14 + $0x1a0] sm:$0xff] }
 0x253   : > { %2765 = vmatpush.msrb.mxu0 %v1872_v5  ;;  %2784 = vmatpush.msrb.mxu1 %v2008_v6  ;;  %v2018_v4 = vld [vmem:[#allocation14 + $0x5e0] sm:$0xff]  ;;  %v1883_v5 = vld [vmem:[#allocation14 + $0x1a8] sm:$0xff] }
 0x254   : > { %2805 = vmatpush.msrb.mxu2 %v1873_v7  ;;  %2824 = vmatpush.msrb.mxu3 %v2009_v8  ;;  %v2019_v6 = vld [vmem:[#allocation14 + $0x5e8] sm:$0xff]  ;;  %v1874_v7 = vld [vmem:[#allocation14 + $0x160] sm:$0xff] }
 0x255   : > { %2766 = vmatpush.msrb.mxu0 %v1864_v9  ;;  %2785 = vmatpush.msrb.mxu1 %v2000_v10  ;;  %v2010_v8 = vld [vmem:[#allocation14 + $0x5a0] sm:$0xff]  ;;  %v1875_v9 = vld [vmem:[#allocation14 + $0x168] sm:$0xff] }
 0x256   : > { %2806 = vmatpush.msrb.mxu2 %v1865_v11  ;;  %2825 = vmatpush.msrb.mxu3 %v2001_v1  ;;  %v2011_v10 = vld [vmem:[#allocation14 + $0x5a8] sm:$0xff]  ;;  %v1866_v11 = vld [vmem:[#allocation14 + $0x120] sm:$0xff] }
 0x257   : > { %2767 = vmatpush.msrb.mxu0 %v1856_v12  ;;  %2786 = vmatpush.msrb.mxu1 %v1992_v13  ;;  %v2002_v1 = vld [vmem:[#allocation14 + $0x560] sm:$0xff]  ;;  %v1867_v12 = vld [vmem:[#allocation14 + $0x128] sm:$0xff] }
 0x258   : > { %2807 = vmatpush.msrb.mxu2 %v1857_v15  ;;  %2826 = vmatpush.msrb.mxu3 %v1993_v17  ;;  %v2003_v13 = vld [vmem:[#allocation14 + $0x568] sm:$0xff]  ;;  %v1858_v15 = vld [vmem:[#allocation14 + $0xe0] sm:$0xff] }
 0x259   : > { %2768 = vmatpush.msrb.mxu0 %v1848_v18  ;;  %2787 = vmatpush.msrb.mxu1 %v1984_v19  ;;  %v1994_v17 = vld [vmem:[#allocation14 + $0x520] sm:$0xff]  ;;  %v1859_v18 = vld [vmem:[#allocation14 + $0xe8] sm:$0xff] }
 0x25a   : > { %2808 = vmatpush.msrb.mxu2 %v1849_v20  ;;  %2827 = vmatpush.msrb.mxu3 %v1985_v21  ;;  %v1995_v19 = vld [vmem:[#allocation14 + $0x528] sm:$0xff]  ;;  %v1850_v20 = vld [vmem:[#allocation14 + $0xa0] sm:$0xff] }
 0x25b   : > { %2769 = vmatpush.msrb.mxu0 %v1840_v22  ;;  %2788 = vmatpush.msrb.mxu1 %v1976_v23  ;;  %v1986_v21 = vld [vmem:[#allocation14 + $0x4e0] sm:$0xff]  ;;  %v1851_v22 = vld [vmem:[#allocation14 + $0xa8] sm:$0xff] }
 0x25c   : > { %2809 = vmatpush.msrb.mxu2 %v1841_v32  ;;  %2828 = vmatpush.msrb.mxu3 %v1977_v24  ;;  %v1987_v23 = vld [vmem:[#allocation14 + $0x4e8] sm:$0xff]  ;;  %v1842_v32 = vld [vmem:[#allocation14 + $0x60] sm:$0xff] }
 0x25d   : > { %2770 = vmatpush.msrb.mxu0 %v1832_v25  ;;  %2789 = vmatpush.msrb.mxu1 %v1968_v26  ;;  %v1978_v24 = vld [vmem:[#allocation14 + $0x4a0] sm:$0xff]  ;;  %v1843_v25 = vld [vmem:[#allocation14 + $0x68] sm:$0xff] }
 0x25e   : > { %2810 = vmatpush.msrb.mxu2 %v1833_v27  ;;  %2829 = vmatpush.msrb.mxu3 %v1969_v35  ;;  %v1979_v26 = vld [vmem:[#allocation14 + $0x4a8] sm:$0xff]  ;;  %v1834_v27 = vld [vmem:[#allocation14 + $0x20] sm:$0xff] }
 0x25f   : > { %2771 = vmatmul.f32.vlgmr.msrb.gmra.mxu0 %v5887_v40  ;;  %2811 = vmatmul.f32.vlgmr.msrb.gmra.mxu2 %v5887_v40  ;;  %v1970_v35 = vld [vmem:[#allocation14 + $0x460] sm:$0xff] }
 0x260   : > { %2835 = vmatpush.msra.mxu0 %v1954_v28  ;;  %2875 = vmatpush.msra.mxu2 %v1955_v14  ;;  %v1835_v28 = vld [vmem:[#allocation14 + $0x28] sm:$0xff] }
 0x261   : > { %2790 = vmatpush.msrb.mxu1 %v1960_v16  ;;  %2830 = vmatpush.msrb.mxu3 %v1961_v29  ;;  %v1971_v14 = vld [vmem:[#allocation14 + $0x468] sm:$0xff]  ;;  %v1956_v16 = vld [vmem:[#allocation14 + $0x3f0] sm:$0xff]  ;;  %v1957_v29 = vld [vmem:[#allocation14 + $0x3f8] sm:$0xff] }
 0x262   : > { %2791 = vmatmul.f32.vlgmr.msrb.gmra.mxu1 %v5889_v43  ;;  %2831 = vmatmul.f32.vlgmr.msrb.gmra.mxu3 %v5889_v43 }
 0x263   : > { %2836 = vmatpush.msra.mxu0 %v1946_v30  ;;  %2855 = vmatpush.msra.mxu1 %v2082_v31  ;;  %v1962_v30 = vld [vmem:[#allocation14 + $0x420] sm:$0xff]  ;;  %v1963_v31 = vld [vmem:[#allocation14 + $0x428] sm:$0xff] }
 0x264   : > { %2876 = vmatpush.msra.mxu2 %v1947_v33  ;;  %2895 = vmatpush.msra.mxu3 %v2083_v34  ;;  %v1948_v33 = vld [vmem:[#allocation14 + $0x3b0] sm:$0xff] }
 0x265   : > { %2837 = vmatpush.msra.mxu0 %v1938_v36  ;;  %2856 = vmatpush.msra.mxu1 %v2074_v37  ;;  %v2084_v34 = vld [vmem:[#allocation14 + $0x7f0] sm:$0xff]  ;;  %v1949_v36 = vld [vmem:[#allocation14 + $0x3b8] sm:$0xff] }
 0x266   : > { %2877 = vmatpush.msra.mxu2 %v1939_v38  ;;  %2896 = vmatpush.msra.mxu3 %v2075_v39  ;;  %v2085_v37 = vld [vmem:[#allocation14 + $0x7f8] sm:$0xff]  ;;  %v1940_v38 = vld [vmem:[#allocation14 + $0x370] sm:$0xff] }
 0x267   : > { %2838 = vmatpush.msra.mxu0 %v1930_v42  ;;  %2857 = vmatpush.msra.mxu1 %v2066_v44  ;;  %v2076_v39 = vld [vmem:[#allocation14 + $0x7b0] sm:$0xff]  ;;  %v1941_v42 = vld [vmem:[#allocation14 + $0x378] sm:$0xff] }
 0x268   : > { %2878 = vmatpush.msra.mxu2 %v1931_v45  ;;  %2897 = vmatpush.msra.mxu3 %v2067_v46  ;;  %v2077_v44 = vld [vmem:[#allocation14 + $0x7b8] sm:$0xff]  ;;  %v1932_v45 = vld [vmem:[#allocation14 + $0x330] sm:$0xff] }
 0x269   : > { %2839 = vmatpush.msra.mxu0 %v1922_v47  ;;  %2858 = vmatpush.msra.mxu1 %v2058_v48  ;;  %v2068_v46 = vld [vmem:[#allocation14 + $0x770] sm:$0xff]  ;;  %v1933_v47 = vld [vmem:[#allocation14 + $0x338] sm:$0xff] }
 0x26a   : > { %2879 = vmatpush.msra.mxu2 %v1923_v49  ;;  %2898 = vmatpush.msra.mxu3 %v2059_v50  ;;  %v2069_v48 = vld [vmem:[#allocation14 + $0x778] sm:$0xff]  ;;  %v1924_v49 = vld [vmem:[#allocation14 + $0x2f0] sm:$0xff] }
 0x26b   : > { %2840 = vmatpush.msra.mxu0 %v1914_v51  ;;  %2859 = vmatpush.msra.mxu1 %v2050_v52  ;;  %v2060_v50 = vld [vmem:[#allocation14 + $0x730] sm:$0xff]  ;;  %v1925_v51 = vld [vmem:[#allocation14 + $0x2f8] sm:$0xff] }
 0x26c   : > { %2880 = vmatpush.msra.mxu2 %v1915_v53  ;;  %2899 = vmatpush.msra.mxu3 %v2051_v54  ;;  %v2061_v52 = vld [vmem:[#allocation14 + $0x738] sm:$0xff]  ;;  %v1916_v53 = vld [vmem:[#allocation14 + $0x2b0] sm:$0xff] }
 0x26d   : > { %2841 = vmatpush.msra.mxu0 %v1906_v55  ;;  %2860 = vmatpush.msra.mxu1 %v2042_v56  ;;  %v2052_v54 = vld [vmem:[#allocation14 + $0x6f0] sm:$0xff]  ;;  %v1917_v55 = vld [vmem:[#allocation14 + $0x2b8] sm:$0xff] }
 0x26e   : > { %2881 = vmatpush.msra.mxu2 %v1907_v57  ;;  %2900 = vmatpush.msra.mxu3 %v2043_v58  ;;  %v2053_v56 = vld [vmem:[#allocation14 + $0x6f8] sm:$0xff]  ;;  %v1908_v57 = vld [vmem:[#allocation14 + $0x270] sm:$0xff] }
 0x26f   : > { %2842 = vmatpush.msra.mxu0 %v1898_v59  ;;  %2861 = vmatpush.msra.mxu1 %v2034_v60  ;;  %v2044_v58 = vld [vmem:[#allocation14 + $0x6b0] sm:$0xff]  ;;  %v1909_v59 = vld [vmem:[#allocation14 + $0x278] sm:$0xff] }
 0x270   : > { %2882 = vmatpush.msra.mxu2 %v1899_v61  ;;  %2901 = vmatpush.msra.mxu3 %v2035_v62  ;;  %v2045_v60 = vld [vmem:[#allocation14 + $0x6b8] sm:$0xff]  ;;  %v1900_v61 = vld [vmem:[#allocation14 + $0x230] sm:$0xff] }
 0x271   : > { %2843 = vmatpush.msra.mxu0 %v1890_v63  ;;  %2862 = vmatpush.msra.mxu1 %v2026_v0  ;;  %v2036_v62 = vld [vmem:[#allocation14 + $0x670] sm:$0xff]  ;;  %v1901_v63 = vld [vmem:[#allocation14 + $0x238] sm:$0xff] }
 0x272   : > { %2883 = vmatpush.msra.mxu2 %v1891_v41  ;;  %2902 = vmatpush.msra.mxu3 %v2027_v2  ;;  %v2037_v0 = vld [vmem:[#allocation14 + $0x678] sm:$0xff]  ;;  %v1892_v41 = vld [vmem:[#allocation14 + $0x1f0] sm:$0xff] }
 0x273   : > { %2844 = vmatpush.msra.mxu0 %v1882_v3  ;;  %2863 = vmatpush.msra.mxu1 %v2018_v4  ;;  %v2028_v2 = vld [vmem:[#allocation14 + $0x630] sm:$0xff]  ;;  %v1893_v3 = vld [vmem:[#allocation14 + $0x1f8] sm:$0xff] }
 0x274   : > { %2884 = vmatpush.msra.mxu2 %v1883_v5  ;;  %2903 = vmatpush.msra.mxu3 %v2019_v6  ;;  %v2029_v4 = vld [vmem:[#allocation14 + $0x638] sm:$0xff]  ;;  %v1884_v5 = vld [vmem:[#allocation14 + $0x1b0] sm:$0xff] }
 0x275   : > { %2845 = vmatpush.msra.mxu0 %v1874_v7  ;;  %2864 = vmatpush.msra.mxu1 %v2010_v8  ;;  %v2020_v6 = vld [vmem:[#allocation14 + $0x5f0] sm:$0xff]  ;;  %v1885_v7 = vld [vmem:[#allocation14 + $0x1b8] sm:$0xff] }
 0x276   : > { %2885 = vmatpush.msra.mxu2 %v1875_v9  ;;  %2904 = vmatpush.msra.mxu3 %v2011_v10  ;;  %v2021_v8 = vld [vmem:[#allocation14 + $0x5f8] sm:$0xff]  ;;  %v1876_v9 = vld [vmem:[#allocation14 + $0x170] sm:$0xff] }
 0x277   : > { %2846 = vmatpush.msra.mxu0 %v1866_v11  ;;  %2865 = vmatpush.msra.mxu1 %v2002_v1  ;;  %v2012_v10 = vld [vmem:[#allocation14 + $0x5b0] sm:$0xff]  ;;  %v1877_v11 = vld [vmem:[#allocation14 + $0x178] sm:$0xff] }
 0x278   : > { %2886 = vmatpush.msra.mxu2 %v1867_v12  ;;  %2905 = vmatpush.msra.mxu3 %v2003_v13  ;;  %v2013_v1 = vld [vmem:[#allocation14 + $0x5b8] sm:$0xff]  ;;  %v1868_v12 = vld [vmem:[#allocation14 + $0x130] sm:$0xff] }
 0x279   : > { %2847 = vmatpush.msra.mxu0 %v1858_v15  ;;  %2866 = vmatpush.msra.mxu1 %v1994_v17  ;;  %v2004_v13 = vld [vmem:[#allocation14 + $0x570] sm:$0xff]  ;;  %v1869_v15 = vld [vmem:[#allocation14 + $0x138] sm:$0xff] }
 0x27a   : > { %2887 = vmatpush.msra.mxu2 %v1859_v18  ;;  %2906 = vmatpush.msra.mxu3 %v1995_v19  ;;  %v2005_v17 = vld [vmem:[#allocation14 + $0x578] sm:$0xff]  ;;  %v1860_v18 = vld [vmem:[#allocation14 + $0xf0] sm:$0xff] }
 0x27b   : > { %2848 = vmatpush.msra.mxu0 %v1850_v20  ;;  %2867 = vmatpush.msra.mxu1 %v1986_v21  ;;  %v1996_v19 = vld [vmem:[#allocation14 + $0x530] sm:$0xff]  ;;  %v1861_v20 = vld [vmem:[#allocation14 + $0xf8] sm:$0xff] }
 0x27c   : > { %2888 = vmatpush.msra.mxu2 %v1851_v22  ;;  %2907 = vmatpush.msra.mxu3 %v1987_v23  ;;  %v1997_v21 = vld [vmem:[#allocation14 + $0x538] sm:$0xff]  ;;  %v1852_v22 = vld [vmem:[#allocation14 + $0xb0] sm:$0xff] }
 0x27d   : > { %2849 = vmatpush.msra.mxu0 %v1842_v32  ;;  %2868 = vmatpush.msra.mxu1 %v1978_v24  ;;  %v1988_v23 = vld [vmem:[#allocation14 + $0x4f0] sm:$0xff]  ;;  %v1853_v32 = vld [vmem:[#allocation14 + $0xb8] sm:$0xff] }
 0x27e   : > { %2889 = vmatpush.msra.mxu2 %v1843_v25  ;;  %2908 = vmatpush.msra.mxu3 %v1979_v26  ;;  %v1989_v24 = vld [vmem:[#allocation14 + $0x4f8] sm:$0xff]  ;;  %v1844_v25 = vld [vmem:[#allocation14 + $0x70] sm:$0xff] }
 0x27f   : > { %2850 = vmatpush.msra.mxu0 %v1834_v27  ;;  %2869 = vmatpush.msra.mxu1 %v1970_v35  ;;  %v1980_v26 = vld [vmem:[#allocation14 + $0x4b0] sm:$0xff]  ;;  %v1845_v27 = vld [vmem:[#allocation14 + $0x78] sm:$0xff] }
 0x280   : > { %2890 = vmatpush.msra.mxu2 %v1835_v28  ;;  %2909 = vmatpush.msra.mxu3 %v1971_v14  ;;  %v1981_v35 = vld [vmem:[#allocation14 + $0x4b8] sm:$0xff]  ;;  %v1836_v28 = vld [vmem:[#allocation14 + $0x30] sm:$0xff] }
 0x281   : > { %2851 = vmatmul.f32.vlgmr.msra.gmra.mxu0 %v5887_v40  ;;  %2891 = vmatmul.f32.vlgmr.msra.gmra.mxu2 %v5887_v40  ;;  %v1972_v14 = vld [vmem:[#allocation14 + $0x470] sm:$0xff] }
 0x282   : > { %2915 = vmatpush.msrb.mxu0 %v1956_v16  ;;  %2955 = vmatpush.msrb.mxu2 %v1957_v29  ;;  %v1837_v16 = vld [vmem:[#allocation14 + $0x38] sm:$0xff] }
 0x283   : > { %2870 = vmatpush.msra.mxu1 %v1962_v30  ;;  %2910 = vmatpush.msra.mxu3 %v1963_v31  ;;  %v1973_v29 = vld [vmem:[#allocation14 + $0x478] sm:$0xff]  ;;  %v2406_v30 = vpop.f32.mrf.mxu2  ;;  %v2426_v31 = vpop.f32.mrf.mxu3 }
 0x284   : > { %2871 = vmatmul.f32.vlgmr.msra.gmra.mxu1 %v5889_v43  ;;  %2911 = vmatmul.f32.vlgmr.msra.gmra.mxu3 %v5889_v43 }
 0x285   : > { %2916 = vmatpush.msrb.mxu0 %v1948_v33  ;;  %2935 = vmatpush.msrb.mxu1 %v2084_v34  ;;  %v1964_v33 = vld [vmem:[#allocation14 + $0x430] sm:$0xff]  ;;  %v1965_v34 = vld [vmem:[#allocation14 + $0x438] sm:$0xff] }
 0x286   : > { %2956 = vmatpush.msrb.mxu2 %v1949_v36  ;;  %2975 = vmatpush.msrb.mxu3 %v2085_v37 }
 0x287   : > { %2917 = vmatpush.msrb.mxu0 %v1940_v38  ;;  %2936 = vmatpush.msrb.mxu1 %v2076_v39  ;;  %v2366_v38 = vpop.f32.mrf.mxu0 }
 0x288   : > { %2957 = vmatpush.msrb.mxu2 %v1941_v42  ;;  %2976 = vmatpush.msrb.mxu3 %v2077_v44  ;;  %v2386_v44 = vpop.f32.mrf.mxu1 }
 0x289   : > { %2918 = vmatpush.msrb.mxu0 %v1932_v45  ;;  %2937 = vmatpush.msrb.mxu1 %v2068_v46 }
 0x28a   : > { %2958 = vmatpush.msrb.mxu2 %v1933_v47  ;;  %2977 = vmatpush.msrb.mxu3 %v2069_v48 }
 0x28b   : > { %2919 = vmatpush.msrb.mxu0 %v1924_v49  ;;  %2938 = vmatpush.msrb.mxu1 %v2060_v50  ;;  %v2486_v36 = vpop.f32.mrf.mxu2  ;;  %v2506_v37 = vpop.f32.mrf.mxu3 }
 0x28c   : > { %2959 = vmatpush.msrb.mxu2 %v1925_v51  ;;  %2978 = vmatpush.msrb.mxu3 %v2061_v52 }
 0x28d   : > { %2920 = vmatpush.msrb.mxu0 %v1916_v53  ;;  %2939 = vmatpush.msrb.mxu1 %v2052_v54  ;;  %v2387_v53 = vadd.f32 %v2386_v44, %v2366_v38 }
 0x28e   : > { %2960 = vmatpush.msrb.mxu2 %v1917_v55  ;;  %2979 = vmatpush.msrb.mxu3 %v2053_v56  ;;  %v2427_v55 = vadd.f32 %v2426_v31, %v2406_v30 }
 0x28f   : > { %2921 = vmatpush.msrb.mxu0 %v1908_v57  ;;  %2940 = vmatpush.msrb.mxu1 %v2044_v58  ;;  %v2446_v45 = vpop.f32.mrf.mxu0  ;;  %v5921_v58 = vld [vmem:[#allocation17] sm:$0xff] }
 0x290   : > { %2961 = vmatpush.msrb.mxu2 %v1909_v59  ;;  %2980 = vmatpush.msrb.mxu3 %v2045_v60 }
 0x291   : > { %2922 = vmatpush.msrb.mxu0 %v1900_v61  ;;  %2941 = vmatpush.msrb.mxu1 %v2036_v62  ;;  %v2997_v62 = vperm.slane %v5921_v58, 0 }
 0x292   : > { %2962 = vmatpush.msrb.mxu2 %v1901_v63  ;;  %2981 = vmatpush.msrb.mxu3 %v2037_v0 }
 0x293   : > { %2923 = vmatpush.msrb.mxu0 %v1892_v41  ;;  %2942 = vmatpush.msrb.mxu1 %v2028_v2  ;;  %v2998_v41 = vperm.slane %v5921_v58, 1 }
 0x294   : > { %2963 = vmatpush.msrb.mxu2 %v1893_v3  ;;  %2982 = vmatpush.msrb.mxu3 %v2029_v4 }
 0x295   : > { %2924 = vmatpush.msrb.mxu0 %v1884_v5  ;;  %2943 = vmatpush.msrb.mxu1 %v2020_v6  ;;  %v2999_v5 = vperm.slane %v5921_v58, 2 }
 0x296   : > { %2964 = vmatpush.msrb.mxu2 %v1885_v7  ;;  %2983 = vmatpush.msrb.mxu3 %v2021_v8 }
 0x297   : > { %2925 = vmatpush.msrb.mxu0 %v1876_v9  ;;  %2944 = vmatpush.msrb.mxu1 %v2012_v10  ;;  %v2526_v49 = vpop.f32.mrf.mxu0  ;;  %v2507_v9 = vadd.f32 %v2506_v37, %v2486_v36 }
 0x298   : > { %2965 = vmatpush.msrb.mxu2 %v1877_v11  ;;  %2984 = vmatpush.msrb.mxu3 %v2013_v1 }
 0x299   : > { %2926 = vmatpush.msrb.mxu0 %v1868_v12  ;;  %2945 = vmatpush.msrb.mxu1 %v2004_v13 }
 0x29a   : > { %2966 = vmatpush.msrb.mxu2 %v1869_v15  ;;  %2985 = vmatpush.msrb.mxu3 %v2005_v17  ;;  %v3000_v15 = vperm.slane %v5921_v58, 3 }
 0x29b   : > { %2927 = vmatpush.msrb.mxu0 %v1860_v18  ;;  %2946 = vmatpush.msrb.mxu1 %v1996_v19 }
 0x29c   : > { %2967 = vmatpush.msrb.mxu2 %v1861_v20  ;;  %2986 = vmatpush.msrb.mxu3 %v1997_v21  ;;  %v5911_v39 = vpop.f32.mrf.mxu2 }
 0x29d   : > { %2928 = vmatpush.msrb.mxu0 %v1852_v22  ;;  %2947 = vmatpush.msrb.mxu1 %v1988_v23  ;;  %v5913_v42 = vpop.f32.mrf.mxu3 }
 0x29e   : > { %2968 = vmatpush.msrb.mxu2 %v1853_v32  ;;  %2987 = vmatpush.msrb.mxu3 %v1989_v24 }
 0x29f   : > { %2929 = vmatpush.msrb.mxu0 %v1844_v25  ;;  %2948 = vmatpush.msrb.mxu1 %v1980_v26 }
 0x2a0   : > { %2969 = vmatpush.msrb.mxu2 %v1845_v27  ;;  %2988 = vmatpush.msrb.mxu3 %v1981_v35 }
 0x2a1   : > { %2930 = vmatpush.msrb.mxu0 %v1836_v28  ;;  %2949 = vmatpush.msrb.mxu1 %v1972_v14 }
 0x2a2   : > { %2970 = vmatpush.msrb.mxu2 %v1837_v16  ;;  %2989 = vmatpush.msrb.mxu3 %v1973_v29 }
 0x2a3   : > { %2931 = vmatmul.f32.vlgmr.msrb.gmra.mxu0 %v5887_v40  ;;  %2971 = vmatmul.f32.vlgmr.msrb.gmra.mxu2 %v5887_v40  ;;  %v2466_v40 = vpop.f32.mrf.mxu1 }
 0x2a4   : > { %2950 = vmatpush.msrb.mxu1 %v1964_v33  ;;  %2990 = vmatpush.msrb.mxu3 %v1965_v34  ;;  %v2467_v63 = vadd.f32 %v2466_v40, %v2446_v45 }
 0x2a5   : > { %2951 = vmatmul.f32.vlgmr.msrb.gmra.mxu1 %v5889_v43  ;;  %2991 = vmatmul.f32.vlgmr.msrb.gmra.mxu3 %v5889_v43 }
 0x2ab   : > { %v2546_v50 = vpop.f32.mrf.mxu1 }
 0x2ac   : > { %v2547_v30 = vadd.f32 %v2546_v50, %v2526_v49  ;;  %v3001_v49 = vperm.slane %v5921_v58, 4  ;;  %v2587_v50 = vadd.f32 %v5913_v42, %v5911_v39 }
 0x2b0   : > { %v5917_v51 = vpop.f32.mrf.mxu0 }
 0x2b3   : > { %v5919_v52 = vpop.f32.mrf.mxu1 }
 0x2b6   : > { %v2646_v46 = vpop.f32.mrf.mxu2 }
 0x2b9   : > { %v2666_v47 = vpop.f32.mrf.mxu3 }
 0x2ba   : > { %v5915_v48 = vadd.f32 %v2666_v47, %v2646_v46  ;;  %v2692_v43 = vpop.f32.mrf.mxu0 }
 0x2bb   : > { %v2693_v56 = vadd.f32 %v2692_v43, %v2387_v53 }
 0x2bd   : > { %v2712_v57 = vpop.f32.mrf.mxu1 }
 0x2be   : > { %v2713_v61 = vadd.f32 %v2712_v57, %v2693_v56  ;;  %v3184_v57 = vld [vmem:[#allocation18 + $0xf0] sm:$0xff] }
 0x2bf   : > { %3224 = vmatpush.msra.mxu0 %v3184_v57 }
 0x2c0   : > { %v2732_v54 = vpop.f32.mrf.mxu2  ;;  %v3013_v4 = vadd.f32 %v2997_v62, %v2713_v61  ;;  %v3002_v61 = vperm.slane %v5921_v58, 5 }
 0x2c1   : > { %v2733_v59 = vadd.f32 %v2732_v54, %v2427_v55 }
 0x2c2   : > { %v4266_v10 = vmul.f32 -1.442695, %v3013_v4 }
 0x2c3   : > { %v2752_v60 = vpop.f32.mrf.mxu3 }
 0x2c4   : > { %v2753_v0 = vadd.f32 %v2752_v60, %v2733_v59  ;;  %4611 = vpow2.f32 %v4266_v10  ;;  %v3185_v59 = vld [vmem:[#allocation18 + $0xf8] sm:$0xff] }
 0x2c5   : > { %3264 = vmatpush.msra.mxu2 %v3185_v59  ;;  %v3211_v59 = vld [vmem:[#allocation18 + $0x1c8] sm:$0xff] }
 0x2c6   : > { %v3014_v6 = vadd.f32 %v2998_v41, %v2753_v0  ;;  %v3183_v0 = vld [vmem:[#allocation18 + $0xe8] sm:$0xff] }
 0x2c7   : > { %3265 = vmatpush.msra.mxu2 %v3183_v0 }
 0x2c8   : > { %v4267_v12 = vmul.f32 -1.442695, %v3014_v6 }
 0x2ca   : > { %4613 = vpow2.f32 %v4267_v12  ;;  %v4612_v22 = vpop.eup %4611 }
 0x2cb   : > { %v5927_v24 = vadd.f32 1.0, %v4612_v22 }
 0x2cd   : > { %vm3035_vm2 = vweird.f32 %v5927_v24  ;;  %v3039_v41 = vand.u32 2147483647, %v5927_v24 }
 0x2cf   : > { %vm3040_vm13 = vcmp.eq.f32.partialorder %v3039_v41, 8.507059e+37 }
 0x2d0   : > { %v4614_v23 = vpop.eup %4613 }
 0x2d1   : > { %v5929_v25 = vadd.f32 1.0, %v4614_v23  ;;  %v3217_v23 = vld [vmem:[#allocation18 + $0x1f8] sm:$0xff] }
 0x2d2   : > { %3284 = vmatpush.msra.mxu3 %v3217_v23  ;;  %v3198_v23 = vld [vmem:[#allocation18 + $0x160] sm:$0xff] }
 0x2d3   : > { %vm3050_vm5 = vweird.f32 %v5929_v25  ;;  %v3056_v22 = vand.u32 2147483648, %v5929_v25 }
 0x2dc   : > { %v2772_v2 = vpop.f32.mrf.mxu0 }
 0x2dd   : > { %v2773_v3 = vadd.f32 %v2772_v2, %v2467_v63  ;;  %v3182_v63 = vld [vmem:[#allocation18 + $0xe0] sm:$0xff]  ;;  %v3041_v2 = vand.u32 2147483648, %v5927_v24 }
 0x2de   : > { %3225 = vmatpush.msra.mxu0 %v3182_v63  ;;  %v3209_v63 = vld [vmem:[#allocation18 + $0x1b8] sm:$0xff] }
 0x2df   : > { %v2792_v7 = vpop.f32.mrf.mxu1 }
 0x2e0   : > { %v2793_v8 = vadd.f32 %v2792_v7, %v2773_v3  ;;  %v3180_v7 = vld [vmem:[#allocation18 + $0xd0] sm:$0xff] }
 0x2e1   : > { %3226 = vmatpush.msra.mxu0 %v3180_v7 }
 0x2e2   : > { %v3015_v11 = vadd.f32 %v2999_v5, %v2793_v8  ;;  %v2812_v1 = vpop.f32.mrf.mxu2  ;;  %v3181_v8 = vld [vmem:[#allocation18 + $0xd8] sm:$0xff]  ;;  %v3207_v5 = vld [vmem:[#allocation18 + $0x1a8] sm:$0xff] }
 0x2e3   : > { %v2813_v13 = vadd.f32 %v2812_v1, %v2507_v9  ;;  %3266 = vmatpush.msra.mxu2 %v3181_v8  ;;  %v3166_v8 = vld [vmem:[#allocation18 + $0x60] sm:$0xff] }
 0x2e4   : > { %v4268_v17 = vmul.f32 -1.442695, %v3015_v11 }
 0x2e5   : > { %v2832_v18 = vpop.f32.mrf.mxu3 }
 0x2e6   : > { %v2833_v19 = vadd.f32 %v2832_v18, %v2813_v13  ;;  %4615 = vpow2.f32 %v4268_v17  ;;  %v3216_v17 = vld [vmem:[#allocation18 + $0x1f0] sm:$0xff]  ;;  %v3179_v18 = vld [vmem:[#allocation18 + $0xc8] sm:$0xff] }
 0x2e7   : > { %3244 = vmatpush.msra.mxu1 %v3216_v17  ;;  %3267 = vmatpush.msra.mxu2 %v3179_v18  ;;  %v3203_v17 = vld [vmem:[#allocation18 + $0x188] sm:$0xff]  ;;  %v3162_v18 = vld [vmem:[#allocation18 + $0x40] sm:$0xff] }
 0x2e8   : > { %v3016_v20 = vadd.f32 %v3000_v15, %v2833_v19  ;;  %v3178_v15 = vld [vmem:[#allocation18 + $0xc0] sm:$0xff] }
 0x2e9   : > { %3227 = vmatpush.msra.mxu0 %v3178_v15  ;;  %v3165_v15 = vld [vmem:[#allocation18 + $0x58] sm:$0xff] }
 0x2ea   : > { %v4269_v21 = vmul.f32 -1.442695, %v3016_v20  ;;  %v3163_v20 = vld [vmem:[#allocation18 + $0x48] sm:$0xff] }
 0x2ec   : > { %4617 = vpow2.f32 %v4269_v21  ;;  %v4616_v32 = vpop.eup %4615  ;;  %v3054_v21 = vand.u32 2147483647, %v5929_v25 }
 0x2ed   : > { %v5931_v27 = vadd.f32 1.0, %v4616_v32  ;;  %4619 = vrcp.f32 %v5927_v24 }
 0x2ee   : > { %4621 = vrcp.f32 %v5929_v25 }
 0x2ef   : > { %v3079_v19 = vand.u32 2147483648, %v5931_v27  ;;  %vm3073_vm10 = vweird.f32 %v5931_v27  ;;  %v3077_v32 = vand.u32 2147483647, %v5931_v27 }
 0x2f1   : > { %vm3078_vm14 = vcmp.eq.f32.partialorder %v3077_v32, 8.507059e+37  ;;  %v3161_v32 = vld [vmem:[#allocation18 + $0x38] sm:$0xff] }
 0x2f2   : > { %v4618_v26 = vpop.eup %4617 }
 0x2f3   : > { %v5934_v35 = vadd.f32 1.0, %v4618_v26  ;;  %v5939_v28 = vpop.eup %4619 }
 0x2f4   : > { %v5941_v14 = vpop.eup %4621  ;;  %v3031_v31 = vmul.f32 %v5939_v28, %v5927_v24  ;;  %vm3036_vm15 = vweird.f32 %v5939_v28  ;;  %v3170_v24 = vld [vmem:[#allocation18 + $0x80] sm:$0xff] }
 0x2f5   : > { %4623 = vrcp.f32 %v5934_v35  ;;  %v3046_v34 = vmul.f32 %v5941_v14, %v5929_v25  ;;  %vm3051_vm1 = vweird.f32 %v5941_v14  ;;  %vm5974_vm4 = vmor %vm3035_vm2, %vm3036_vm15  ;;  %v3094_v9 = vand.u32 2147483648, %v5934_v35  ;;  %v3159_v25 = vld [vmem:[#allocation18 + $0x28] sm:$0xff] }
 0x2f6   : > { %4625 = vrcp.f32 %v5931_v27  ;;  %v3032_v44 = vsub.f32 1.0, %v3031_v31  ;;  %vm5986_vm6 = vmor %vm3050_vm5, %vm3051_vm1  ;;  %vm3088_vm8 = vweird.f32 %v5934_v35  ;;  %v3092_v13 = vand.u32 2147483647, %v5934_v35  ;;  %v3177_v31 = vld [vmem:[#allocation18 + $0xb8] sm:$0xff] }
 0x2f7   : > { %v3047_v47 = vsub.f32 1.0, %v3046_v34  ;;  %v3042_v34 = vor.u32 1.1754944e-38, %v3041_v2  ;;  %3268 = vmatpush.msra.mxu2 %v3177_v31  ;;  %vm3055_vm15 = vcmp.eq.f32.partialorder %v3054_v21, 8.507059e+37  ;;  %v3168_v2 = vld [vmem:[#allocation18 + $0x70] sm:$0xff]  ;;  %v3201_v21 = vld [vmem:[#allocation18 + $0x178] sm:$0xff] }
 0x2f8   : > { %v3033_v55 = vmul.f32 %v5939_v28, %v3032_v44  ;;  %vm3093_vm12 = vcmp.eq.f32.partialorder %v3092_v13, 8.507059e+37  ;;  %v3212_v44 = vld [vmem:[#allocation18 + $0x1d0] sm:$0xff]  ;;  %v3202_v13 = vld [vmem:[#allocation18 + $0x180] sm:$0xff] }
 0x2f9   : > { %v3048_v62 = vmul.f32 %v5941_v14, %v3047_v47  ;;  %v3080_v47 = vor.u32 1.1754944e-38, %v3079_v19  ;;  %v3200_v19 = vld [vmem:[#allocation18 + $0x170] sm:$0xff] }
 0x2fa   : > { %v5970_v4 = vadd.f32 %v5939_v28, %v3033_v55  ;;  %v3196_v31 = vld [vmem:[#allocation18 + $0x150] sm:$0xff] }
 0x2fb   : > { %v5943_v16 = vpop.eup %4623  ;;  %v5982_v11 = vadd.f32 %v5941_v14, %v3048_v62 }
 0x2fc   : > { %v5945_v29 = vpop.eup %4625  ;;  %v3084_v33 = vmul.f32 %v5943_v16, %v5934_v35  ;;  %vm3089_vm3 = vweird.f32 %v5943_v16  ;;  %v3176_v35 = vld [vmem:[#allocation18 + $0xb0] sm:$0xff] }
 0x2fd   : > { %v3069_v37 = vmul.f32 %v5945_v29, %v5931_v27  ;;  %vm3074_vm7 = vweird.f32 %v5945_v29  ;;  %vm5997_vm9 = vmor %vm3088_vm8, %vm3089_vm3  ;;  %3228 = vmatpush.msra.mxu0 %v3176_v35  ;;  %v3215_v27 = vld [vmem:[#allocation18 + $0x1e8] sm:$0xff]  ;;  %v2627_v35 = vadd.f32 %v5919_v52, %v5917_v51  ;;  %v3154_v52 = vld [vmem:[#allocation18] sm:$0xff] }
 0x2fe   : > { %v2852_v36 = vpop.f32.mrf.mxu0  ;;  %v3085_v45 = vsub.f32 1.0, %v3084_v33  ;;  %vm6010_vm11 = vmor %vm3073_vm10, %vm3074_vm7  ;;  %v3095_v33 = vor.u32 1.1754944e-38, %v3094_v9  ;;  %3285 = vmatpush.msra.mxu3 %v3215_v27  ;;  %v3204_v9 = vld [vmem:[#allocation18 + $0x190] sm:$0xff]  ;;  %v3195_v51 = vld [vmem:[#allocation18 + $0x148] sm:$0xff] }
 0x2ff   : > { %v2853_v38 = vadd.f32 %v2852_v36, %v2547_v30  ;;  %v3070_v43 = vsub.f32 1.0, %v3069_v37  ;;  %v3214_v30 = vld [vmem:[#allocation18 + $0x1e0] sm:$0xff]  ;;  %v3053_v37 = vsel %vm5986_vm6, %v5941_v14, %v5982_v11  ;;  %v3172_v14 = vld [vmem:[#allocation18 + $0x90] sm:$0xff]  ;;  %v3205_v11 = vld [vmem:[#allocation18 + $0x198] sm:$0xff] }
 0x300   : > { %v3086_v54 = vmul.f32 %v5943_v16, %v3085_v45  ;;  %3245 = vmatpush.msra.mxu1 %v3214_v30  ;;  %v3175_v45 = vld [vmem:[#allocation18 + $0xa8] sm:$0xff]  ;;  %v3158_v30 = vld [vmem:[#allocation18 + $0x20] sm:$0xff] }
 0x301   : > { %v2872_v46 = vpop.f32.mrf.mxu1  ;;  %v3071_v39 = vmul.f32 %v5945_v29, %v3070_v43  ;;  %3269 = vmatpush.msra.mxu2 %v3175_v45  ;;  %v3173_v43 = vld [vmem:[#allocation18 + $0x98] sm:$0xff]  ;;  %v3192_v45 = vld [vmem:[#allocation18 + $0x130] sm:$0xff] }
 0x302   : > { %v2873_v40 = vadd.f32 %v2872_v46, %v2853_v38  ;;  %v3087_v6 = vadd.f32 %v5943_v16, %v3086_v54  ;;  %v3174_v38 = vld [vmem:[#allocation18 + $0xa0] sm:$0xff]  ;;  %3246 = vmatpush.msra.mxu1 %v3212_v44 }
 0x303   : > { %v3072_v12 = vadd.f32 %v5945_v29, %v3071_v39  ;;  %3229 = vmatpush.msra.mxu0 %v3174_v38  ;;  %3270 = vmatpush.msra.mxu2 %v3173_v43  ;;  %v3208_v39 = vld [vmem:[#allocation18 + $0x1b0] sm:$0xff]  ;;  %v3157_v38 = vld [vmem:[#allocation18 + $0x18] sm:$0xff] }
 0x304   : > { %v2892_v53 = vpop.f32.mrf.mxu2  ;;  %v3017_v60 = vadd.f32 %v3001_v49, %v2873_v40  ;;  %v3091_v26 = vsel %vm5997_vm9, %v5943_v16, %v3087_v6  ;;  %v3038_v16 = vsel %vm5974_vm4, %v5939_v28, %v5970_v4  ;;  %v3057_v40 = vor.u32 1.1754944e-38, %v3056_v22  ;;  %v3141_v28 = vld.sshfl [vmem:[#allocation1 + $0x8] sm:$0xff pattern:$0x73625140]  ;;  %v3169_v4 = vld [vmem:[#allocation18 + $0x78] sm:$0xff] }
 0x305   : > { %v2893_v56 = vadd.f32 %v2892_v53, %v2587_v50  ;;  %v3076_v36 = vsel %vm6010_vm11, %v5945_v29, %v3072_v12  ;;  %v3096_v49 = vsel %vm3093_vm12, %v3095_v33, %v3091_v26  ;;  %v3213_v50 = vld [vmem:[#allocation18 + $0x1d8] sm:$0xff]  ;;  %v3210_v29 = vld [vmem:[#allocation18 + $0x1c0] sm:$0xff]  ;;  %v3043_v54 = vsel %vm3040_vm13, %v3042_v34, %v3038_v16  ;;  %3230 = vmatpush.msra.mxu0 %v3172_v14  ;;  %v3164_v12 = vld [vmem:[#allocation18 + $0x50] sm:$0xff] }
 0x306   : > { %4627 = vtanh.f32 %v3017_v60  ;;  %3286 = vmatpush.msra.mxu3 %v3213_v50  ;;  %v3081_v55 = vsel %vm3078_vm14, %v3080_v47, %v3076_v36  ;;  %v3058_v57 = vsel %vm3055_vm15, %v3057_v40, %v3053_v37  ;;  %3247 = vmatpush.msra.mxu1 %v3210_v29  ;;  %v3160_v22 = vld [vmem:[#allocation18 + $0x30] sm:$0xff]  ;;  %v3199_v26 = vld [vmem:[#allocation18 + $0x168] sm:$0xff]  ;;  %v3197_v34 = vld [vmem:[#allocation18 + $0x158] sm:$0xff]  ;;  %v3003_v16 = vperm.slane %v5921_v58, 6 }
 0x307   : > { %v2912_v42 = vpop.f32.mrf.mxu3  ;;  %3231 = vmatpush.msra.mxu0 %v3170_v24  ;;  %v3156_v36 = vld [vmem:[#allocation18 + $0x10] sm:$0xff]  ;;  %v3194_v37 = vld [vmem:[#allocation18 + $0x140] sm:$0xff]  ;;  %v3155_v47 = vld [vmem:[#allocation18 + $0x8] sm:$0xff] }
 0x308   : > { %v2913_v3 = vadd.f32 %v2912_v42, %v2893_v56  ;;  %v3140_v56 = vld.sshfl [vmem:[#allocation1] sm:$0xff pattern:$0x73625140]  ;;  %3287 = vmatpush.msra.mxu3 %v3211_v59  ;;  %3248 = vmatpush.msra.mxu1 %v3208_v39  ;;  %v3193_v40 = vld [vmem:[#allocation18 + $0x138] sm:$0xff]  ;;  %v3188_v14 = vld [vmem:[#allocation18 + $0x110] sm:$0xff] }
 0x309   : > { %v3171_v42 = vld [vmem:[#allocation18 + $0x88] sm:$0xff]  ;;  %v3144_v0 = vmul.f32 %v3140_v56, %v3081_v55  ;;  %3232 = vmatpush.msra.mxu0 %v3168_v2  ;;  %v3189_v43 = vld [vmem:[#allocation18 + $0x118] sm:$0xff]  ;;  %v3004_v55 = vperm.slane %v5921_v58, 7  ;;  %v3186_v56 = vld [vmem:[#allocation18 + $0x100] sm:$0xff] }
 0x30a   : > { %v3018_v10 = vadd.f32 %v3002_v61, %v2913_v3  ;;  %v3145_v61 = vmul.f32 %v3141_v28, %v3096_v49  ;;  %3271 = vmatpush.msra.mxu2 %v3171_v42  ;;  %3288 = vmatpush.msra.mxu3 %v3209_v63  ;;  %v3206_v3 = vld [vmem:[#allocation18 + $0x1a0] sm:$0xff]  ;;  %v3191_v50 = vld [vmem:[#allocation18 + $0x128] sm:$0xff]  ;;  %v3336_v24 = vld [vmem:[#allocation21 + $0xf0] sm:$0xff] }
 0x30b   : > { %3249 = vmatpush.msra.mxu1 %v3206_v3  ;;  %3233 = vmatpush.msra.mxu0 %v3166_v8  ;;  %v3190_v28 = vld [vmem:[#allocation18 + $0x120] sm:$0xff]  ;;  %v3187_v59 = vld [vmem:[#allocation18 + $0x108] sm:$0xff]  ;;  %v3368_v3 = vld [vmem:[#allocation21 + $0x1f0] sm:$0xff] }
 0x30c   : > { %4629 = vtanh.f32 %v3018_v10  ;;  %v4628_v46 = vpop.eup %4627  ;;  %3272 = vmatpush.msra.mxu2 %v3169_v4  ;;  %3289 = vmatpush.msra.mxu3 %v3207_v5  ;;  %v3167_v10 = vld [vmem:[#allocation18 + $0x68] sm:$0xff]  ;;  %v3337_v39 = vld [vmem:[#allocation21 + $0xf8] sm:$0xff] }
 0x30d   : > { %v3146_v60 = vmul.f32 %v4628_v46, %v3043_v54  ;;  %3250 = vmatpush.msra.mxu1 %v3204_v9  ;;  %3234 = vmatpush.msra.mxu0 %v3164_v12  ;;  %v3334_v42 = vld [vmem:[#allocation21 + $0xe0] sm:$0xff]  ;;  %v3333_v2 = vld [vmem:[#allocation21 + $0xd8] sm:$0xff]  ;;  %v3331_v8 = vld [vmem:[#allocation21 + $0xc8] sm:$0xff] }
 0x30e   : > { %3273 = vmatpush.msra.mxu2 %v3167_v10  ;;  %3290 = vmatpush.msra.mxu3 %v3205_v11  ;;  %v3369_v4 = vld [vmem:[#allocation21 + $0x1f8] sm:$0xff]  ;;  %v3366_v5 = vld [vmem:[#allocation21 + $0x1e0] sm:$0xff]  ;;  %v3367_v9 = vld [vmem:[#allocation21 + $0x1e8] sm:$0xff] }
 0x30f   : > { %v6029_v6 = vadd.f32 %v3146_v60, %v3144_v0  ;;  %3251 = vmatpush.msra.mxu1 %v3202_v13  ;;  %3235 = vmatpush.msra.mxu0 %v3162_v18  ;;  %v3332_v0 = vld [vmem:[#allocation21 + $0xd0] sm:$0xff]  ;;  %v3365_v11 = vld [vmem:[#allocation21 + $0x1d8] sm:$0xff] }
 0x310   : > { %3274 = vmatpush.msra.mxu2 %v3165_v15  ;;  %3291 = vmatpush.msra.mxu3 %v3203_v17  ;;  %v3364_v10 = vld [vmem:[#allocation21 + $0x1d0] sm:$0xff]  ;;  %v3329_v12 = vld [vmem:[#allocation21 + $0xb8] sm:$0xff]  ;;  %v3362_v15 = vld [vmem:[#allocation21 + $0x1c0] sm:$0xff] }
 0x311   : > { %3252 = vmatpush.msra.mxu1 %v3200_v19  ;;  %3236 = vmatpush.msra.mxu0 %v3160_v22  ;;  %v3363_v17 = vld [vmem:[#allocation21 + $0x1c8] sm:$0xff]  ;;  %v3326_v19 = vld [vmem:[#allocation21 + $0xa0] sm:$0xff]  ;;  %v3361_v22 = vld [vmem:[#allocation21 + $0x1b8] sm:$0xff] }
 0x312   : > { %v4630_v53 = vpop.eup %4629  ;;  %3275 = vmatpush.msra.mxu2 %v3163_v20  ;;  %3292 = vmatpush.msra.mxu3 %v3201_v21  ;;  %v3327_v20 = vld [vmem:[#allocation21 + $0xa8] sm:$0xff]  ;;  %v3360_v21 = vld [vmem:[#allocation21 + $0x1b0] sm:$0xff] }
 0x313   : > { %v3147_v62 = vmul.f32 %v4630_v53, %v3058_v57  ;;  %3253 = vmatpush.msra.mxu1 %v3198_v23  ;;  %3237 = vmatpush.msra.mxu0 %v3158_v30  ;;  %v3358_v30 = vld [vmem:[#allocation21 + $0x1a0] sm:$0xff] }
 0x314   : > { %3276 = vmatpush.msra.mxu2 %v3161_v32  ;;  %3293 = vmatpush.msra.mxu3 %v3199_v26  ;;  %v3324_v32 = vld [vmem:[#allocation21 + $0x90] sm:$0xff]  ;;  %v3325_v26 = vld [vmem:[#allocation21 + $0x98] sm:$0xff] }
 0x315   : > { %v6027_v41 = vadd.f32 %v3147_v62, %v3145_v61  ;;  %3254 = vmatpush.msra.mxu1 %v3196_v31  ;;  %3238 = vmatpush.msra.mxu0 %v3156_v36  ;;  %v3359_v31 = vld [vmem:[#allocation21 + $0x1a8] sm:$0xff] }
 0x316   : > { %3277 = vmatpush.msra.mxu2 %v3159_v25  ;;  %3294 = vmatpush.msra.mxu3 %v3197_v34  ;;  %v3322_v25 = vld [vmem:[#allocation21 + $0x80] sm:$0xff] }
 0x317   : > { %v3473_v7 = vrot.slane %v6027_v41, 6  ;;  %3255 = vmatpush.msra.mxu1 %v3194_v37  ;;  %3239 = vmatpush.msra.mxu0 %v3154_v52  ;;  %v3320_v37 = vld [vmem:[#allocation21 + $0x70] sm:$0xff] }
 0x318   : > { %3278 = vmatpush.msra.mxu2 %v3157_v38  ;;  %3295 = vmatpush.msra.mxu3 %v3195_v51  ;;  %v3321_v38 = vld [vmem:[#allocation21 + $0x78] sm:$0xff] }
 0x319   : > { %v3474_v1 = vsel %vm1713_vm0, %v6029_v6, %v3473_v7  ;;  %3256 = vmatpush.msra.mxu1 %v3192_v45  ;;  %3376 = vmatpush.msrb.mxu0 %v3336_v24  ;;  %v3330_v7 = vld [vmem:[#allocation21 + $0xc0] sm:$0xff]  ;;  %v3316_v24 = vld [vmem:[#allocation21 + $0x50] sm:$0xff] }
 0x31a   : > { %3477 = vst [vmem:[#allocation27 + $0x4] sm:$0xf] %v3474_v1  ;;  %3279 = vmatpush.msra.mxu2 %v3155_v47  ;;  %3296 = vmatpush.msra.mxu3 %v3193_v40  ;;  %v3328_v1 = vld [vmem:[#allocation21 + $0xb0] sm:$0xff]  ;;  %v3318_v45 = vld [vmem:[#allocation21 + $0x60] sm:$0xff] }
 0x31b   : > { %3257 = vmatpush.msra.mxu1 %v3190_v28  ;;  %3377 = vmatpush.msrb.mxu0 %v3334_v42  ;;  %v3317_v42 = vld [vmem:[#allocation21 + $0x58] sm:$0xff] }
 0x31c   : > { %3297 = vmatpush.msra.mxu3 %v3191_v50  ;;  %3416 = vmatpush.msrb.mxu2 %v3337_v39  ;;  %v3354_v39 = vld [vmem:[#allocation21 + $0x180] sm:$0xff] }
 0x31d   : > { %3258 = vmatpush.msra.mxu1 %v3188_v14  ;;  %3378 = vmatpush.msrb.mxu0 %v3332_v0  ;;  %v3315_v0 = vld [vmem:[#allocation21 + $0x48] sm:$0xff] }
 0x31e   : > { %3298 = vmatpush.msra.mxu3 %v3189_v43 }
 0x31f   : > { %3259 = vmatpush.msra.mxu1 %v3186_v56  ;;  %3379 = vmatpush.msrb.mxu0 %v3330_v7  ;;  %v3351_v7 = vld [vmem:[#allocation21 + $0x168] sm:$0xff] }
 0x320   : > { %v2932_v33 = vpop.f32.mrf.mxu0  ;;  %3299 = vmatpush.msra.mxu3 %v3187_v59 }
 0x321   : > { %v2933_v27 = vadd.f32 %v2932_v33, %v2627_v35  ;;  %3396 = vmatpush.msrb.mxu1 %v3368_v3  ;;  %3380 = vmatpush.msrb.mxu0 %v3328_v1  ;;  %v3323_v33 = vld [vmem:[#allocation21 + $0x88] sm:$0xff]  ;;  %v3312_v3 = vld [vmem:[#allocation21 + $0x30] sm:$0xff] }
 0x322   : > { %v2952_v44 = vpop.f32.mrf.mxu1  ;;  %3436 = vmatpush.msrb.mxu3 %v3369_v4  ;;  %v3350_v4 = vld [vmem:[#allocation21 + $0x160] sm:$0xff]  ;;  %v3308_v1 = vld [vmem:[#allocation21 + $0x10] sm:$0xff] }
 0x323   : > { %v2953_v46 = vadd.f32 %v2952_v44, %v2933_v27  ;;  %3397 = vmatpush.msrb.mxu1 %v3366_v5  ;;  %3381 = vmatpush.msrb.mxu0 %v3326_v19  ;;  %v3356_v27 = vld [vmem:[#allocation21 + $0x190] sm:$0xff]  ;;  %v3313_v5 = vld [vmem:[#allocation21 + $0x38] sm:$0xff]  ;;  %v3307_v19 = vld [vmem:[#allocation21 + $0x8] sm:$0xff] }
 0x324   : > { %3437 = vmatpush.msrb.mxu3 %v3367_v9  ;;  %v3348_v9 = vld [vmem:[#allocation21 + $0x150] sm:$0xff] }
 0x325   : > { %v3019_v49 = vadd.f32 %v3003_v16, %v2953_v46  ;;  %3398 = vmatpush.msrb.mxu1 %v3364_v10  ;;  %3382 = vmatpush.msrb.mxu0 %v3324_v32  ;;  %v3357_v16 = vld [vmem:[#allocation21 + $0x198] sm:$0xff]  ;;  %v3319_v46 = vld [vmem:[#allocation21 + $0x68] sm:$0xff] }
 0x326   : > { %v2972_v29 = vpop.f32.mrf.mxu2  ;;  %3438 = vmatpush.msrb.mxu3 %v3365_v11  ;;  %v3311_v10 = vld [vmem:[#allocation21 + $0x28] sm:$0xff]  ;;  %v3349_v11 = vld [vmem:[#allocation21 + $0x158] sm:$0xff] }
 0x327   : > { %v4270_v53 = vmul.f32 -1.442695, %v3019_v49  ;;  %v2973_v54 = vadd.f32 %v2972_v29, %v5915_v48  ;;  %v3335_v48 = vld [vmem:[#allocation21 + $0xe8] sm:$0xff]  ;;  %3399 = vmatpush.msrb.mxu1 %v3362_v15  ;;  %3383 = vmatpush.msrb.mxu0 %v3322_v25  ;;  %v3341_v32 = vld [vmem:[#allocation21 + $0x118] sm:$0xff] }
 0x328   : > { %v2992_v57 = vpop.f32.mrf.mxu3  ;;  %3417 = vmatpush.msrb.mxu2 %v3335_v48  ;;  %3439 = vmatpush.msrb.mxu3 %v3363_v17  ;;  %v3314_v48 = vld [vmem:[#allocation21 + $0x40] sm:$0xff]  ;;  %v3347_v15 = vld [vmem:[#allocation21 + $0x148] sm:$0xff] }
 0x329   : > { %4631 = vpow2.f32 %v4270_v53  ;;  %v2993_v60 = vadd.f32 %v2992_v57, %v2973_v54  ;;  %3400 = vmatpush.msrb.mxu1 %v3360_v21  ;;  %3384 = vmatpush.msrb.mxu0 %v3320_v37  ;;  %v3306_v17 = vld [vmem:[#allocation21] sm:$0xff] }
 0x32a   : > { %3418 = vmatpush.msrb.mxu2 %v3333_v2  ;;  %3440 = vmatpush.msrb.mxu3 %v3361_v22  ;;  %v3353_v2 = vld [vmem:[#allocation21 + $0x178] sm:$0xff]  ;;  %v3342_v21 = vld [vmem:[#allocation21 + $0x120] sm:$0xff]  ;;  %v3343_v22 = vld [vmem:[#allocation21 + $0x128] sm:$0xff] }
 0x32b   : > { %v3020_v61 = vadd.f32 %v3004_v55, %v2993_v60  ;;  %3401 = vmatpush.msrb.mxu1 %v3358_v30  ;;  %3385 = vmatpush.msrb.mxu0 %v3318_v45  ;;  %v3218_v30 = vld [vmem:[#allocation20] sm:$0x3]  ;;  %v3370_v45 = vld [vmem:[#allocation23] sm:$0x3] }
 0x32c   : > { %3419 = vmatpush.msrb.mxu2 %v3331_v8  ;;  %3441 = vmatpush.msrb.mxu3 %v3359_v31  ;;  %v3310_v8 = vld [vmem:[#allocation21 + $0x20] sm:$0xff]  ;;  %v3220_v31 = vperm.slane %v3218_v30, 0 }
 0x32d   : > { %v4271_v62 = vmul.f32 -1.442695, %v3020_v61  ;;  %3402 = vmatpush.msrb.mxu1 %v3356_v27  ;;  %3386 = vmatpush.msrb.mxu0 %v3316_v24 }
 0x32e   : > { %3420 = vmatpush.msrb.mxu2 %v3329_v12  ;;  %3442 = vmatpush.msrb.mxu3 %v3357_v16  ;;  %v3346_v12 = vld [vmem:[#allocation21 + $0x140] sm:$0xff]  ;;  %v3221_v16 = vperm.slane %v3218_v30, 1 }
 0x32f   : > { %v4632_v63 = vpop.eup %4631  ;;  %4633 = vpow2.f32 %v4271_v62  ;;  %3403 = vmatpush.msrb.mxu1 %v3354_v39  ;;  %3387 = vmatpush.msrb.mxu0 %v3314_v48 }
 0x330   : > { %v6039_v58 = vadd.f32 1.0, %v4632_v63  ;;  %3421 = vmatpush.msrb.mxu2 %v3327_v20  ;;  %v3355_v63 = vld [vmem:[#allocation21 + $0x188] sm:$0xff]  ;;  %v3345_v20 = vld [vmem:[#allocation21 + $0x138] sm:$0xff] }
 0x331   : > { %3443 = vmatpush.msrb.mxu3 %v3355_v63  ;;  %3388 = vmatpush.msrb.mxu0 %v3312_v3 }
 0x332   : > { %4635 = vrcp.f32 %v6039_v58  ;;  %3422 = vmatpush.msrb.mxu2 %v3325_v26  ;;  %v3119_v36 = vand.u32 2147483648, %v6039_v58  ;;  %v3117_v51 = vand.u32 2147483647, %v6039_v58  ;;  %vm3113_vm2 = vweird.f32 %v6039_v58  ;;  %v3338_v26 = vld [vmem:[#allocation21 + $0x100] sm:$0xff] }
 0x333   : > { %3444 = vmatpush.msrb.mxu3 %v3353_v2  ;;  %3389 = vmatpush.msrb.mxu0 %v3310_v8 }
 0x334   : > { %3423 = vmatpush.msrb.mxu2 %v3323_v33  ;;  %v3120_v40 = vor.u32 1.1754944e-38, %v3119_v36  ;;  %vm3118_vm4 = vcmp.eq.f32.partialorder %v3117_v51, 8.507059e+37 }
 0x335   : > { %v4634_v13 = vpop.eup %4633  ;;  %3445 = vmatpush.msrb.mxu3 %v3351_v7  ;;  %3390 = vmatpush.msrb.mxu0 %v3308_v1 }
 0x336   : > { %v6042_v18 = vadd.f32 1.0, %v4634_v13  ;;  %3424 = vmatpush.msrb.mxu2 %v3321_v38  ;;  %v3309_v13 = vld [vmem:[#allocation21 + $0x18] sm:$0xff] }
 0x337   : > { %3446 = vmatpush.msrb.mxu3 %v3349_v11  ;;  %3391 = vmatpush.msrb.mxu0 %v3306_v17 }
 0x338   : > { %v4636_v23 = vpop.eup %4635  ;;  %4637 = vrcp.f32 %v6042_v18  ;;  %3425 = vmatpush.msrb.mxu2 %v3319_v46  ;;  %v3134_v29 = vand.u32 2147483648, %v6042_v18  ;;  %v3132_v54 = vand.u32 2147483647, %v6042_v18  ;;  %vm3128_vm6 = vweird.f32 %v6042_v18 }
 0x339   : > { %v3109_v35 = vmul.f32 %v4636_v23, %v6039_v58  ;;  %4639 = vtanh.f32 %v6029_v6  ;;  %vm3114_vm1 = vweird.f32 %v4636_v23  ;;  %v3352_v58 = vld [vmem:[#allocation21 + $0x170] sm:$0xff]  ;;  %3447 = vmatpush.msrb.mxu3 %v3347_v15  ;;  %v3373_v46 = vperm.slane %v3370_v45, 1 }
 0x33a   : > { %vm3115_vm3 = vmor %vm3113_vm2, %vm3114_vm1  ;;  %4641 = vtanh.f32 %v6027_v41  ;;  %v3135_v56 = vor.u32 1.1754944e-38, %v3134_v29  ;;  %vm3133_vm8 = vcmp.eq.f32.partialorder %v3132_v54, 8.507059e+37  ;;  %3426 = vmatpush.msrb.mxu2 %v3317_v42  ;;  %3404 = vmatpush.msrb.mxu1 %v3352_v58 }
 0x33b   : > { %v3110_v34 = vsub.f32 1.0, %v3109_v35  ;;  %3448 = vmatpush.msrb.mxu3 %v3345_v20  ;;  %v3339_v35 = vld [vmem:[#allocation21 + $0x108] sm:$0xff] }
 0x33c   : > { %3427 = vmatpush.msrb.mxu2 %v3315_v0  ;;  %3405 = vmatpush.msrb.mxu1 %v3350_v4 }
 0x33d   : > { %v3111_v44 = vmul.f32 %v4636_v23, %v3110_v34  ;;  %3449 = vmatpush.msrb.mxu3 %v3343_v22 }
 0x33e   : > { %v4638_v52 = vpop.eup %4637  ;;  %3428 = vmatpush.msrb.mxu2 %v3313_v5  ;;  %3406 = vmatpush.msrb.mxu1 %v3348_v9 }
 0x33f   : > { %v3124_v47 = vmul.f32 %v4638_v52, %v6042_v18  ;;  %v3112_v6 = vadd.f32 %v4636_v23, %v3111_v44  ;;  %v4640_v50 = vpop.eup %4639  ;;  %vm3129_vm5 = vweird.f32 %v4638_v52  ;;  %v3344_v18 = vld [vmem:[#allocation21 + $0x130] sm:$0xff]  ;;  %3450 = vmatpush.msrb.mxu3 %v3341_v32 }
 0x340   : > { %vm3130_vm7 = vmor %vm3128_vm6, %vm3129_vm5  ;;  %v4642_v59 = vpop.eup %4641  ;;  %3429 = vmatpush.msrb.mxu2 %v3311_v10  ;;  %3407 = vmatpush.msrb.mxu1 %v3346_v12 }
 0x341   : > { %v3125_v49 = vsub.f32 1.0, %v3124_v47  ;;  %v3116_v28 = vsel %vm3115_vm3, %v4636_v23, %v3112_v6  ;;  %v3340_v23 = vld [vmem:[#allocation21 + $0x110] sm:$0xff]  ;;  %3451 = vmatpush.msrb.mxu3 %v3339_v35  ;;  %v3372_v6 = vperm.slane %v3370_v45, 0 }
 0x342   : > { %v3121_v14 = vsel %vm3118_vm4, %v3120_v40, %v3116_v28  ;;  %3430 = vmatpush.msrb.mxu2 %v3309_v13  ;;  %3408 = vmatpush.msrb.mxu1 %v3344_v18 }
 0x343   : > { %v3152_v43 = vmul.f32 %v4640_v50, %v3121_v14  ;;  %v3126_v53 = vmul.f32 %v4638_v52, %v3125_v49 }
 0x344   : > { %3431 = vmatpush.msrb.mxu2 %v3307_v19  ;;  %3409 = vmatpush.msrb.mxu1 %v3342_v21 }
 0x345   : > { %3240 = vmatmul.f32.vlgmr.msra.gmra.mxu0 %v3152_v43  ;;  %3280 = vmatmul.f32.vlgmr.msra.gmra.mxu2 %v3152_v43  ;;  %v3127_v55 = vadd.f32 %v4638_v52, %v3126_v53 }
 0x346   : > { %3410 = vmatpush.msrb.mxu1 %v3340_v23 }
 0x347   : > { %v3131_v57 = vsel %vm3130_vm7, %v4638_v52, %v3127_v55 }
 0x348   : > { %v3136_v60 = vsel %vm3133_vm8, %v3135_v56, %v3131_v57  ;;  %3411 = vmatpush.msrb.mxu1 %v3338_v26 }
 0x349   : > { %v3153_v41 = vmul.f32 %v4642_v59, %v3136_v60 }
 0x34b   : > { %3260 = vmatmul.f32.vlgmr.msra.gmra.mxu1 %v3153_v41  ;;  %v3465_v61 = vrot.slane %v3153_v41, 6  ;;  %3300 = vmatmul.f32.vlgmr.msra.gmra.mxu3 %v3153_v41 }
 0x34d   : > { %v3466_v62 = vsel %vm1713_vm0, %v3152_v43, %v3465_v61 }
 0x34e   : > { %3469 = vst [vmem:[#allocation25 + $0x4] sm:$0xf] %v3466_v62 }
 0x3c2   : > { %v3241_v25 = vpop.f32.mrf.mxu0 }
 0x3c3   : > { %v3242_v33 = vadd.f32 %v3241_v25, %v3220_v31 }
 0x3c8   : > { %v3261_v34 = vpop.f32.mrf.mxu1  ;;  %v3281_v36 = vpop.f32.mrf.mxu2 }
 0x3c9   : > { %v3262_v27 = vadd.f32 %v3261_v34, %v3242_v33  ;;  %v3282_v38 = vadd.f32 %v3281_v36, %v3221_v16 }
 0x3cb   : > { %v3304_v37 = vmax.f32 %v3262_v27, 0.0 }
 0x3cd   : > { %3392 = vmatmul.f32.vlgmr.msrb.gmra.mxu0 %v3304_v37  ;;  %3432 = vmatmul.f32.vlgmr.msrb.gmra.mxu2 %v3304_v37 }
 0x3ce   : > { %v3301_v44 = vpop.f32.mrf.mxu3 }
 0x3cf   : > { %v3302_v51 = vadd.f32 %v3301_v44, %v3282_v38 }
 0x3d1   : > { %v3305_v52 = vmax.f32 %v3302_v51, 0.0 }
 0x3d3   : > { %3412 = vmatmul.f32.vlgmr.msrb.gmra.mxu1 %v3305_v52  ;;  %3452 = vmatmul.f32.vlgmr.msrb.gmra.mxu3 %v3305_v52 }
 0x44a   : > { %v3393_v40 = vpop.f32.mrf.mxu0 }
 0x44b   : > { %v3394_v14 = vadd.f32 %v3393_v40, %v3372_v6 }
 0x450   : > { %v3433_v47 = vpop.f32.mrf.mxu2  ;;  %v3413_v28 = vpop.f32.mrf.mxu1 }
 0x451   : > { %v3434_v49 = vadd.f32 %v3433_v47, %v3373_v46  ;;  %v3414_v43 = vadd.f32 %v3413_v28, %v3394_v14 }
 0x456   : > { %v3453_v50 = vpop.f32.mrf.mxu3 }
 0x457   : > { %v3454_v29 = vadd.f32 %v3453_v50, %v3434_v49 }
 0x459   : > { %v3458_v53 = vrot.slane %v3454_v29, 6 }
 0x45b   : > { %v3459_v54 = vsel %vm1713_vm0, %v3414_v43, %v3458_v53 }
 0x45c   : > { %3461 = vst [vmem:[#allocation24] sm:$0xf] %v3459_v54 }
 0x45d PF: > { %p4534_p3 = scmp.eq.s32.totalorder %s5316_s25, 2  ;;  %s5207_s5 = smov [#allocation25]  }
 0x45e   : > { %s3495_s30 = sshll.u32 %s5207_s5, 4  ;;  %s6154_s3 = sld [smem:[#allocation47_spill]]  ;;  %s3496_s30 = int_to_ptr.vmem [resolvable:$true] %s3495_s30 }
 0x45f   : > { %s5208_s16 = smov 64   ;;  %s5209_s21 = smov 4  }
 0x460   : > { %s6155_s6 = sld [smem:[#allocation46_spill]]  ;;  %s5210_s14 = smov [#allocation24]  }
 0x461   : > { %s3484_s2 = sshll.u32 %s5210_s14, 4  ;;  %s5211_s17 = smov [#allocation27]   ;;  %s3485_s2 = int_to_ptr.vmem [resolvable:$true] %s3484_s2 }
 0x462   : > { %s3509_s29 = sshll.u32 %s5211_s17, 4  ;;  %s6156_s8 = sld [smem:[#allocation48_spill]]  ;;  %s3510_s29 = int_to_ptr.vmem [resolvable:$true] %s3509_s29 }
 0x464   : > { %s3497_s18 = sshll.u32 %s6154_s3, 4  ;;  %s3498_s18 = int_to_ptr.hbm [resolvable:$true] %s3497_s18 }
 0x465   : > { %4461 = dma.vmem_to_hbm [thread:$0]  (%p4534_p3), %s3496_s30, 128, %s3498_s18, [#allocation26], %s5208_s16, %s5208_s16, %s5209_s21  }
 0x466   : > { %s3486_s26 = sshll.u32 %s6155_s6, 4  ;;  %s3487_s26 = int_to_ptr.hbm [resolvable:$true] %s3486_s26 }
 0x467   : > { %4459 = dma.vmem_to_hbm [thread:$0]  (%p4534_p3), %s3485_s2, 64, %s3487_s26, [#allocation5]  }
 0x468   : > { %s3511_s28 = sshll.u32 %s6156_s8, 4  ;;  %s3512_s28 = int_to_ptr.hbm [resolvable:$true] %s3511_s28 }
 0x469   : > { %4463 = dma.vmem_to_hbm [thread:$0]  (%p4534_p3), %s3510_s29, 128, %s3512_s28, [#allocation26], %s5208_s16, %s5208_s16, %s5209_s21  }
 0x46a   : > { %5166 = dma.done.wait (%p4534_p3), [#allocation5], 64  }
 0x46b   : > { %5168 = vsyncadd (%p4534_p3), [#allocation5], 4294967232 }
 0x46c   : > { %5170 = dma.done.wait (%p4534_p3), [#allocation26], 256  }
 0x46d   : > { %5172 = vsyncadd (%p4534_p3), [#allocation26], 4294967040 }
 0x46e PF: > { %p36_p4 = scmp.ge.s32.totalorder %s5393_s7, 5   ;;  %s6157_s18 = smov %s5179_s19 }
 0x46f   : > { %s6158_s19 = smov %s5183_s20  ;;  %s6159_s20 = smov %s5404_s23 }
 0x470   : > { %s6160_s21 = smov %s5393_s7  ;;  %38 = sbr.rel (!%p36_p4) target bundleno = 23 (0x17), region = 192 }
 0x475   :  { %3538 = vsyncpa [#allocation4], 1 }
 0x476   :  { %3540 = vsyncpa [#allocation4 + $0x1], 1 }
 0x477   :  { %3541 = vsyncpa [#allocation7], 1 }
 0x478   :  { %3543 = vsyncpa [#allocation7 + $0x1], 1 }
 0x479   :  { %3544 = vsyncpa [#allocation10], 1 }
 0x47a   :  { %3545 = vsyncpa [#allocation13], 1 }
 0x47b   :  { %3546 = vsyncpa [#allocation16], 1 }
 0x47c   :  { %3547 = vsyncpa [#allocation19], 1 }
 0x47d   :  { %3548 = vsyncpa [#allocation22], 1 }
 0x47e   :  { %3549 = vsyncpa [#allocation5], 1 }
 0x47f   :  { %3551 = vsyncpa [#allocation5 + $0x1], 1 }
 0x480   :  { %3552 = vsyncpa [#allocation26], 1 }

</bundles_post_ra>
